<compile_context>
chip_gen: v5e
topology: v5e:2x2
jax: 0.10.0
libtpu: 0.0.40
codegen_flags: <defaults>
</compile_context>

<pallas_src>
import functools

import jax
import jax.numpy as jnp
from jax import lax
from jax.experimental import pallas as pl
from jax.experimental.pallas import tpu as pltpu


# ---------------------------------------------------------------------------
# Pallas kernel: Tc timesteps of the leaky RNN per grid step, weights resident.
# ---------------------------------------------------------------------------
def _rnn_rollout_kernel(x0_ref, u1_ref, w_hbm, x_out_ref,
                        w_sc, x_sc, ru_sc, w_sem, *, alpha: float, tc: int):
    """One grid step = `tc` RNN timesteps for one batch tile.

    x0_ref  : (TB, N)          f32  initial hidden state (used at chunk 0)
    u1_ref  : (Tc, TB, Dpad)   bf16 [inputs_t, 1, 0-pad] for this time chunk
    w_hbm   : (N + Dpad, N)    bf16 fused [J; W_in; b; 0] in HBM (ANY space)
    x_out   : (Tc, TB, N)      f32  x trajectory chunk
    w_sc    : (N + Dpad, N)    bf16 single-buffered resident weights
    x_sc    : (TB, N)          f32  carried hidden state
    ru_sc   : (TB, N + Dpad)   bf16 carried fused MXU operand [r_t, u_t, 1, 0]
    w_sem   : DMA semaphore for the weight copy
    """
    n = x_sc.shape[1]
    c = pl.program_id(1)          # time-chunk index (innermost, sequential)

    @pl.when(c == 0)
    def _():
        # Weight DMA overlaps with the state init below it.
        cp = pltpu.make_async_copy(w_hbm, w_sc, w_sem)
        cp.start()
        x0 = x0_ref[...]
        x_sc[...] = x0
        ru_sc[:, :n] = jnp.tanh(x0).astype(ru_sc.dtype)
        cp.wait()

    def step(t):
        # Drop this step's (lane-aligned) input block into the fused operand.
        ru_sc[:, n:] = u1_ref[t]
        # Single MXU contraction: r@J + u@W_in + 1*b, fp32 accumulation.
        pre = jnp.dot(ru_sc[...], w_sc[...], preferred_element_type=jnp.float32)
        x_prev = x_sc[...]
        x_new = x_prev + alpha * (pre - x_prev)
        x_sc[...] = x_new
        ru_sc[:, :n] = jnp.tanh(x_new).astype(ru_sc.dtype)
        x_out_ref[t] = x_new.astype(x_out_ref.dtype)

    if tc <= 16:
        # Fully unrolled: static indices, LLO scheduler sees the whole chunk.
        for t in range(tc):
            step(t)
    else:
        def body(t, carry):
            step(t)
            return carry
        lax.fori_loop(0, tc, body, 0)


def rnn_multi_context_rollout(x0, u_seq, J, W_in, b, *, dt=0.05, tau=0.15,
                              batch_tile=None, time_chunk=None):
    """Run T steps of the leaky RNN in one Pallas call.

    x0    : (B, N) fp32    initial hidden state
    u_seq : (T, B, D) fp32 concatenated external inputs per step
    J     : (N, N) fp32    recurrent weights (applied as r @ J)
    W_in  : (D, N) fp32    input weights
    b     : (N,)   fp32    bias
    Returns {"r_hidden": (T,B,N) f32, "r_act": (T,B,N) f32}.
    """
    T, B, D = u_seq.shape
    N = x0.shape[1]
    assert W_in.shape == (D, N) and J.shape == (N, N) and b.shape == (N,)
    assert N % 128 == 0, "nneurons must be a multiple of 128 for lane-dense IO"
    alpha = float(dt) / float(tau)

    # ---- tile selection ---------------------------------------------------
    if batch_tile is None:
        if B >= 256:
            batch_tile = 128        # (256 is also a good choice on v6e/v7x)
        elif B >= 32:
            # ~B/2 rounded to 8 -> >= 2 batch tiles so v7x can use both TCs.
            batch_tile = max(16, -(-((B + 1) // 2) // 8) * 8)
        else:
            batch_tile = max(16, -(-B // 8) * 8)   # >=16: dense bf16 sublanes
    tb = int(batch_tile)
    Bp = -(-B // tb) * tb

    if time_chunk is None:
        time_chunk = min(T, 8)
    tc = int(max(1, time_chunk))
    Tp = -(-T // tc) * tc

    # ---- fused operands (bias folded via a ones column, lane-padded) ------
    d1 = D + 1
    dpad = -(-d1 // 128) * 128
    u1 = jnp.zeros((Tp, Bp, dpad), jnp.float32)
    u1 = u1.at[:T, :B, :D].set(u_seq.astype(jnp.float32))
    u1 = u1.at[:T, :B, D].set(1.0)
    u1 = u1.astype(jnp.bfloat16)                                # (Tp, Bp, Dpad)

    w_full = jnp.zeros((N + dpad, N), jnp.float32)
    w_full = w_full.at[:N].set(J)
    w_full = w_full.at[N:N + D].set(W_in)
    w_full = w_full.at[N + D].set(b)
    w_full = w_full.astype(jnp.bfloat16)                        # (N+Dpad, N)

    x0p = jnp.zeros((Bp, N), jnp.float32).at[:B].set(x0.astype(jnp.float32))

    # ---- VMEM budget (shape + generation aware) ----------------------------
    w_bytes = (N + dpad) * N * 2
    scratch_bytes = w_bytes + tb * N * 4 + tb * (N + dpad) * 2
    block_bytes = 2 * (tb * N * 4) + 2 * (tc * tb * dpad * 2) \
        + 2 * (tc * tb * N * 4)
    needed = scratch_bytes + block_bytes
    try:
        vmem_phys = int(pltpu.get_tpu_info().vmem_capacity_bytes)
    except Exception:
        vmem_phys = 64 * 1024 * 1024          # conservative (v7x per-TC VMEM)
    vmem_limit = int(min(max(32 * 1024 * 1024, needed + (4 << 20)),
                         int(vmem_phys * 0.75)))

    cost = pl.CostEstimate(
        flops=int(2 * Tp * Bp * (N + dpad) * N),
        transcendentals=int((Tp + 1) * Bp * N),
        bytes_accessed=int(w_bytes + Bp * N * 4 + Tp * Bp * dpad * 2
                           + Tp * Bp * N * 4),
    )

    kernel = functools.partial(_rnn_rollout_kernel, alpha=alpha, tc=tc)

    x_traj = pl.pallas_call(
        kernel,
        out_shape=jax.ShapeDtypeStruct((Tp, Bp, N), jnp.float32),  # r_hidden
        grid=(Bp // tb, Tp // tc),
        in_specs=[
            # Initial state: block index constant in the time axis.
            pl.BlockSpec((tb, N), lambda bi, c: (bi, 0)),
            # Per-chunk inputs: (Tc, tb, Dpad) lane-aligned block.
            pl.BlockSpec((tc, tb, dpad), lambda bi, c: (c, bi, 0)),
            # Fused weights stay in HBM; DMA'd once per batch tile into a
            # single-buffered VMEM scratch inside the kernel.
            pl.BlockSpec(memory_space=pl.ANY),
        ],
        out_specs=pl.BlockSpec((tc, tb, N), lambda bi, c: (c, bi, 0)),
        scratch_shapes=[
            pltpu.VMEM((N + dpad, N), jnp.bfloat16),   # resident fused weights
            pltpu.VMEM((tb, N), jnp.float32),          # x state carry
            pltpu.VMEM((tb, N + dpad), jnp.bfloat16),  # fused [r, u, 1] operand
            pltpu.SemaphoreType.DMA,                   # weight copy semaphore
        ],
        compiler_params=pltpu.CompilerParams(
            dimension_semantics=("parallel", "arbitrary"),
            vmem_limit_bytes=vmem_limit),
        cost_estimate=cost,
    )(x0p, u1, w_full)

    x_traj = x_traj[:T, :B]
    # r_act recomputed outside the kernel (exact) -> kernel writeback halved.
    return {"r_hidden": x_traj, "r_act": jnp.tanh(x_traj)}


# ---------------------------------------------------------------------------
# Module-level glue mirroring RNNMultiContextInput.forward (plain JAX).
# ---------------------------------------------------------------------------
def make_params(key, nneurons, input_sources, g0, n_classes, nbg):
    """Deterministic parameter init mirroring the module's __init__ shapes."""
    order = sorted(input_sources)
    keys = jax.random.split(key, 2 + len(order))
    J = (g0 / jnp.sqrt(nneurons)) * jax.random.normal(
        keys[0], (nneurons, nneurons), dtype=jnp.float32)
    w_blocks = []
    for k, name in zip(keys[1:1 + len(order)], order):
        dim, _trainable = input_sources[name]
        w_blocks.append(jax.random.normal(k, (dim, nneurons), jnp.float32)
                        / jnp.sqrt(dim))
    W_in = jnp.concatenate(w_blocks, axis=0)
    b = jnp.zeros((nneurons,), jnp.float32)
    bg_means = jax.random.normal(keys[-1], (n_classes, nbg), jnp.float32)
    return {"J": J, "W_in": W_in, "b": b, "bg_means": bg_means}


def rnn_multi_context_forward(bg_inputs, rnn_inputs, params, input_sources, x0,
                              *, dt=0.05, tau=0.15):
    """Mirrors RNNMultiContextInput.forward; the RNN rollout runs in Pallas."""
    if "cluster_probs" in bg_inputs:
        cluster_probs = bg_inputs["cluster_probs"]
    else:
        # TODO(synk): classifier MLP + softmax branch (source not shown).
        raise NotImplementedError("supply bg_inputs['cluster_probs']")

    # GaussianMixtureModel forward: deterministic mixture of cluster means.
    bg_act = cluster_probs @ params["bg_means"]                  # (B, nbg)

    some_seq = next(iter(rnn_inputs.values()))
    T, B = some_seq.shape[0], bg_act.shape[0]
    streams = []
    for name in sorted(input_sources):                           # matches W_in
        if name == "contextual":
            streams.append(jnp.broadcast_to(bg_act, (T, B, bg_act.shape[1])))
        else:
            streams.append(rnn_inputs[name])
    u_seq = jnp.concatenate(streams, axis=-1)                    # (T, B, D)

    rnn_out = rnn_multi_context_rollout(
        x0, u_seq, params["J"], params["W_in"], params["b"], dt=dt, tau=tau)
    return {"r_hidden": rnn_out["r_hidden"], "r_act": rnn_out["r_act"],
            "bg_act": bg_act, "cluster_probs": cluster_probs}


if __name__ == "__main__":
    key = jax.random.PRNGKey(0)

    # TPU-friendly small shapes: batch >= 16 (bf16 sublane tile), N % 128 == 0.
    batch = 16
    nneurons = 256
    nbg = 20
    n_classes = 20
    T = 16
    g0, dt, tau = 1.2, 0.05, 0.15
    input_sources = {"sensory": (12, True), "contextual": (nbg, True)}

    k_par, k_probs, k_sen, k_x0 = jax.random.split(key, 4)
    params = make_params(k_par, nneurons, input_sources, g0, n_classes, nbg)

    cluster_probs = jax.nn.softmax(
        jax.random.normal(k_probs, (batch, n_classes), jnp.float32), axis=-1)
    bg_inputs = {"cluster_probs": cluster_probs}
    rnn_inputs = {"sensory":
                  jax.random.normal(k_sen, (T, batch, 12), jnp.float32)}
    x0 = 0.1 * jax.random.normal(k_x0, (batch, nneurons), jnp.float32)

    out = rnn_multi_context_forward(bg_inputs, rnn_inputs, params,
                                    input_sources, x0, dt=dt, tau=tau)
    jax.block_until_ready(out)

    # --------------- plain-JAX reference (same bf16 weight rounding) --------
    alpha = dt / tau
    bg_act = cluster_probs @ params["bg_means"]
    streams = []
    for name in sorted(input_sources):
        if name == "contextual":
            streams.append(jnp.broadcast_to(bg_act, (T, batch, nbg)))
        else:
            streams.append(rnn_inputs[name])
    u_seq = jnp.concatenate(streams, axis=-1)

    bf = lambda a: a.astype(jnp.bfloat16).astype(jnp.float32)
    J_bf, Win_bf = bf(params["J"]), bf(params["W_in"])
    b_bf, u_bf = bf(params["b"]), bf(u_seq)
    x = x0
    r_mm = bf(jnp.tanh(x0))
    xs, rs = [], []
    for t in range(T):
        pre = r_mm @ J_bf + u_bf[t] @ Win_bf + b_bf
        x = x + alpha * (pre - x)
        r_full = jnp.tanh(x)
        r_mm = bf(r_full)
        xs.append(x)
        rs.append(r_full)
    x_ref = jnp.stack(xs)
    r_ref = jnp.stack(rs)

    assert out["r_hidden"].shape == (T, batch, nneurons)
    assert out["r_act"].shape == (T, batch, nneurons)
    assert out["bg_act"].shape == (batch, nbg)
    assert jnp.allclose(out["r_hidden"], x_ref, atol=5e-3, rtol=5e-3)
    assert jnp.allclose(out["r_act"], r_ref, atol=5e-3, rtol=5e-3)

    print("KERNEL_OK")
</pallas_src>

<mosaic_0001>
module attributes {stable_mosaic.version = 11 : i64} {
  func.func @_rnn_rollout_kernel(%arg0: i32, %arg1: i32, %arg2: memref<16x256xf32, #tpu.memory_space<vmem>>, %arg3: memref<8x16x128xbf16, #tpu.memory_space<vmem>>, %arg4: memref<384x256xbf16, #tpu.memory_space<any>>, %arg5: memref<8x16x256xf32, #tpu.memory_space<vmem>>, %arg6: memref<384x256xbf16, #tpu.memory_space<vmem>>, %arg7: memref<16x256xf32, #tpu.memory_space<vmem>>, %arg8: memref<16x384xbf16, #tpu.memory_space<vmem>>, %arg9: memref<!tpu.dma_semaphore, #tpu.memory_space<semaphore_mem>>) attributes {dimension_semantics = [#tpu.dimension_semantics<parallel>, #tpu.dimension_semantics<arbitrary>], iteration_bounds = array<i64: 1, 2>, scalar_prefetch = 0 : i64, scratch_operands = 4 : i64, tpu.core_type = #tpu.core_type<tc>, window_params = [{transform_indices = @transform_0, window_bounds = array<i64: 16, 256>}, {transform_indices = @transform_1, window_bounds = array<i64: 8, 16, 128>}, {}, {transform_indices = @transform_3, window_bounds = array<i64: 8, 16, 256>}]} {
    %c0_i32 = arith.constant 0 : i32
    %0 = arith.cmpi eq, %arg1, %c0_i32 : i32
    %1 = arith.extui %0 : i1 to i32
    %c0_i32_0 = arith.constant 0 : i32
    %2 = arith.cmpi ne, %1, %c0_i32_0 : i32
    scf.if %2 {
      tpu.enqueue_dma source(%arg4 : memref<384x256xbf16, #tpu.memory_space<any>>) target(%arg6 : memref<384x256xbf16, #tpu.memory_space<vmem>>) target_semaphore(%arg9 : memref<!tpu.dma_semaphore, #tpu.memory_space<semaphore_mem>>)
      %c0_151 = arith.constant 0 : index
      %c0_152 = arith.constant 0 : index
      %147 = vector.load %arg2[%c0_151, %c0_152] : memref<16x256xf32, #tpu.memory_space<vmem>>, vector<16x256xf32>
      %c0_153 = arith.constant 0 : index
      %c0_154 = arith.constant 0 : index
      %148 = vector.load %arg7[%c0_153, %c0_154] : memref<16x256xf32, #tpu.memory_space<vmem>>, vector<16x256xf32>
      tpu.vector_store %arg7[%c0_153, %c0_154], %147 {strides = array<i32>} : memref<16x256xf32, #tpu.memory_space<vmem>>, vector<16x256xf32>,
      %149 = math.tanh %147 : vector<16x256xf32>
      %150 = arith.truncf %149 : vector<16x256xf32> to vector<16x256xbf16>
      %c0_155 = arith.constant 0 : index
      %c0_156 = arith.constant 0 : index
      %151 = vector.load %arg8[%c0_155, %c0_156] : memref<16x384xbf16, #tpu.memory_space<vmem>>, vector<16x256xbf16>
      tpu.vector_store %arg8[%c0_155, %c0_156], %150 {strides = array<i32>} : memref<16x384xbf16, #tpu.memory_space<vmem>>, vector<16x256xbf16>,
      tpu.wait_dma2 semaphore(%arg9 : memref<!tpu.dma_semaphore, #tpu.memory_space<semaphore_mem>>) src(%arg4 : memref<384x256xbf16, #tpu.memory_space<any>>) dst(%arg6 : memref<384x256xbf16, #tpu.memory_space<vmem>>)
    } else {
    }
    %c0 = arith.constant 0 : index
    %c0_1 = arith.constant 0 : index
    %c0_2 = arith.constant 0 : index
    %3 = vector.load %arg3[%c0, %c0_1, %c0_2] : memref<8x16x128xbf16, #tpu.memory_space<vmem>>, vector<1x16x128xbf16>
    %4 = vector.shape_cast %3 : vector<1x16x128xbf16> to vector<16x128xbf16>
    %c0_3 = arith.constant 0 : index
    %c256 = arith.constant 256 : index
    %5 = vector.load %arg8[%c0_3, %c256] : memref<16x384xbf16, #tpu.memory_space<vmem>>, vector<16x128xbf16>
    tpu.vector_store %arg8[%c0_3, %c256], %4 {strides = array<i32>} : memref<16x384xbf16, #tpu.memory_space<vmem>>, vector<16x128xbf16>,
    %c0_4 = arith.constant 0 : index
    %c0_5 = arith.constant 0 : index
    %6 = vector.load %arg8[%c0_4, %c0_5] : memref<16x384xbf16, #tpu.memory_space<vmem>>, vector<16x384xbf16>
    %c0_6 = arith.constant 0 : index
    %c0_7 = arith.constant 0 : index
    %7 = vector.load %arg6[%c0_6, %c0_7] : memref<384x256xbf16, #tpu.memory_space<vmem>>, vector<384x256xbf16>
    %cst = arith.constant dense<0.000000e+00> : vector<16x256xf32>
    %8 = tpu.matmul %6, %7, %cst {dimension_numbers = #tpu.dot_dimension_numbers<[1], [0], [0], [1], [0, 0, 1, 1], [], []>} : vector<16x384xbf16>, vector<384x256xbf16>, vector<16x256xf32> -> vector<16x256xf32>
    %c0_8 = arith.constant 0 : index
    %c0_9 = arith.constant 0 : index
    %9 = vector.load %arg7[%c0_8, %c0_9] : memref<16x256xf32, #tpu.memory_space<vmem>>, vector<16x256xf32>
    %10 = arith.subf %8, %9 : vector<16x256xf32>
    %cst_10 = arith.constant 0.333333343 : f32
    %11 = vector.broadcast %cst_10 : f32 to vector<16x256xf32>
    %12 = arith.mulf %11, %10 : vector<16x256xf32>
    %13 = arith.addf %9, %12 : vector<16x256xf32>
    %c0_11 = arith.constant 0 : index
    %c0_12 = arith.constant 0 : index
    %14 = vector.load %arg7[%c0_11, %c0_12] : memref<16x256xf32, #tpu.memory_space<vmem>>, vector<16x256xf32>
    tpu.vector_store %arg7[%c0_11, %c0_12], %13 {strides = array<i32>} : memref<16x256xf32, #tpu.memory_space<vmem>>, vector<16x256xf32>,
    %15 = math.tanh %13 : vector<16x256xf32>
    %16 = arith.truncf %15 : vector<16x256xf32> to vector<16x256xbf16>
    %c0_13 = arith.constant 0 : index
    %c0_14 = arith.constant 0 : index
    %17 = vector.load %arg8[%c0_13, %c0_14] : memref<16x384xbf16, #tpu.memory_space<vmem>>, vector<16x256xbf16>
    tpu.vector_store %arg8[%c0_13, %c0_14], %16 {strides = array<i32>} : memref<16x384xbf16, #tpu.memory_space<vmem>>, vector<16x256xbf16>,
    %c0_15 = arith.constant 0 : index
    %c0_16 = arith.constant 0 : index
    %c0_17 = arith.constant 0 : index
    %18 = vector.load %arg5[%c0_15, %c0_16, %c0_17] : memref<8x16x256xf32, #tpu.memory_space<vmem>>, vector<1x16x256xf32>
    %19 = vector.shape_cast %18 : vector<1x16x256xf32> to vector<16x256xf32>
    %20 = vector.shape_cast %13 : vector<16x256xf32> to vector<1x16x256xf32>
    tpu.vector_store %arg5[%c0_15, %c0_16, %c0_17], %20 {strides = array<i32>} : memref<8x16x256xf32, #tpu.memory_space<vmem>>, vector<1x16x256xf32>,
    %c1 = arith.constant 1 : index
    %c0_18 = arith.constant 0 : index
    %c0_19 = arith.constant 0 : index
    %21 = vector.load %arg3[%c1, %c0_18, %c0_19] : memref<8x16x128xbf16, #tpu.memory_space<vmem>>, vector<1x16x128xbf16>
    %22 = vector.shape_cast %21 : vector<1x16x128xbf16> to vector<16x128xbf16>
    %c0_20 = arith.constant 0 : index
    %c256_21 = arith.constant 256 : index
    %23 = vector.load %arg8[%c0_20, %c256_21] : memref<16x384xbf16, #tpu.memory_space<vmem>>, vector<16x128xbf16>
    tpu.vector_store %arg8[%c0_20, %c256_21], %22 {strides = array<i32>} : memref<16x384xbf16, #tpu.memory_space<vmem>>, vector<16x128xbf16>,
    %c0_22 = arith.constant 0 : index
    %c0_23 = arith.constant 0 : index
    %24 = vector.load %arg8[%c0_22, %c0_23] : memref<16x384xbf16, #tpu.memory_space<vmem>>, vector<16x384xbf16>
    %c0_24 = arith.constant 0 : index
    %c0_25 = arith.constant 0 : index
    %25 = vector.load %arg6[%c0_24, %c0_25] : memref<384x256xbf16, #tpu.memory_space<vmem>>, vector<384x256xbf16>
    %cst_26 = arith.constant dense<0.000000e+00> : vector<16x256xf32>
    %26 = tpu.matmul %24, %25, %cst_26 {dimension_numbers = #tpu.dot_dimension_numbers<[1], [0], [0], [1], [0, 0, 1, 1], [], []>} : vector<16x384xbf16>, vector<384x256xbf16>, vector<16x256xf32> -> vector<16x256xf32>
    %c0_27 = arith.constant 0 : index
    %c0_28 = arith.constant 0 : index
    %27 = vector.load %arg7[%c0_27, %c0_28] : memref<16x256xf32, #tpu.memory_space<vmem>>, vector<16x256xf32>
    %28 = arith.subf %26, %27 : vector<16x256xf32>
    %cst_29 = arith.constant 0.333333343 : f32
    %29 = vector.broadcast %cst_29 : f32 to vector<16x256xf32>
    %30 = arith.mulf %29, %28 : vector<16x256xf32>
    %31 = arith.addf %27, %30 : vector<16x256xf32>
    %c0_30 = arith.constant 0 : index
    %c0_31 = arith.constant 0 : index
    %32 = vector.load %arg7[%c0_30, %c0_31] : memref<16x256xf32, #tpu.memory_space<vmem>>, vector<16x256xf32>
    tpu.vector_store %arg7[%c0_30, %c0_31], %31 {strides = array<i32>} : memref<16x256xf32, #tpu.memory_space<vmem>>, vector<16x256xf32>,
    %33 = math.tanh %31 : vector<16x256xf32>
    %34 = arith.truncf %33 : vector<16x256xf32> to vector<16x256xbf16>
    %c0_32 = arith.constant 0 : index
    %c0_33 = arith.constant 0 : index
    %35 = vector.load %arg8[%c0_32, %c0_33] : memref<16x384xbf16, #tpu.memory_space<vmem>>, vector<16x256xbf16>
    tpu.vector_store %arg8[%c0_32, %c0_33], %34 {strides = array<i32>} : memref<16x384xbf16, #tpu.memory_space<vmem>>, vector<16x256xbf16>,
    %c1_34 = arith.constant 1 : index
    %c0_35 = arith.constant 0 : index
    %c0_36 = arith.constant 0 : index
    %36 = vector.load %arg5[%c1_34, %c0_35, %c0_36] : memref<8x16x256xf32, #tpu.memory_space<vmem>>, vector<1x16x256xf32>
    %37 = vector.shape_cast %36 : vector<1x16x256xf32> to vector<16x256xf32>
    %38 = vector.shape_cast %31 : vector<16x256xf32> to vector<1x16x256xf32>
    tpu.vector_store %arg5[%c1_34, %c0_35, %c0_36], %38 {strides = array<i32>} : memref<8x16x256xf32, #tpu.memory_space<vmem>>, vector<1x16x256xf32>,
    %c2 = arith.constant 2 : index
    %c0_37 = arith.constant 0 : index
    %c0_38 = arith.constant 0 : index
    %39 = vector.load %arg3[%c2, %c0_37, %c0_38] : memref<8x16x128xbf16, #tpu.memory_space<vmem>>, vector<1x16x128xbf16>
    %40 = vector.shape_cast %39 : vector<1x16x128xbf16> to vector<16x128xbf16>
    %c0_39 = arith.constant 0 : index
    %c256_40 = arith.constant 256 : index
    %41 = vector.load %arg8[%c0_39, %c256_40] : memref<16x384xbf16, #tpu.memory_space<vmem>>, vector<16x128xbf16>
    tpu.vector_store %arg8[%c0_39, %c256_40], %40 {strides = array<i32>} : memref<16x384xbf16, #tpu.memory_space<vmem>>, vector<16x128xbf16>,
    %c0_41 = arith.constant 0 : index
    %c0_42 = arith.constant 0 : index
    %42 = vector.load %arg8[%c0_41, %c0_42] : memref<16x384xbf16, #tpu.memory_space<vmem>>, vector<16x384xbf16>
    %c0_43 = arith.constant 0 : index
    %c0_44 = arith.constant 0 : index
    %43 = vector.load %arg6[%c0_43, %c0_44] : memref<384x256xbf16, #tpu.memory_space<vmem>>, vector<384x256xbf16>
    %cst_45 = arith.constant dense<0.000000e+00> : vector<16x256xf32>
    %44 = tpu.matmul %42, %43, %cst_45 {dimension_numbers = #tpu.dot_dimension_numbers<[1], [0], [0], [1], [0, 0, 1, 1], [], []>} : vector<16x384xbf16>, vector<384x256xbf16>, vector<16x256xf32> -> vector<16x256xf32>
    %c0_46 = arith.constant 0 : index
    %c0_47 = arith.constant 0 : index
    %45 = vector.load %arg7[%c0_46, %c0_47] : memref<16x256xf32, #tpu.memory_space<vmem>>, vector<16x256xf32>
    %46 = arith.subf %44, %45 : vector<16x256xf32>
    %cst_48 = arith.constant 0.333333343 : f32
    %47 = vector.broadcast %cst_48 : f32 to vector<16x256xf32>
    %48 = arith.mulf %47, %46 : vector<16x256xf32>
    %49 = arith.addf %45, %48 : vector<16x256xf32>
    %c0_49 = arith.constant 0 : index
    %c0_50 = arith.constant 0 : index
    %50 = vector.load %arg7[%c0_49, %c0_50] : memref<16x256xf32, #tpu.memory_space<vmem>>, vector<16x256xf32>
    tpu.vector_store %arg7[%c0_49, %c0_50], %49 {strides = array<i32>} : memref<16x256xf32, #tpu.memory_space<vmem>>, vector<16x256xf32>,
    %51 = math.tanh %49 : vector<16x256xf32>
    %52 = arith.truncf %51 : vector<16x256xf32> to vector<16x256xbf16>
    %c0_51 = arith.constant 0 : index
    %c0_52 = arith.constant 0 : index
    %53 = vector.load %arg8[%c0_51, %c0_52] : memref<16x384xbf16, #tpu.memory_space<vmem>>, vector<16x256xbf16>
    tpu.vector_store %arg8[%c0_51, %c0_52], %52 {strides = array<i32>} : memref<16x384xbf16, #tpu.memory_space<vmem>>, vector<16x256xbf16>,
    %c2_53 = arith.constant 2 : index
    %c0_54 = arith.constant 0 : index
    %c0_55 = arith.constant 0 : index
    %54 = vector.load %arg5[%c2_53, %c0_54, %c0_55] : memref<8x16x256xf32, #tpu.memory_space<vmem>>, vector<1x16x256xf32>
    %55 = vector.shape_cast %54 : vector<1x16x256xf32> to vector<16x256xf32>
    %56 = vector.shape_cast %49 : vector<16x256xf32> to vector<1x16x256xf32>
    tpu.vector_store %arg5[%c2_53, %c0_54, %c0_55], %56 {strides = array<i32>} : memref<8x16x256xf32, #tpu.memory_space<vmem>>, vector<1x16x256xf32>,
    %c3 = arith.constant 3 : index
    %c0_56 = arith.constant 0 : index
    %c0_57 = arith.constant 0 : index
    %57 = vector.load %arg3[%c3, %c0_56, %c0_57] : memref<8x16x128xbf16, #tpu.memory_space<vmem>>, vector<1x16x128xbf16>
    %58 = vector.shape_cast %57 : vector<1x16x128xbf16> to vector<16x128xbf16>
    %c0_58 = arith.constant 0 : index
    %c256_59 = arith.constant 256 : index
    %59 = vector.load %arg8[%c0_58, %c256_59] : memref<16x384xbf16, #tpu.memory_space<vmem>>, vector<16x128xbf16>
    tpu.vector_store %arg8[%c0_58, %c256_59], %58 {strides = array<i32>} : memref<16x384xbf16, #tpu.memory_space<vmem>>, vector<16x128xbf16>,
    %c0_60 = arith.constant 0 : index
    %c0_61 = arith.constant 0 : index
    %60 = vector.load %arg8[%c0_60, %c0_61] : memref<16x384xbf16, #tpu.memory_space<vmem>>, vector<16x384xbf16>
    %c0_62 = arith.constant 0 : index
    %c0_63 = arith.constant 0 : index
    %61 = vector.load %arg6[%c0_62, %c0_63] : memref<384x256xbf16, #tpu.memory_space<vmem>>, vector<384x256xbf16>
    %cst_64 = arith.constant dense<0.000000e+00> : vector<16x256xf32>
    %62 = tpu.matmul %60, %61, %cst_64 {dimension_numbers = #tpu.dot_dimension_numbers<[1], [0], [0], [1], [0, 0, 1, 1], [], []>} : vector<16x384xbf16>, vector<384x256xbf16>, vector<16x256xf32> -> vector<16x256xf32>
    %c0_65 = arith.constant 0 : index
    %c0_66 = arith.constant 0 : index
    %63 = vector.load %arg7[%c0_65, %c0_66] : memref<16x256xf32, #tpu.memory_space<vmem>>, vector<16x256xf32>
    %64 = arith.subf %62, %63 : vector<16x256xf32>
    %cst_67 = arith.constant 0.333333343 : f32
    %65 = vector.broadcast %cst_67 : f32 to vector<16x256xf32>
    %66 = arith.mulf %65, %64 : vector<16x256xf32>
    %67 = arith.addf %63, %66 : vector<16x256xf32>
    %c0_68 = arith.constant 0 : index
    %c0_69 = arith.constant 0 : index
    %68 = vector.load %arg7[%c0_68, %c0_69] : memref<16x256xf32, #tpu.memory_space<vmem>>, vector<16x256xf32>
    tpu.vector_store %arg7[%c0_68, %c0_69], %67 {strides = array<i32>} : memref<16x256xf32, #tpu.memory_space<vmem>>, vector<16x256xf32>,
    %69 = math.tanh %67 : vector<16x256xf32>
    %70 = arith.truncf %69 : vector<16x256xf32> to vector<16x256xbf16>
    %c0_70 = arith.constant 0 : index
    %c0_71 = arith.constant 0 : index
    %71 = vector.load %arg8[%c0_70, %c0_71] : memref<16x384xbf16, #tpu.memory_space<vmem>>, vector<16x256xbf16>
    tpu.vector_store %arg8[%c0_70, %c0_71], %70 {strides = array<i32>} : memref<16x384xbf16, #tpu.memory_space<vmem>>, vector<16x256xbf16>,
    %c3_72 = arith.constant 3 : index
    %c0_73 = arith.constant 0 : index
    %c0_74 = arith.constant 0 : index
    %72 = vector.load %arg5[%c3_72, %c0_73, %c0_74] : memref<8x16x256xf32, #tpu.memory_space<vmem>>, vector<1x16x256xf32>
    %73 = vector.shape_cast %72 : vector<1x16x256xf32> to vector<16x256xf32>
    %74 = vector.shape_cast %67 : vector<16x256xf32> to vector<1x16x256xf32>
    tpu.vector_store %arg5[%c3_72, %c0_73, %c0_74], %74 {strides = array<i32>} : memref<8x16x256xf32, #tpu.memory_space<vmem>>, vector<1x16x256xf32>,
    %c4 = arith.constant 4 : index
    %c0_75 = arith.constant 0 : index
    %c0_76 = arith.constant 0 : index
    %75 = vector.load %arg3[%c4, %c0_75, %c0_76] : memref<8x16x128xbf16, #tpu.memory_space<vmem>>, vector<1x16x128xbf16>
    %76 = vector.shape_cast %75 : vector<1x16x128xbf16> to vector<16x128xbf16>
    %c0_77 = arith.constant 0 : index
    %c256_78 = arith.constant 256 : index
    %77 = vector.load %arg8[%c0_77, %c256_78] : memref<16x384xbf16, #tpu.memory_space<vmem>>, vector<16x128xbf16>
    tpu.vector_store %arg8[%c0_77, %c256_78], %76 {strides = array<i32>} : memref<16x384xbf16, #tpu.memory_space<vmem>>, vector<16x128xbf16>,
    %c0_79 = arith.constant 0 : index
    %c0_80 = arith.constant 0 : index
    %78 = vector.load %arg8[%c0_79, %c0_80] : memref<16x384xbf16, #tpu.memory_space<vmem>>, vector<16x384xbf16>
    %c0_81 = arith.constant 0 : index
    %c0_82 = arith.constant 0 : index
    %79 = vector.load %arg6[%c0_81, %c0_82] : memref<384x256xbf16, #tpu.memory_space<vmem>>, vector<384x256xbf16>
    %cst_83 = arith.constant dense<0.000000e+00> : vector<16x256xf32>
    %80 = tpu.matmul %78, %79, %cst_83 {dimension_numbers = #tpu.dot_dimension_numbers<[1], [0], [0], [1], [0, 0, 1, 1], [], []>} : vector<16x384xbf16>, vector<384x256xbf16>, vector<16x256xf32> -> vector<16x256xf32>
    %c0_84 = arith.constant 0 : index
    %c0_85 = arith.constant 0 : index
    %81 = vector.load %arg7[%c0_84, %c0_85] : memref<16x256xf32, #tpu.memory_space<vmem>>, vector<16x256xf32>
    %82 = arith.subf %80, %81 : vector<16x256xf32>
    %cst_86 = arith.constant 0.333333343 : f32
    %83 = vector.broadcast %cst_86 : f32 to vector<16x256xf32>
    %84 = arith.mulf %83, %82 : vector<16x256xf32>
    %85 = arith.addf %81, %84 : vector<16x256xf32>
    %c0_87 = arith.constant 0 : index
    %c0_88 = arith.constant 0 : index
    %86 = vector.load %arg7[%c0_87, %c0_88] : memref<16x256xf32, #tpu.memory_space<vmem>>, vector<16x256xf32>
    tpu.vector_store %arg7[%c0_87, %c0_88], %85 {strides = array<i32>} : memref<16x256xf32, #tpu.memory_space<vmem>>, vector<16x256xf32>,
    %87 = math.tanh %85 : vector<16x256xf32>
    %88 = arith.truncf %87 : vector<16x256xf32> to vector<16x256xbf16>
    %c0_89 = arith.constant 0 : index
    %c0_90 = arith.constant 0 : index
    %89 = vector.load %arg8[%c0_89, %c0_90] : memref<16x384xbf16, #tpu.memory_space<vmem>>, vector<16x256xbf16>
    tpu.vector_store %arg8[%c0_89, %c0_90], %88 {strides = array<i32>} : memref<16x384xbf16, #tpu.memory_space<vmem>>, vector<16x256xbf16>,
    %c4_91 = arith.constant 4 : index
    %c0_92 = arith.constant 0 : index
    %c0_93 = arith.constant 0 : index
    %90 = vector.load %arg5[%c4_91, %c0_92, %c0_93] : memref<8x16x256xf32, #tpu.memory_space<vmem>>, vector<1x16x256xf32>
    %91 = vector.shape_cast %90 : vector<1x16x256xf32> to vector<16x256xf32>
    %92 = vector.shape_cast %85 : vector<16x256xf32> to vector<1x16x256xf32>
    tpu.vector_store %arg5[%c4_91, %c0_92, %c0_93], %92 {strides = array<i32>} : memref<8x16x256xf32, #tpu.memory_space<vmem>>, vector<1x16x256xf32>,
    %c5 = arith.constant 5 : index
    %c0_94 = arith.constant 0 : index
    %c0_95 = arith.constant 0 : index
    %93 = vector.load %arg3[%c5, %c0_94, %c0_95] : memref<8x16x128xbf16, #tpu.memory_space<vmem>>, vector<1x16x128xbf16>
    %94 = vector.shape_cast %93 : vector<1x16x128xbf16> to vector<16x128xbf16>
    %c0_96 = arith.constant 0 : index
    %c256_97 = arith.constant 256 : index
    %95 = vector.load %arg8[%c0_96, %c256_97] : memref<16x384xbf16, #tpu.memory_space<vmem>>, vector<16x128xbf16>
    tpu.vector_store %arg8[%c0_96, %c256_97], %94 {strides = array<i32>} : memref<16x384xbf16, #tpu.memory_space<vmem>>, vector<16x128xbf16>,
    %c0_98 = arith.constant 0 : index
    %c0_99 = arith.constant 0 : index
    %96 = vector.load %arg8[%c0_98, %c0_99] : memref<16x384xbf16, #tpu.memory_space<vmem>>, vector<16x384xbf16>
    %c0_100 = arith.constant 0 : index
    %c0_101 = arith.constant 0 : index
    %97 = vector.load %arg6[%c0_100, %c0_101] : memref<384x256xbf16, #tpu.memory_space<vmem>>, vector<384x256xbf16>
    %cst_102 = arith.constant dense<0.000000e+00> : vector<16x256xf32>
    %98 = tpu.matmul %96, %97, %cst_102 {dimension_numbers = #tpu.dot_dimension_numbers<[1], [0], [0], [1], [0, 0, 1, 1], [], []>} : vector<16x384xbf16>, vector<384x256xbf16>, vector<16x256xf32> -> vector<16x256xf32>
    %c0_103 = arith.constant 0 : index
    %c0_104 = arith.constant 0 : index
    %99 = vector.load %arg7[%c0_103, %c0_104] : memref<16x256xf32, #tpu.memory_space<vmem>>, vector<16x256xf32>
    %100 = arith.subf %98, %99 : vector<16x256xf32>
    %cst_105 = arith.constant 0.333333343 : f32
    %101 = vector.broadcast %cst_105 : f32 to vector<16x256xf32>
    %102 = arith.mulf %101, %100 : vector<16x256xf32>
    %103 = arith.addf %99, %102 : vector<16x256xf32>
    %c0_106 = arith.constant 0 : index
    %c0_107 = arith.constant 0 : index
    %104 = vector.load %arg7[%c0_106, %c0_107] : memref<16x256xf32, #tpu.memory_space<vmem>>, vector<16x256xf32>
    tpu.vector_store %arg7[%c0_106, %c0_107], %103 {strides = array<i32>} : memref<16x256xf32, #tpu.memory_space<vmem>>, vector<16x256xf32>,
    %105 = math.tanh %103 : vector<16x256xf32>
    %106 = arith.truncf %105 : vector<16x256xf32> to vector<16x256xbf16>
    %c0_108 = arith.constant 0 : index
    %c0_109 = arith.constant 0 : index
    %107 = vector.load %arg8[%c0_108, %c0_109] : memref<16x384xbf16, #tpu.memory_space<vmem>>, vector<16x256xbf16>
    tpu.vector_store %arg8[%c0_108, %c0_109], %106 {strides = array<i32>} : memref<16x384xbf16, #tpu.memory_space<vmem>>, vector<16x256xbf16>,
    %c5_110 = arith.constant 5 : index
    %c0_111 = arith.constant 0 : index
    %c0_112 = arith.constant 0 : index
    %108 = vector.load %arg5[%c5_110, %c0_111, %c0_112] : memref<8x16x256xf32, #tpu.memory_space<vmem>>, vector<1x16x256xf32>
    %109 = vector.shape_cast %108 : vector<1x16x256xf32> to vector<16x256xf32>
    %110 = vector.shape_cast %103 : vector<16x256xf32> to vector<1x16x256xf32>
    tpu.vector_store %arg5[%c5_110, %c0_111, %c0_112], %110 {strides = array<i32>} : memref<8x16x256xf32, #tpu.memory_space<vmem>>, vector<1x16x256xf32>,
    %c6 = arith.constant 6 : index
    %c0_113 = arith.constant 0 : index
    %c0_114 = arith.constant 0 : index
    %111 = vector.load %arg3[%c6, %c0_113, %c0_114] : memref<8x16x128xbf16, #tpu.memory_space<vmem>>, vector<1x16x128xbf16>
    %112 = vector.shape_cast %111 : vector<1x16x128xbf16> to vector<16x128xbf16>
    %c0_115 = arith.constant 0 : index
    %c256_116 = arith.constant 256 : index
    %113 = vector.load %arg8[%c0_115, %c256_116] : memref<16x384xbf16, #tpu.memory_space<vmem>>, vector<16x128xbf16>
    tpu.vector_store %arg8[%c0_115, %c256_116], %112 {strides = array<i32>} : memref<16x384xbf16, #tpu.memory_space<vmem>>, vector<16x128xbf16>,
    %c0_117 = arith.constant 0 : index
    %c0_118 = arith.constant 0 : index
    %114 = vector.load %arg8[%c0_117, %c0_118] : memref<16x384xbf16, #tpu.memory_space<vmem>>, vector<16x384xbf16>
    %c0_119 = arith.constant 0 : index
    %c0_120 = arith.constant 0 : index
    %115 = vector.load %arg6[%c0_119, %c0_120] : memref<384x256xbf16, #tpu.memory_space<vmem>>, vector<384x256xbf16>
    %cst_121 = arith.constant dense<0.000000e+00> : vector<16x256xf32>
    %116 = tpu.matmul %114, %115, %cst_121 {dimension_numbers = #tpu.dot_dimension_numbers<[1], [0], [0], [1], [0, 0, 1, 1], [], []>} : vector<16x384xbf16>, vector<384x256xbf16>, vector<16x256xf32> -> vector<16x256xf32>
    %c0_122 = arith.constant 0 : index
    %c0_123 = arith.constant 0 : index
    %117 = vector.load %arg7[%c0_122, %c0_123] : memref<16x256xf32, #tpu.memory_space<vmem>>, vector<16x256xf32>
    %118 = arith.subf %116, %117 : vector<16x256xf32>
    %cst_124 = arith.constant 0.333333343 : f32
    %119 = vector.broadcast %cst_124 : f32 to vector<16x256xf32>
    %120 = arith.mulf %119, %118 : vector<16x256xf32>
    %121 = arith.addf %117, %120 : vector<16x256xf32>
    %c0_125 = arith.constant 0 : index
    %c0_126 = arith.constant 0 : index
    %122 = vector.load %arg7[%c0_125, %c0_126] : memref<16x256xf32, #tpu.memory_space<vmem>>, vector<16x256xf32>
    tpu.vector_store %arg7[%c0_125, %c0_126], %121 {strides = array<i32>} : memref<16x256xf32, #tpu.memory_space<vmem>>, vector<16x256xf32>,
    %123 = math.tanh %121 : vector<16x256xf32>
    %124 = arith.truncf %123 : vector<16x256xf32> to vector<16x256xbf16>
    %c0_127 = arith.constant 0 : index
    %c0_128 = arith.constant 0 : index
    %125 = vector.load %arg8[%c0_127, %c0_128] : memref<16x384xbf16, #tpu.memory_space<vmem>>, vector<16x256xbf16>
    tpu.vector_store %arg8[%c0_127, %c0_128], %124 {strides = array<i32>} : memref<16x384xbf16, #tpu.memory_space<vmem>>, vector<16x256xbf16>,
    %c6_129 = arith.constant 6 : index
    %c0_130 = arith.constant 0 : index
    %c0_131 = arith.constant 0 : index
    %126 = vector.load %arg5[%c6_129, %c0_130, %c0_131] : memref<8x16x256xf32, #tpu.memory_space<vmem>>, vector<1x16x256xf32>
    %127 = vector.shape_cast %126 : vector<1x16x256xf32> to vector<16x256xf32>
    %128 = vector.shape_cast %121 : vector<16x256xf32> to vector<1x16x256xf32>
    tpu.vector_store %arg5[%c6_129, %c0_130, %c0_131], %128 {strides = array<i32>} : memref<8x16x256xf32, #tpu.memory_space<vmem>>, vector<1x16x256xf32>,
    %c7 = arith.constant 7 : index
    %c0_132 = arith.constant 0 : index
    %c0_133 = arith.constant 0 : index
    %129 = vector.load %arg3[%c7, %c0_132, %c0_133] : memref<8x16x128xbf16, #tpu.memory_space<vmem>>, vector<1x16x128xbf16>
    %130 = vector.shape_cast %129 : vector<1x16x128xbf16> to vector<16x128xbf16>
    %c0_134 = arith.constant 0 : index
    %c256_135 = arith.constant 256 : index
    %131 = vector.load %arg8[%c0_134, %c256_135] : memref<16x384xbf16, #tpu.memory_space<vmem>>, vector<16x128xbf16>
    tpu.vector_store %arg8[%c0_134, %c256_135], %130 {strides = array<i32>} : memref<16x384xbf16, #tpu.memory_space<vmem>>, vector<16x128xbf16>,
    %c0_136 = arith.constant 0 : index
    %c0_137 = arith.constant 0 : index
    %132 = vector.load %arg8[%c0_136, %c0_137] : memref<16x384xbf16, #tpu.memory_space<vmem>>, vector<16x384xbf16>
    %c0_138 = arith.constant 0 : index
    %c0_139 = arith.constant 0 : index
    %133 = vector.load %arg6[%c0_138, %c0_139] : memref<384x256xbf16, #tpu.memory_space<vmem>>, vector<384x256xbf16>
    %cst_140 = arith.constant dense<0.000000e+00> : vector<16x256xf32>
    %134 = tpu.matmul %132, %133, %cst_140 {dimension_numbers = #tpu.dot_dimension_numbers<[1], [0], [0], [1], [0, 0, 1, 1], [], []>} : vector<16x384xbf16>, vector<384x256xbf16>, vector<16x256xf32> -> vector<16x256xf32>
    %c0_141 = arith.constant 0 : index
    %c0_142 = arith.constant 0 : index
    %135 = vector.load %arg7[%c0_141, %c0_142] : memref<16x256xf32, #tpu.memory_space<vmem>>, vector<16x256xf32>
    %136 = arith.subf %134, %135 : vector<16x256xf32>
    %cst_143 = arith.constant 0.333333343 : f32
    %137 = vector.broadcast %cst_143 : f32 to vector<16x256xf32>
    %138 = arith.mulf %137, %136 : vector<16x256xf32>
    %139 = arith.addf %135, %138 : vector<16x256xf32>
    %c0_144 = arith.constant 0 : index
    %c0_145 = arith.constant 0 : index
    %140 = vector.load %arg7[%c0_144, %c0_145] : memref<16x256xf32, #tpu.memory_space<vmem>>, vector<16x256xf32>
    tpu.vector_store %arg7[%c0_144, %c0_145], %139 {strides = array<i32>} : memref<16x256xf32, #tpu.memory_space<vmem>>, vector<16x256xf32>,
    %141 = math.tanh %139 : vector<16x256xf32>
    %142 = arith.truncf %141 : vector<16x256xf32> to vector<16x256xbf16>
    %c0_146 = arith.constant 0 : index
    %c0_147 = arith.constant 0 : index
    %143 = vector.load %arg8[%c0_146, %c0_147] : memref<16x384xbf16, #tpu.memory_space<vmem>>, vector<16x256xbf16>
    tpu.vector_store %arg8[%c0_146, %c0_147], %142 {strides = array<i32>} : memref<16x384xbf16, #tpu.memory_space<vmem>>, vector<16x256xbf16>,
    %c7_148 = arith.constant 7 : index
    %c0_149 = arith.constant 0 : index
    %c0_150 = arith.constant 0 : index
    %144 = vector.load %arg5[%c7_148, %c0_149, %c0_150] : memref<8x16x256xf32, #tpu.memory_space<vmem>>, vector<1x16x256xf32>
    %145 = vector.shape_cast %144 : vector<1x16x256xf32> to vector<16x256xf32>
    %146 = vector.shape_cast %139 : vector<16x256xf32> to vector<1x16x256xf32>
    tpu.vector_store %arg5[%c7_148, %c0_149, %c0_150], %146 {strides = array<i32>} : memref<8x16x256xf32, #tpu.memory_space<vmem>>, vector<1x16x256xf32>,
    return
  }
  func.func @transform_0(%arg0: i32, %arg1: i32) -> (i32, i32) {
    %c0_i32 = arith.constant 0 : i32
    %c0_i32_0 = arith.constant 0 : i32
    return %arg0, %c0_i32 : i32, i32
  }
  func.func @transform_1(%arg0: i32, %arg1: i32) -> (i32, i32, i32) {
    %c0_i32 = arith.constant 0 : i32
    %c0_i32_0 = arith.constant 0 : i32
    return %arg1, %arg0, %c0_i32 : i32, i32, i32
  }
  func.func @transform_3(%arg0: i32, %arg1: i32) -> (i32, i32, i32) {
    %c0_i32 = arith.constant 0 : i32
    %c0_i32_0 = arith.constant 0 : i32
    return %arg1, %arg0, %c0_i32 : i32, i32, i32
  }
}

</mosaic_0001>

<bundles_post_ra>
// kernel: tpu_custom_call.1
= control target key start
LH: loop header
LB: loop body
LE: loop exit
PB: predicated region body
PF: predicated region fallthrough
CT: control target
= control target key end

     0   :  { %s6673_s0 = inlined_call_operand.hbm [shape: f32[16,256], index: 0, kind: input, shape index: {}]   ;;  %s6674_s1 = inlined_call_operand.hbm [shape: bf16[16,16,128], index: 1, kind: input, shape index: {}]   ;;  %s6675_s2 = inlined_call_operand.hbm [shape: bf16[384,256], index: 2, kind: input, shape index: {}]   ;;  %s6676_s3 = inlined_call_operand.hbm [shape: f32[16,16,256], index: 3, kind: output, shape index: {}]  }
   0x1   :  { %6677 = sst [smem:[#allocation20_spill]] %s6673_s0 }
   0x2   :  { %8 = vsyncpa [#allocation7], 0 }
   0x3   :  { %9 = vsyncpa [#allocation10], 0 }
   0x4   :  { %11 = vsyncpa [#allocation10 + $0x1], 0 }
   0x5   :  { %12 = vsyncpa [#allocation8], 0 }
   0x6   :  { %14 = vsyncpa [#allocation8 + $0x1], 0  ;;  %s6278_s12 = smov 0   ;;  %s6280_s13 = smov 0  }
   0x7   :  { %s6282_s14 = smov 0   ;;  %s6284_s15 = smov 0  }
   0x8   :  { %s6286_s16 = smov 0   ;;  %s6288_s17 = smov 0  }
   0x9 LB: > { %s3817_s18 = sadd.s32 4294967295, %s6248_s17   ;;  %s3818_s19 = sadd.s32 4294967294, %s6248_s17   ;;  %s6248_s17 = sphi %s6288_s17, %s20_s17   ;;  %s6244_s16 = sphi %s6286_s16, %s6690_s16   ;;  %s6240_s15 = sphi %s6284_s15, %s6689_s15   ;;  %s6236_s14 = sphi %s6282_s14, %s6688_s14   ;;  %s6232_s13 = sphi %s6280_s13, %s6687_s13   ;;  %s6228_s12 = sphi %s6278_s12, %s6686_s12  }
   0xa   : > { %p80_p0 = scmp.ne.s32.totalorder %s6232_s13, %s6228_s12  ;;  %p6312_p1 = scmp.eq.s32.totalorder %s3817_s18, 0 }
   0xb   : > { %p6316_p2 = scmp.eq.s32.totalorder %s3817_s18, 1  ;;  %p112_p3 = scmp.eq.s32.totalorder %s3818_s19, 1 }
   0xc   : > { %p6322_p4 = por %p6312_p1, %p80_p0  ;;  %p3819_p5 = scmp.ge.s32.totalorder %s6248_s17, 1 }
   0xd   : > { %p6327_p6 = por %p112_p3, %p80_p0  ;;  %p119_p7 = scmp.lt.s32.totalorder %s6248_s17, 3 }
   0xe   : > { %s6682_s0 = sld [smem:[#allocation20_spill]]  ;;  %s6250_s28 = smov [#allocation6]  }
   0xf   : > { %p6335_p8 = pnand %p3819_p5, %p119_p7  ;;  %s136_s29 = sshll.u32 %s6250_s28, 4  ;;  %s137_s29 = int_to_ptr.vmem [resolvable:$true] %s136_s29 }
  0x10   : > { %p3821_p11 = scmp.ge.s32.totalorder %s6248_s17, 2  ;;  %s6251_s30 = smov 256  }
  0x11   : > { %p5932_p9 = pneg %p6335_p8  ;;  %s6252_s4 = smov 16  }
  0x12   : > { %s29_s5 = sadd.s32 1, %s6244_s16  ;;  %s67_s6 = sadd.s32 1, %s6236_s14 }
  0x13   : > { %p5933_p10 = pnand %p5932_p9, %p6312_p1  ;;  %p30_p12 = scmp.ge.s32.totalorder %s29_s5, 2 }
  0x14   : > { %s134_s26 = sshll.u32 %s6682_s0, 4  ;;  %p74_p13 = scmp.ne.s32.totalorder %s6236_s14, %s6232_s13  ;;  %s135_s26 = int_to_ptr.hbm [resolvable:$true] %s134_s26 }
  0x15   : > { %5935 = dma.hbm_to_vmem [thread:$0]  (!%p5933_p10), %s135_s26, 512, %s137_s29, [#allocation7], %s6251_s30, %s6251_s30, %s6252_s4  }
  0x16   : > { %p75_p0 = scmp.eq.s32.totalorder %s6248_s17, 0  ;;  %s6692_s5 = smov (%p30_p12, %s29_s5), 0 }
  0x17   : > { %p6357_p5 = por %p6316_p2, %p74_p13  ;;  %s62_s9 = ssub.s32 %s6244_s16, %s6692_s5 }
  0x18   : > { %p6351_p3 = por %p75_p0, %p74_p13  ;;  %p5945_p7 = scmp.lt.s32.totalorder %s6248_s17, 2 }
  0x19   : > { %p65_p9 = scmp.eq.s32.totalorder %s62_s9, 0  ;;  %s150_s10 = sand.u32 1, %s6236_s14  }
  0x1a   : > { %s3822_s11 = sshll.u32 %s150_s10, 6  ;;  %s5513_s19 = sshll.u32 %s6244_s16, 6 }
  0x1b   : > { %s6366_s18 = scalar_select %p65_p9, %s6236_s14, %s67_s6  }
  0x1c   : > { %s162_s26 = scalar_lea.hbm %s6674_s1, %s5513_s19  ;;  %s154_s28 = scalar_lea.vmem [#allocation9], %s3822_s11 }
  0x1d   : > { %s165_s29 = sshll.u32 %s154_s28, 4  ;;  %s163_s21 = sshll.u32 %s162_s26, 4  ;;  %s166_s29 = int_to_ptr.vmem [resolvable:$true] %s165_s29  ;;  %s164_s21 = int_to_ptr.hbm [resolvable:$true] %s163_s21 }
  0x1e   : > { %p5937_p2 = pnand %p5945_p7, %p6351_p3  ;;  %s151_s30 = scalar_lea.sflag [#allocation10], %s150_s10 }
  0x1f   : > { %s6253_s4 = smov 64   ;;  %s6254_s0 = smov 4  }
  0x20   : > { %5939 = dma.hbm_to_vmem [thread:$0]  (!%p5937_p2), %s164_s21, 1024, %s166_s29, %s151_s30, %s6253_s4, %s6253_s4, %s6254_s0  }
  0x21   : > { %177 = sbr.rel (%p6335_p8) target bundleno = 1563 (0x61b), region = 28 }
  0x26   : > { %6213 = dma.done.wait (%p6312_p1), [#allocation7], 512  }
  0x27   : > { %6215 = vsyncadd (%p6312_p1), [#allocation7], 4294966784  ;;  %s6381_s6 = sand.u32 1, %s6232_s13  }
  0x28   : > { %s3828_s7 = sshll.u32 %s6381_s6, 6  ;;  %s185_s9 = scalar_lea.sflag [#allocation10], %s6381_s6 }
  0x29   : > { %s6385_s10 = scalar_lea.vmem [#allocation9], %s3828_s7 }
  0x2a   : > { %6217 = dma.done.wait (%p6322_p4), %s185_s9, 1024  }
  0x2b   : > { %6219 = vsyncadd (%p6322_p4), %s185_s9, 4294966272  ;;  %s3829_s0 = sshll.u32 %s6381_s6, 8  ;;  %p3830_p1 = scmp.ne.s32.totalorder %s6240_s15, 0 }
  0x2c   : > { %s6392_s27 = scalar_lea.vmem [#allocation11], %s3829_s0  ;;  %s226_s19 = sshll.u32 (!%p3830_p1), %s6675_s2, 4  ;;  %s227_s19 = int_to_ptr.hbm [resolvable:$true] %s226_s19 }
  0x2d   : > { %218 = sbr.rel (%p3830_p1) target bundleno = 66 (0x42), region = 40  ;;  %s6255_s24 = smov (!%p3830_p1), [#allocation2]  }
  0x2e   : > { %s228_s25 = sshll.u32 (!%p3830_p1), %s6255_s24, 4  ;;  %s229_s25 = int_to_ptr.vmem [resolvable:$true] %s228_s25 }
  0x2f   : > { %231 = dma.hbm_to_vmem [thread:$0]  (!%p3830_p1), %s227_s19, 6144, %s229_s25, [#allocation5] }
  0x32   : > { %v232_v0 = vld [vmem:[#allocation6] sm:$0xff]  ;;  %v233_v1 = vld [vmem:[#allocation6 + $0x8] sm:$0xff]  ;;  %v234_v2 = vld [vmem:[#allocation6 + $0x10] sm:$0xff] }
  0x33   : > { %236 = vst [vmem:[#allocation3 + $0x10] sm:$0xff] %v232_v0  ;;  %6004 = vtanh.f32 %v232_v0  ;;  %v235_v3 = vld [vmem:[#allocation6 + $0x18] sm:$0xff] }
  0x34   : > { %237 = vst [vmem:[#allocation3] sm:$0xff] %v233_v1  ;;  %6006 = vtanh.f32 %v233_v1 }
  0x35   : > { %238 = vst [vmem:[#allocation3 + $0x18] sm:$0xff] %v234_v2  ;;  %6008 = vtanh.f32 %v234_v2 }
  0x36   : > { %239 = vst [vmem:[#allocation3 + $0x8] sm:$0xff] %v235_v3  ;;  %6010 = vtanh.f32 %v235_v3 }
  0x39   : > { %v6005_v4 = vpop.eup %6004 }
  0x3a   : > { %v6007_v5 = vpop.eup %6006 }
  0x3b   : > { %v6009_v6 = vpop.eup %6008  ;;  %v244_v7 = vpack.c.bf16 %v6007_v5, %v6005_v4 }
  0x3c   : > { %v6011_v8 = vpop.eup %6010 }
  0x3d   : > { %246 = vst [vmem:[#allocation4] sm:$0xff] %v244_v7  ;;  %v245_v9 = vpack.c.bf16 %v6011_v8, %v6009_v6 }
  0x3f   : > { %247 = vst [vmem:[#allocation4 + $0xc] sm:$0xff] %v245_v9 }
  0x40   : > { %6220 = dma.done.wait [#allocation5], 6144 }
  0x41   : > { %6221 = vsyncadd [#allocation5], 4294961152 }
  0x42 PF: > { %v3901_v10 = vld [vmem:[#allocation2 + $0x70] sm:$0xf]  ;;  %v5532_v11 = vld [vmem:[#allocation2 + $0x74] sm:$0xf0]  ;;  %v3893_v19 = vld [vmem:[#allocation2 + $0x60] sm:$0xf] }
  0x43   : > { %v3965_v12 = vld [vmem:[#allocation2 + $0xf0] sm:$0xf]  ;;  %v3902_v13 = vor.u32 %v5532_v11, %v3901_v10  ;;  %v5548_v14 = vld [vmem:[#allocation2 + $0xf4] sm:$0xf0]  ;;  %v5530_v20 = vld [vmem:[#allocation2 + $0x64] sm:$0xf0] }
  0x44   : > { %v4029_v15 = vld [vmem:[#allocation2 + $0x170] sm:$0xf]  ;;  %v5564_v16 = vld [vmem:[#allocation2 + $0x174] sm:$0xf0]  ;;  %v3966_v17 = vor.u32 %v5548_v14, %v3965_v12  ;;  %v3957_v21 = vld [vmem:[#allocation2 + $0xe0] sm:$0xf]  ;;  %v3894_v22 = vor.u32 %v5530_v20, %v3893_v19 }
  0x45   : > { %v4030_v18 = vor.u32 %v5564_v16, %v4029_v15  ;;  %564 = vmatpush.bf16.msra.mxu0 %v3902_v13  ;;  %v5546_v23 = vld [vmem:[#allocation2 + $0xe4] sm:$0xf0]  ;;  %v4021_v24 = vld [vmem:[#allocation2 + $0x160] sm:$0xf]  ;;  %v3885_v28 = vld [vmem:[#allocation2 + $0x50] sm:$0xf] }
  0x46   : > { %v5562_v25 = vld [vmem:[#allocation2 + $0x164] sm:$0xf0]  ;;  %578 = vmatpush.bf16.msra.mxu1 %v3966_v17  ;;  %v3958_v26 = vor.u32 %v5546_v23, %v3957_v21  ;;  %v5528_v29 = vld [vmem:[#allocation2 + $0x54] sm:$0xf0]  ;;  %v3949_v30 = vld [vmem:[#allocation2 + $0xd0] sm:$0xf] }
  0x47   : > { %592 = vmatpush.bf16.msra.mxu2 %v4030_v18  ;;  %v4022_v27 = vor.u32 %v5562_v25, %v4021_v24  ;;  %v5544_v31 = vld [vmem:[#allocation2 + $0xd4] sm:$0xf0]  ;;  %v4013_v32 = vld [vmem:[#allocation2 + $0x150] sm:$0xf]  ;;  %v3886_v34 = vor.u32 %v5528_v29, %v3885_v28  ;;  %v3877_v35 = vld [vmem:[#allocation2 + $0x40] sm:$0xf] }
  0x48   : > { %v5560_v33 = vld [vmem:[#allocation2 + $0x154] sm:$0xf0]  ;;  %v5526_v36 = vld [vmem:[#allocation2 + $0x44] sm:$0xf0]  ;;  %v3950_v37 = vor.u32 %v5544_v31, %v3949_v30  ;;  %v3941_v39 = vld [vmem:[#allocation2 + $0xc0] sm:$0xf] }
  0x49   : > { %565 = vmatpush.bf16.msra.mxu0 %v3894_v22  ;;  %v4014_v38 = vor.u32 %v5560_v33, %v4013_v32  ;;  %v5531_v40 = vld [vmem:[#allocation2 + $0x74] sm:$0xf]  ;;  %v3903_v41 = vld [vmem:[#allocation2 + $0x78] sm:$0xf0]  ;;  %v5542_v42 = vld [vmem:[#allocation2 + $0xc4] sm:$0xf0]  ;;  %v3878_v47 = vor.u32 %v5526_v36, %v3877_v35 }
  0x4a   : > { %579 = vmatpush.bf16.msra.mxu1 %v3958_v26  ;;  %v4005_v43 = vld [vmem:[#allocation2 + $0x140] sm:$0xf]  ;;  %v5558_v44 = vld [vmem:[#allocation2 + $0x144] sm:$0xf0]  ;;  %v3906_v45 = vor.u32 %v5531_v40, %v3903_v41  ;;  %v5529_v46 = vld [vmem:[#allocation2 + $0x64] sm:$0xf]  ;;  %v3942_v51 = vor.u32 %v5542_v42, %v3941_v39 }
  0x4b   : > { %593 = vmatpush.bf16.msra.mxu2 %v4022_v27  ;;  %v3869_v48 = vld [vmem:[#allocation2 + $0x30] sm:$0xf]  ;;  %v5524_v49 = vld [vmem:[#allocation2 + $0x34] sm:$0xf0]  ;;  %v3895_v50 = vld [vmem:[#allocation2 + $0x68] sm:$0xf0]  ;;  %v4006_v52 = vor.u32 %v5558_v44, %v4005_v43 }
  0x4c   : > { %606 = vmatpush.bf16.msra.mxu3 %v3906_v45  ;;  %v3933_v53 = vld [vmem:[#allocation2 + $0xb0] sm:$0xf]  ;;  %v5540_v54 = vld [vmem:[#allocation2 + $0xb4] sm:$0xf0]  ;;  %v3898_v56 = vor.u32 %v5529_v46, %v3895_v50  ;;  %v5527_v58 = vld [vmem:[#allocation2 + $0x54] sm:$0xf]  ;;  %v3870_v60 = vor.u32 %v5524_v49, %v3869_v48 }
  0x4d   : > { %566 = vmatpush.bf16.msra.mxu0 %v3886_v34  ;;  %v3997_v55 = vld [vmem:[#allocation2 + $0x130] sm:$0xf]  ;;  %v5556_v57 = vld [vmem:[#allocation2 + $0x134] sm:$0xf0]  ;;  %v3887_v59 = vld [vmem:[#allocation2 + $0x58] sm:$0xf0]  ;;  %v3934_v0 = vor.u32 %v5540_v54, %v3933_v53 }
  0x4e   : > { %580 = vmatpush.bf16.msra.mxu1 %v3950_v37  ;;  %v3861_v61 = vld [vmem:[#allocation2 + $0x20] sm:$0xf]  ;;  %v5522_v62 = vld [vmem:[#allocation2 + $0x24] sm:$0xf0]  ;;  %v3890_v63 = vor.u32 %v5527_v58, %v3887_v59  ;;  %v3998_v1 = vor.u32 %v5556_v57, %v3997_v55  ;;  %v5525_v3 = vld [vmem:[#allocation2 + $0x44] sm:$0xf] }
  0x4f   : > { %594 = vmatpush.bf16.msra.mxu2 %v4014_v38  ;;  %v3925_v2 = vld [vmem:[#allocation2 + $0xa0] sm:$0xf]  ;;  %v3879_v4 = vld [vmem:[#allocation2 + $0x48] sm:$0xf0]  ;;  %v5538_v5 = vld [vmem:[#allocation2 + $0xa4] sm:$0xf0]  ;;  %v3862_v10 = vor.u32 %v5522_v62, %v3861_v61 }
  0x50   : > { %607 = vmatpush.bf16.msra.mxu3 %v3898_v56  ;;  %v3989_v6 = vld [vmem:[#allocation2 + $0x120] sm:$0xf]  ;;  %v5554_v7 = vld [vmem:[#allocation2 + $0x124] sm:$0xf0]  ;;  %v3853_v8 = vld [vmem:[#allocation2 + $0x10] sm:$0xf]  ;;  %v3882_v14 = vor.u32 %v5525_v3, %v3879_v4  ;;  %v3926_v15 = vor.u32 %v5538_v5, %v3925_v2 }
  0x51   : > { %567 = vmatpush.bf16.msra.mxu0 %v3878_v47  ;;  %v5520_v9 = vld [vmem:[#allocation2 + $0x14] sm:$0xf0]  ;;  %v3917_v11 = vld [vmem:[#allocation2 + $0x90] sm:$0xf]  ;;  %v3990_v16 = vor.u32 %v5554_v7, %v3989_v6  ;;  %v5523_v17 = vld [vmem:[#allocation2 + $0x34] sm:$0xf] }
  0x52   : > { %581 = vmatpush.bf16.msra.mxu1 %v3942_v51  ;;  %v5536_v12 = vld [vmem:[#allocation2 + $0x94] sm:$0xf0]  ;;  %v3981_v13 = vld [vmem:[#allocation2 + $0x110] sm:$0xf]  ;;  %v3871_v18 = vld [vmem:[#allocation2 + $0x38] sm:$0xf0]  ;;  %v3854_v24 = vor.u32 %v5520_v9, %v3853_v8 }
  0x53   : > { %595 = vmatpush.bf16.msra.mxu2 %v4006_v52  ;;  %v252_v19 = vld [vmem:[%s6385_s10] sm:$0xf]  ;;  %v253_v21 = vld [vmem:[%s6385_s10 + $0x4] sm:$0xf]  ;;  %v3845_v22 = vld [vmem:[#allocation2] sm:$0xf]  ;;  %v3874_v28 = vor.u32 %v5523_v17, %v3871_v18  ;;  %v3918_v29 = vor.u32 %v5536_v12, %v3917_v11 }
  0x54   : > { %608 = vmatpush.bf16.msra.mxu3 %v3890_v63  ;;  %v5552_v20 = vld [vmem:[#allocation2 + $0x114] sm:$0xf0]  ;;  %254 = vst [vmem:[#allocation4 + $0x8] sm:$0xf] %v252_v19  ;;  %v5518_v23 = vld [vmem:[#allocation2 + $0x4] sm:$0xf0] }
  0x55   : > { %568 = vmatpush.bf16.msra.mxu0 %v3870_v60  ;;  %255 = vst [vmem:[#allocation4 + $0x14] sm:$0xf] %v253_v21  ;;  %v3909_v25 = vld [vmem:[#allocation2 + $0x80] sm:$0xf]  ;;  %v5534_v26 = vld [vmem:[#allocation2 + $0x84] sm:$0xf0]  ;;  %v3982_v30 = vor.u32 %v5552_v20, %v3981_v13  ;;  %v3846_v40 = vor.u32 %v5518_v23, %v3845_v22 }
  0x56   : > { %582 = vmatpush.bf16.msra.mxu1 %v3934_v0  ;;  %v3973_v27 = vld [vmem:[#allocation2 + $0x100] sm:$0xf]  ;;  %v5550_v31 = vld [vmem:[#allocation2 + $0x104] sm:$0xf0]  ;;  %v5521_v32 = vld [vmem:[#allocation2 + $0x24] sm:$0xf]  ;;  %v3910_v45 = vor.u32 %v5534_v26, %v3909_v25 }
  0x57   : > { %596 = vmatpush.bf16.msra.mxu2 %v3998_v1  ;;  %v3863_v33 = vld [vmem:[#allocation2 + $0x28] sm:$0xf0]  ;;  %v5547_v34 = vld [vmem:[#allocation2 + $0xf4] sm:$0xf]  ;;  %v3967_v35 = vld [vmem:[#allocation2 + $0xf8] sm:$0xf0]  ;;  %v3974_v46 = vor.u32 %v5550_v31, %v3973_v27 }
  0x58   : > { %609 = vmatpush.bf16.msra.mxu3 %v3882_v14  ;;  %v5563_v36 = vld [vmem:[#allocation2 + $0x174] sm:$0xf]  ;;  %v4031_v37 = vld [vmem:[#allocation2 + $0x178] sm:$0xf0]  ;;  %v4035_v38 = vld [vmem:[%s6385_s10 + $0x8] sm:$0xf]  ;;  %v3866_v41 = vor.u32 %v5521_v32, %v3863_v33  ;;  %v3970_v52 = vor.u32 %v5547_v34, %v3967_v35 }
  0x59   : > { %569 = vmatpush.bf16.msra.mxu0 %v3862_v10  ;;  %v4036_v39 = vld [vmem:[%s6385_s10 + $0xc] sm:$0xf]  ;;  %v3833_v42 = vld [vmem:[#allocation4] sm:$0xf]  ;;  %v5515_v43 = vld [vmem:[#allocation4 + $0x8] sm:$0xf0]  ;;  %v4034_v53 = vor.u32 %v5563_v36, %v4031_v37 }
  0x5a   : > { %583 = vmatpush.bf16.msra.mxu1 %v3926_v15  ;;  %v5514_v44 = vld [vmem:[#allocation4 + $0x4] sm:$0xf]  ;;  %v3959_v49 = vld [vmem:[#allocation2 + $0xe8] sm:$0xf0]  ;;  %v3835_v50 = vld [vmem:[#allocation4 + $0xc] sm:$0xf0]  ;;  %v3834_v58 = vor.u32 %v5515_v43, %v3833_v42 }
  0x5b   : > { %597 = vmatpush.bf16.msra.mxu2 %v3990_v16  ;;  %v3841_v47 = vld [vmem:[#allocation4 + $0x8] sm:$0xf]  ;;  %v5545_v48 = vld [vmem:[#allocation2 + $0xe4] sm:$0xf]  ;;  %v5519_v51 = vld [vmem:[#allocation2 + $0x14] sm:$0xf]  ;;  %v6404_v60 = vor.u32 %v5514_v44, %v3835_v50 }
  0x5c   : > { %610 = vmatpush.bf16.msra.mxu3 %v3874_v28  ;;  %v5516_v54 = vld [vmem:[#allocation4 + $0x10] sm:$0xf0]  ;;  %683 = vst [vmem:[#allocation4 + $0x8] sm:$0xf] %v4035_v38  ;;  %v3855_v55 = vld [vmem:[#allocation2 + $0x18] sm:$0xf0]  ;;  %v3962_v62 = vor.u32 %v5545_v48, %v3959_v49 }
  0x5d   : > { %570 = vmatpush.bf16.msra.mxu0 %v3854_v24  ;;  %684 = vst [vmem:[#allocation4 + $0x14] sm:$0xf] %v4036_v39  ;;  %v5561_v56 = vld [vmem:[#allocation2 + $0x164] sm:$0xf]  ;;  %v4023_v57 = vld [vmem:[#allocation2 + $0x168] sm:$0xf0]  ;;  %v6402_v59 = vor.u32 %v5516_v54, %v3841_v47  ;;  %v3858_v61 = vor.u32 %v5519_v51, %v3855_v55 }
  0x5e   : > { %584 = vmatpush.bf16.msra.mxu1 %v3918_v29  ;;  %v4026_v63 = vor.u32 %v5561_v56, %v4023_v57  ;;  %v5543_v0 = vld [vmem:[#allocation2 + $0xd4] sm:$0xf]  ;;  %v5517_v1 = vld [vmem:[#allocation2 + $0x4] sm:$0xf]  ;;  %v3847_v2 = vld [vmem:[#allocation2 + $0x8] sm:$0xf0] }
  0x5f   : > { %598 = vmatpush.bf16.msra.mxu2 %v3982_v30  ;;  %v3951_v3 = vld [vmem:[#allocation2 + $0xd8] sm:$0xf0]  ;;  %v5559_v4 = vld [vmem:[#allocation2 + $0x154] sm:$0xf]  ;;  %v3850_v6 = vor.u32 %v5517_v1, %v3847_v2  ;;  %v5541_v9 = vld [vmem:[#allocation2 + $0xc4] sm:$0xf] }
  0x60   : > { %611 = vmatpush.bf16.msra.mxu3 %v3866_v41  ;;  %v4015_v5 = vld [vmem:[#allocation2 + $0x158] sm:$0xf0]  ;;  %v3954_v7 = vor.u32 %v5543_v0, %v3951_v3  ;;  %v3943_v10 = vld [vmem:[#allocation2 + $0xc8] sm:$0xf0]  ;;  %v5557_v11 = vld [vmem:[#allocation2 + $0x144] sm:$0xf] }
  0x61   : > { %571 = vmatpush.bf16.msra.mxu0 %v3846_v40  ;;  %v4018_v8 = vor.u32 %v5559_v4, %v4015_v5  ;;  %v4007_v12 = vld [vmem:[#allocation2 + $0x148] sm:$0xf0]  ;;  %v3946_v13 = vor.u32 %v5541_v9, %v3943_v10  ;;  %v5539_v15 = vld [vmem:[#allocation2 + $0xb4] sm:$0xf]  ;;  %v3935_v16 = vld [vmem:[#allocation2 + $0xb8] sm:$0xf0] }
  0x62   : > { %585 = vmatpush.bf16.msra.mxu1 %v3910_v45  ;;  %v4010_v14 = vor.u32 %v5557_v11, %v4007_v12  ;;  %v5555_v17 = vld [vmem:[#allocation2 + $0x134] sm:$0xf]  ;;  %v3999_v18 = vld [vmem:[#allocation2 + $0x138] sm:$0xf0]  ;;  %v3938_v19 = vor.u32 %v5539_v15, %v3935_v16  ;;  %v5537_v21 = vld [vmem:[#allocation2 + $0xa4] sm:$0xf] }
  0x63   : > { %599 = vmatpush.bf16.msra.mxu2 %v3974_v46  ;;  %v4002_v20 = vor.u32 %v5555_v17, %v3999_v18  ;;  %v3927_v22 = vld [vmem:[#allocation2 + $0xa8] sm:$0xf0]  ;;  %v5553_v23 = vld [vmem:[#allocation2 + $0x124] sm:$0xf]  ;;  %v5535_v27 = vld [vmem:[#allocation2 + $0x94] sm:$0xf] }
  0x64   : > { %572 = vmatmul.bf16.vlgmr.msra.gmra.mxu0 %v3834_v58  ;;  %612 = vmatpush.bf16.msra.mxu3 %v3858_v61  ;;  %v3991_v24 = vld [vmem:[#allocation2 + $0x128] sm:$0xf0]  ;;  %v3930_v25 = vor.u32 %v5537_v21, %v3927_v22  ;;  %v3919_v28 = vld [vmem:[#allocation2 + $0x98] sm:$0xf0]  ;;  %v5551_v29 = vld [vmem:[#allocation2 + $0x114] sm:$0xf] }
  0x65   : > { %620 = vmatpush.bf16.msrb.mxu0 %v3970_v52  ;;  %586 = vmatmul.bf16.vlgmr.msra.gmra.mxu1 %v6404_v60  ;;  %v3994_v26 = vor.u32 %v5553_v23, %v3991_v24  ;;  %v3983_v30 = vld [vmem:[#allocation2 + $0x118] sm:$0xf0]  ;;  %v3922_v31 = vor.u32 %v5535_v27, %v3919_v28  ;;  %v5533_v33 = vld [vmem:[#allocation2 + $0x84] sm:$0xf]  ;;  %v3911_v34 = vld [vmem:[#allocation2 + $0x88] sm:$0xf0] }
  0x66   : > { %634 = vmatpush.bf16.msrb.mxu1 %v4034_v53  ;;  %600 = vmatmul.bf16.vlgmr.msra.gmra.mxu2 %v6402_v59  ;;  %v3986_v32 = vor.u32 %v5551_v29, %v3983_v30  ;;  %v5549_v35 = vld [vmem:[#allocation2 + $0x104] sm:$0xf]  ;;  %v3975_v36 = vld [vmem:[#allocation2 + $0x108] sm:$0xf0]  ;;  %v3914_v37 = vor.u32 %v5533_v33, %v3911_v34  ;;  %v4107_v39 = vld [vmem:[#allocation2 + $0x70] sm:$0xf] }
  0x67   : > { %v3978_v38 = vor.u32 %v5549_v35, %v3975_v36  ;;  %v5583_v40 = vld [vmem:[#allocation2 + $0x74] sm:$0xf0]  ;;  %v4171_v41 = vld [vmem:[#allocation2 + $0xf0] sm:$0xf]  ;;  %v4099_v45 = vld [vmem:[#allocation2 + $0x60] sm:$0xf] }
  0x68   : > { %613 = vmatpush.bf16.msra.mxu3 %v3850_v6  ;;  %v4108_v42 = vor.u32 %v5583_v40, %v4107_v39  ;;  %v5599_v43 = vld [vmem:[#allocation2 + $0xf4] sm:$0xf0]  ;;  %v5581_v46 = vld [vmem:[#allocation2 + $0x64] sm:$0xf0]  ;;  %v4163_v47 = vld [vmem:[#allocation2 + $0xe0] sm:$0xf] }
  0x69   : > { %621 = vmatpush.bf16.msrb.mxu0 %v3962_v62  ;;  %v4172_v44 = vor.u32 %v5599_v43, %v4171_v41  ;;  %v4100_v48 = vor.u32 %v5581_v46, %v4099_v45  ;;  %v5597_v49 = vld [vmem:[#allocation2 + $0xe4] sm:$0xf0]  ;;  %v4091_v51 = vld [vmem:[#allocation2 + $0x50] sm:$0xf]  ;;  %v5579_v52 = vld [vmem:[#allocation2 + $0x54] sm:$0xf0] }
  0x6a   : > { %635 = vmatpush.bf16.msrb.mxu1 %v4026_v63  ;;  %993 = vmatpush.bf16.msrb.mxu2 %v4108_v42  ;;  %v4164_v50 = vor.u32 %v5597_v49, %v4163_v47  ;;  %v4155_v53 = vld [vmem:[#allocation2 + $0xd0] sm:$0xf]  ;;  %v4092_v54 = vor.u32 %v5579_v52, %v4091_v51  ;;  %v5595_v55 = vld [vmem:[#allocation2 + $0xd4] sm:$0xf0]  ;;  %v4147_v62 = vld [vmem:[#allocation2 + $0xc0] sm:$0xf] }
  0x6b   : > { %614 = vmatmul.bf16.vlgmr.msra.gmra.mxu3 %v3834_v58  ;;  %v4156_v56 = vor.u32 %v5595_v55, %v4155_v53  ;;  %v5593_v63 = vld [vmem:[#allocation2 + $0xc4] sm:$0xf0]  ;;  %v5582_v0 = vld [vmem:[#allocation2 + $0x74] sm:$0xf]  ;;  %v4109_v2 = vld [vmem:[#allocation2 + $0x78] sm:$0xf0] }
  0x6c   : > { %1007 = vmatpush.bf16.msrb.mxu3 %v4172_v44  ;;  %v4148_v1 = vor.u32 %v5593_v63, %v4147_v62  ;;  %v4112_v4 = vor.u32 %v5582_v0, %v4109_v2  ;;  %v4075_v5 = vld [vmem:[#allocation2 + $0x30] sm:$0xf]  ;;  %v5575_v6 = vld [vmem:[#allocation2 + $0x34] sm:$0xf0]  ;;  %v5580_v10 = vld [vmem:[#allocation2 + $0x64] sm:$0xf] }
  0x6d   : > { %622 = vmatpush.bf16.msrb.mxu0 %v3954_v7  ;;  %v4139_v7 = vld [vmem:[#allocation2 + $0xb0] sm:$0xf]  ;;  %v5591_v9 = vld [vmem:[#allocation2 + $0xb4] sm:$0xf0]  ;;  %v4101_v11 = vld [vmem:[#allocation2 + $0x68] sm:$0xf0] }
  0x6e   : > { %636 = vmatpush.bf16.msrb.mxu1 %v4018_v8  ;;  %994 = vmatpush.bf16.msrb.mxu2 %v4100_v48  ;;  %v4076_v8 = vor.u32 %v5575_v6, %v4075_v5  ;;  %v4104_v15 = vor.u32 %v5580_v10, %v4101_v11  ;;  %v4131_v21 = vld [vmem:[#allocation2 + $0xa0] sm:$0xf]  ;;  %v5589_v24 = vld [vmem:[#allocation2 + $0xa4] sm:$0xf0]  ;;  %v5615_v27 = vld [vmem:[#allocation2 + $0x174] sm:$0xf0] }
  0x6f   : > { %v5578_v28 = vld [vmem:[#allocation2 + $0x54] sm:$0xf]  ;;  %v4093_v29 = vld [vmem:[#allocation2 + $0x58] sm:$0xf0]  ;;  %v4059_v34 = vld [vmem:[#allocation2 + $0x10] sm:$0xf] }
  0x70   : > { %1008 = vmatpush.bf16.msrb.mxu3 %v4164_v50  ;;  %v4096_v33 = vor.u32 %v5578_v28, %v4093_v29  ;;  %v5571_v35 = vld [vmem:[#allocation2 + $0x14] sm:$0xf0]  ;;  %v4123_v36 = vld [vmem:[#allocation2 + $0x90] sm:$0xf]  ;;  %v4227_v40 = vld [vmem:[#allocation2 + $0x160] sm:$0xf] }
  0x71   : > { %623 = vmatpush.bf16.msrb.mxu0 %v3946_v13  ;;  %v648_v13 = vld [vmem:[#allocation3 + $0x10] sm:$0xff]  ;;  %v5587_v39 = vld [vmem:[#allocation2 + $0x94] sm:$0xf0]  ;;  %v5613_v41 = vld [vmem:[#allocation2 + $0x164] sm:$0xf0]  ;;  %s5923_s22 = sshll.u32 %s6240_s15, 8 }
  0x72   : > { %637 = vmatpush.bf16.msrb.mxu1 %v4010_v14  ;;  %995 = vmatpush.bf16.msrb.mxu2 %v4092_v54  ;;  %v4140_v14 = vor.u32 %v5591_v9, %v4139_v7  ;;  %v650_v43 = vld [vmem:[#allocation3 + $0x18] sm:$0xff]  ;;  %v4124_v44 = vor.u32 %v5587_v39, %v4123_v36  ;;  %v4228_v45 = vor.u32 %v5613_v41, %v4227_v40  ;;  %v5576_v46 = vld [vmem:[#allocation2 + $0x44] sm:$0xf]  ;;  %v4085_v47 = vld [vmem:[#allocation2 + $0x48] sm:$0xf0]  ;;  %s3706_s29 = scalar_lea.hbm %s6676_s3, %s5923_s22  ;;  %s3707_s21 = sshll.u32 %s6392_s27, 4  ;;  %s3708_s21 = int_to_ptr.vmem [resolvable:$true] %s3707_s21 }
  0x73   : > { %v4088_v49 = vor.u32 %v5576_v46, %v4085_v47  ;;  %v4051_v50 = vld [vmem:[#allocation2] sm:$0xf]  ;;  %v5569_v51 = vld [vmem:[#allocation2 + $0x4] sm:$0xf0]  ;;  %v5598_v62 = vld [vmem:[#allocation2 + $0xf4] sm:$0xf] }
  0x74   : > { %1009 = vmatpush.bf16.msrb.mxu3 %v4156_v56  ;;  %v4115_v52 = vld [vmem:[#allocation2 + $0x80] sm:$0xf]  ;;  %v4052_v54 = vor.u32 %v5569_v51, %v4051_v50  ;;  %v5585_v55 = vld [vmem:[#allocation2 + $0x84] sm:$0xf0]  ;;  %v4219_v56 = vld [vmem:[#allocation2 + $0x150] sm:$0xf] }
  0x75   : > { %624 = vmatpush.bf16.msrb.mxu0 %v3938_v19  ;;  %v4067_v19 = vld [vmem:[#allocation2 + $0x20] sm:$0xf]  ;;  %v5614_v2 = vld [vmem:[#allocation2 + $0x174] sm:$0xf]  ;;  %v5572_v9 = vld [vmem:[#allocation2 + $0x24] sm:$0xf] }
  0x76   : > { %638 = vmatpush.bf16.msrb.mxu1 %v4002_v20  ;;  %v5573_v20 = vld [vmem:[#allocation2 + $0x24] sm:$0xf0]  ;;  %v4211_v7 = vld [vmem:[#allocation2 + $0x140] sm:$0xf]  ;;  %v4069_v11 = vld [vmem:[#allocation2 + $0x28] sm:$0xf0] }
  0x77   : > { %v4068_v23 = vor.u32 %v5573_v20, %v4067_v19  ;;  %v4203_v19 = vld [vmem:[#allocation2 + $0x130] sm:$0xf]  ;;  %v5607_v20 = vld [vmem:[#allocation2 + $0x134] sm:$0xf0]  ;;  %v5610_v29 = vld [vmem:[#allocation2 + $0x154] sm:$0xf] }
  0x78   : > { %1010 = vmatpush.bf16.msrb.mxu3 %v4148_v1  ;;  %v4173_v1 = vld [vmem:[#allocation2 + $0xf8] sm:$0xf0]  ;;  %v5592_v41 = vld [vmem:[#allocation2 + $0xc4] sm:$0xf]  ;;  %v4213_v46 = vld [vmem:[#allocation2 + $0x148] sm:$0xf0] }
  0x79   : > { %625 = vmatpush.bf16.msrb.mxu0 %v3930_v25  ;;  %v4235_v25 = vld [vmem:[#allocation2 + $0x170] sm:$0xf]  ;;  %v649_v47 = vld [vmem:[#allocation3] sm:$0xff]  ;;  %s3709_s30 = sshll.u32 %s3706_s29, 4  ;;  %s3691_s15 = scalar_lea.sflag [#allocation8], %s6381_s6  ;;  %s3710_s30 = int_to_ptr.hbm [resolvable:$true] %s3709_s30 }
  0x7a   : > { %639 = vmatpush.bf16.msrb.mxu1 %v3994_v26  ;;  %v4132_v26 = vor.u32 %v5589_v24, %v4131_v21  ;;  %v5570_v21 = vld [vmem:[#allocation2 + $0x14] sm:$0xf]  ;;  %v4187_v51 = vld [vmem:[#allocation2 + $0x110] sm:$0xf]  ;;  %s6174_s4 = sshra.s32 %s3710_s30, 4  ;;  %s6180_s0 = scalar_lea.hbm %s6676_s3, 512  ;;  %s6175_s4 = int_to_ptr.hbm [resolvable:$true] %s6174_s4 }
  0x7b   : > { %v5594_v24 = vld [vmem:[#allocation2 + $0xd4] sm:$0xf]  ;;  %s6176_s7 = scalar_lea.hbm %s6175_s4, 256  ;;  %p6181_p12 = scmp.lt.s32.totalorder %s6175_s4, %s6676_s3 }
  0x7c   : > { %1011 = vmatpush.bf16.msrb.mxu3 %v4140_v14  ;;  %v4072_v14 = vor.u32 %v5572_v9, %v4069_v11  ;;  %v4197_v9 = vld [vmem:[#allocation2 + $0x128] sm:$0xf0]  ;;  %v5567_v11 = vld [vmem:[#allocation4 + $0x10] sm:$0xf0]  ;;  %p6177_p4 = scmp.ne.s32.totalorder %s6175_s4, %s6176_s7  ;;  %p6182_p13 = scmp.lt.s32.totalorder %s6180_s0, %s6176_s7 }
  0x7d   : > { %626 = vmatpush.bf16.msrb.mxu0 %v3922_v31 }
  0x7e   : > { %640 = vmatpush.bf16.msrb.mxu1 %v3986_v32  ;;  %v4236_v32 = vor.u32 %v5615_v27, %v4235_v25  ;;  %v4157_v25 = vld [vmem:[#allocation2 + $0xd8] sm:$0xf0]  ;;  %p6178_p8 = pnand %p6177_p4, %p6357_p5  ;;  %p6183_p0 = por %p6182_p13, %p6181_p12 }
  0x7f   : > { %v4160_v28 = vor.u32 %v5594_v24, %v4157_v25  ;;  %v5584_v24 = vld [vmem:[#allocation2 + $0x84] sm:$0xf]  ;;  %v4117_v25 = vld [vmem:[#allocation2 + $0x88] sm:$0xf0] }
  0x80   : > { %1012 = vmatpush.bf16.msrb.mxu3 %v4132_v26  ;;  %p6179_p10 = pneg %p6178_p8 }
  0x81   : > { %627 = vmatpush.bf16.msrb.mxu0 %v3914_v37 }
  0x82   : > { %641 = vmatpush.bf16.msrb.mxu1 %v3978_v38  ;;  %v4060_v38 = vor.u32 %v5571_v35, %v4059_v34  ;;  %v5568_v34 = vld [vmem:[#allocation2 + $0x4] sm:$0xf]  ;;  %v4053_v35 = vld [vmem:[#allocation2 + $0x8] sm:$0xf0]  ;;  %p6184_p3 = pnand %p6183_p0, %p6179_p10 }
  0x83   : > { %v4056_v40 = vor.u32 %v5568_v34, %v4053_v35 }
  0x84   : > { %628 = vmatmul.bf16.vlgmr.msrb.gmra.mxu0 %v6404_v60  ;;  %v5577_v60 = vld [vmem:[#allocation2 + $0x44] sm:$0xf0]  ;;  %1013 = vmatpush.bf16.msrb.mxu3 %v4124_v44 }
  0x85   : > { %642 = vmatmul.bf16.vlgmr.msrb.gmra.mxu1 %v6402_v59  ;;  %v4083_v59 = vld [vmem:[#allocation2 + $0x40] sm:$0xf]  ;;  %1021 = vmatpush.bf16.msra.mxu0 %v4236_v32 }
  0x86   : > { %v4084_v61 = vor.u32 %v5577_v60, %v4083_v59  ;;  %1035 = vmatpush.bf16.msra.mxu1 %v4112_v4  ;;  %v5574_v60 = vld [vmem:[#allocation2 + $0x34] sm:$0xf]  ;;  %v4237_v4 = vld [vmem:[#allocation2 + $0x178] sm:$0xf0] }
  0x87   : > { %v4240_v6 = vor.u32 %v5614_v2, %v4237_v4  ;;  %v5588_v2 = vld [vmem:[#allocation2 + $0xa4] sm:$0xf] }
  0x88   : > { %996 = vmatpush.bf16.msrb.mxu2 %v4084_v61  ;;  %v4077_v61 = vld [vmem:[#allocation2 + $0x38] sm:$0xf0]  ;;  %v5604_v4 = vld [vmem:[#allocation2 + $0x124] sm:$0xf] }
  0x89   : > { %1022 = vmatpush.bf16.msra.mxu0 %v4228_v45  ;;  %v4080_v0 = vor.u32 %v5574_v60, %v4077_v61  ;;  %v4179_v61 = vld [vmem:[#allocation2 + $0x100] sm:$0xf] }
  0x8a   : > { %1036 = vmatpush.bf16.msra.mxu1 %v4104_v15 }
  0x8c   : > { %997 = vmatpush.bf16.msrb.mxu2 %v4076_v8  ;;  %v5609_v8 = vld [vmem:[#allocation2 + $0x144] sm:$0xf0] }
  0x8d   : > { %v4212_v10 = vor.u32 %v5609_v8, %v4211_v7 }
  0x8e   : > { %1037 = vmatpush.bf16.msra.mxu1 %v4096_v33  ;;  %v5605_v33 = vld [vmem:[#allocation2 + $0x124] sm:$0xf0] }
  0x90   : > { %998 = vmatpush.bf16.msrb.mxu2 %v4068_v23  ;;  %v4061_v23 = vld [vmem:[#allocation2 + $0x18] sm:$0xf0] }
  0x91   : > { %v4064_v27 = vor.u32 %v5570_v21, %v4061_v23 }
  0x92   : > { %1038 = vmatpush.bf16.msra.mxu1 %v4088_v49 }
  0x94   : > { %999 = vmatpush.bf16.msrb.mxu2 %v4060_v38 }
  0x96   : > { %1039 = vmatpush.bf16.msra.mxu1 %v4080_v0 }
  0x98   : > { %1000 = vmatpush.bf16.msrb.mxu2 %v4052_v54 }
  0x9a   : > { %1040 = vmatpush.bf16.msra.mxu1 %v4072_v14  ;;  %v4200_v14 = vor.u32 %v5604_v4, %v4197_v9  ;;  %v4357_v4 = vld [vmem:[#allocation2 + $0xc0] sm:$0xf] }
  0x9b   : > { %v4437_v9 = vld [vmem:[#allocation2 + $0x160] sm:$0xf] }
  0x9e   : > { %1041 = vmatpush.bf16.msra.mxu1 %v4064_v27  ;;  %v5600_v27 = vld [vmem:[#allocation2 + $0x104] sm:$0xf] }
  0xa2   : > { %1042 = vmatpush.bf16.msra.mxu1 %v4056_v40 }
  0xe1   : > { %v573_v57 = vpop.f32.mrf.mxu0 }
  0xe2   : > { %v587_v58 = vpop.f32.mrf.mxu1 }
  0xe3   : > { %v588_v3 = vadd.f32 %v587_v58, %v573_v57  ;;  %v5611_v57 = vld [vmem:[#allocation2 + $0x154] sm:$0xf0]  ;;  %v4116_v58 = vor.u32 %v5585_v55, %v4115_v52  ;;  %v4141_v55 = vld [vmem:[#allocation2 + $0xb8] sm:$0xf0] }
  0xe4   : > { %v4220_v59 = vor.u32 %v5611_v57, %v4219_v56  ;;  %v5603_v52 = vld [vmem:[#allocation2 + $0x114] sm:$0xf0]  ;;  %v5606_v56 = vld [vmem:[#allocation2 + $0x134] sm:$0xf]  ;;  %v4205_v57 = vld [vmem:[#allocation2 + $0x138] sm:$0xf0] }
  0xe5   : > { %1014 = vmatpush.bf16.msrb.mxu3 %v4116_v58  ;;  %v4188_v54 = vor.u32 %v5603_v52, %v4187_v51  ;;  %v4208_v60 = vor.u32 %v5606_v56, %v4205_v57  ;;  %v4309_v51 = vld [vmem:[#allocation2 + $0x60] sm:$0xf]  ;;  %v5632_v52 = vld [vmem:[#allocation2 + $0x64] sm:$0xf0]  ;;  %v4301_v57 = vld [vmem:[#allocation2 + $0x50] sm:$0xf] }
  0xe6   : > { %1023 = vmatpush.bf16.msra.mxu0 %v4220_v59 }
  0xe9   : > { %v601_v12 = vpop.f32.mrf.mxu2  ;;  %v575_v17 = vpop.f32.mrf.mxu0  ;;  %1063 = vmatpush.bf16.msra.mxu3 %v4240_v6 }
  0xea   : > { %v602_v16 = vadd.f32 %v601_v12, %v588_v3  ;;  %v589_v18 = vpop.f32.mrf.mxu1  ;;  %v4176_v3 = vor.u32 %v5598_v62, %v4173_v1  ;;  %v5596_v12 = vld [vmem:[#allocation2 + $0xe4] sm:$0xf]  ;;  %1024 = vmatpush.bf16.msra.mxu0 %v4212_v10  ;;  %v5601_v62 = vld [vmem:[#allocation2 + $0x104] sm:$0xf0] }
  0xeb   : > { %v590_v31 = vadd.f32 %v589_v18, %v575_v17  ;;  %v4229_v17 = vld [vmem:[#allocation2 + $0x168] sm:$0xf0]  ;;  %v4180_v1 = vor.u32 %v5601_v62, %v4179_v61  ;;  %v4047_v10 = vld [vmem:[#allocation4 + $0x8] sm:$0xf]  ;;  %v5646_v61 = vld [vmem:[#allocation2 + $0xd4] sm:$0xf0] }
  0xec   : > { %v652_v22 = vsub.f32 %v602_v16, %v648_v13  ;;  %1049 = vmatpush.bf16.msra.mxu2 %v4176_v3  ;;  %v5612_v16 = vld [vmem:[#allocation2 + $0x164] sm:$0xf]  ;;  %v4133_v3 = vld [vmem:[#allocation2 + $0xa8] sm:$0xf0]  ;;  %v4445_v62 = vld [vmem:[#allocation2 + $0x170] sm:$0xf] }
  0xed   : > { %v4232_v18 = vor.u32 %v5612_v16, %v4229_v17  ;;  %v4136_v8 = vor.u32 %v5588_v2, %v4133_v3  ;;  %v4125_v16 = vld [vmem:[#allocation2 + $0x98] sm:$0xf0]  ;;  %v4293_v2 = vld [vmem:[#allocation2 + $0x40] sm:$0xf]  ;;  %v5628_v3 = vld [vmem:[#allocation2 + $0x44] sm:$0xf0] }
  0xee   : > { %v656_v30 = vmul.f32 0.33333334, %v652_v22  ;;  %v4204_v22 = vor.u32 %v5607_v20, %v4203_v19  ;;  %v615_v26 = vpop.f32.mrf.mxu3  ;;  %v5602_v19 = vld [vmem:[#allocation2 + $0x114] sm:$0xf]  ;;  %v4189_v20 = vld [vmem:[#allocation2 + $0x118] sm:$0xf0] }
  0xef   : > { %1064 = vmatpush.bf16.msra.mxu3 %v4232_v18  ;;  %v4048_v18 = vor.u32 %v5567_v11, %v4047_v10  ;;  %v4192_v23 = vor.u32 %v5602_v19, %v4189_v20  ;;  %v5664_v10 = vld [vmem:[#allocation2 + $0x164] sm:$0xf0]  ;;  %v5642_v20 = vld [vmem:[#allocation2 + $0xb4] sm:$0xf0] }
  0xf0   : > { %v6410_v37 = vadd.f32 %v656_v30, %v648_v13  ;;  %v4165_v13 = vld [vmem:[#allocation2 + $0xe8] sm:$0xf0]  ;;  %v4221_v30 = vld [vmem:[#allocation2 + $0x158] sm:$0xf0]  ;;  %1025 = vmatpush.bf16.msra.mxu0 %v4204_v22 }
  0xf1   : > { %v603_v42 = vpop.f32.mrf.mxu2  ;;  %v4168_v15 = vor.u32 %v5596_v12, %v4165_v13  ;;  %v4224_v32 = vor.u32 %v5610_v29, %v4221_v30  ;;  %v651_v13 = vld [vmem:[#allocation3 + $0x8] sm:$0xff] }
  0xf2   : > { %676 = vst [vmem:[%s6392_s27] sm:$0xff] %v6410_v37  ;;  %v604_v48 = vadd.f32 %v603_v42, %v590_v31  ;;  %v4195_v31 = vld [vmem:[#allocation2 + $0x120] sm:$0xf]  ;;  %v4149_v42 = vld [vmem:[#allocation2 + $0xc8] sm:$0xf0]  ;;  %6012 = vtanh.f32 %v6410_v37 }
  0xf3   : > { %1050 = vmatpush.bf16.msra.mxu2 %v4168_v15  ;;  %v4196_v39 = vor.u32 %v5605_v33, %v4195_v31  ;;  %v4152_v45 = vor.u32 %v5592_v41, %v4149_v42  ;;  %1065 = vmatpush.bf16.msra.mxu3 %v4224_v32  ;;  %v5586_v15 = vld [vmem:[#allocation2 + $0x94] sm:$0xf]  ;;  %v4120_v32 = vor.u32 %v5584_v24, %v4117_v25  ;;  %v5631_v25 = vld [vmem:[#allocation2 + $0x64] sm:$0xf] }
  0xf4   : > { %v654_v53 = vsub.f32 %v604_v48, %v650_v43  ;;  %v4128_v22 = vor.u32 %v5586_v15, %v4125_v16  ;;  %v4285_v16 = vld [vmem:[#allocation2 + $0x30] sm:$0xf] }
  0xf5   : > { %1026 = vmatpush.bf16.msra.mxu0 %v4196_v39 }
  0xf6   : > { %v658_v63 = vmul.f32 0.33333334, %v654_v53  ;;  %v5590_v53 = vld [vmem:[#allocation2 + $0xb4] sm:$0xf] }
  0xf7   : > { %1051 = vmatpush.bf16.msra.mxu2 %v4160_v28  ;;  %v4144_v59 = vor.u32 %v5590_v53, %v4141_v55  ;;  %v4181_v28 = vld [vmem:[#allocation2 + $0x108] sm:$0xf0]  ;;  %v4373_v53 = vld [vmem:[#allocation2 + $0xe0] sm:$0xf]  ;;  %v5648_v55 = vld [vmem:[#allocation2 + $0xe4] sm:$0xf0] }
  0xf8   : > { %v6414_v5 = vadd.f32 %v658_v63, %v650_v43  ;;  %v5608_v43 = vld [vmem:[#allocation2 + $0x144] sm:$0xf]  ;;  %v617_v63 = vpop.f32.mrf.mxu3  ;;  %v6013_v29 = vpop.eup %6012  ;;  %v4184_v34 = vor.u32 %v5600_v27, %v4181_v28  ;;  %v4374_v56 = vor.u32 %v5648_v55, %v4373_v53  ;;  %v4277_v28 = vld [vmem:[#allocation2 + $0x20] sm:$0xf] }
  0xf9   : > { %v4216_v48 = vor.u32 %v5608_v43, %v4213_v46  ;;  %1027 = vmatpush.bf16.msra.mxu0 %v4188_v54  ;;  %v5634_v46 = vld [vmem:[#allocation2 + $0x74] sm:$0xf0]  ;;  %v4310_v54 = vor.u32 %v5632_v52, %v4309_v51  ;;  %v4413_v51 = vld [vmem:[#allocation2 + $0x130] sm:$0xf]  ;;  %v5627_v55 = vld [vmem:[#allocation2 + $0x44] sm:$0xf] }
  0xfa   : > { %678 = vst [vmem:[%s6392_s27 + $0x10] sm:$0xff] %v6414_v5  ;;  %v5658_v52 = vld [vmem:[#allocation2 + $0x134] sm:$0xf0] }
  0xfb   : > { %1052 = vmatpush.bf16.msra.mxu2 %v4152_v45  ;;  %1066 = vmatpush.bf16.msra.mxu3 %v4216_v48  ;;  %v4317_v45 = vld [vmem:[#allocation2 + $0x70] sm:$0xf] }
  0xfc   : > { %v4318_v48 = vor.u32 %v5634_v46, %v4317_v45  ;;  %v4269_v45 = vld [vmem:[#allocation2 + $0x10] sm:$0xf]  ;;  %v5622_v46 = vld [vmem:[#allocation2 + $0x14] sm:$0xf0] }
  0xfd   : > { %1028 = vmatpush.bf16.msra.mxu0 %v4180_v1 }
  0xff   : > { %1053 = vmatpush.bf16.msra.mxu2 %v4144_v59  ;;  %1067 = vmatpush.bf16.msra.mxu3 %v4208_v60  ;;  %v4365_v59 = vld [vmem:[#allocation2 + $0xd0] sm:$0xf] }
 0x100   : > { %1029 = vmatmul.bf16.vlgmr.msra.gmra.mxu0 %v4048_v18 }
 0x101   : > { %v629_v36 = vpop.f32.mrf.mxu0  ;;  %1423 = vmatpush.bf16.msrb.mxu0 %v4318_v48 }
 0x102   : > { %v643_v38 = vpop.f32.mrf.mxu1  ;;  %v630_v44 = vadd.f32 %v629_v36, %v615_v26 }
 0x103   : > { %1054 = vmatpush.bf16.msra.mxu2 %v4136_v8  ;;  %1068 = vmatpush.bf16.msra.mxu3 %v4200_v14  ;;  %v5644_v8 = vld [vmem:[#allocation2 + $0xc4] sm:$0xf0]  ;;  %v4319_v14 = vld [vmem:[#allocation2 + $0x78] sm:$0xf0] }
 0x104   : > { %v644_v49 = vadd.f32 %v643_v38, %v630_v44  ;;  %v4358_v11 = vor.u32 %v5644_v8, %v4357_v4  ;;  %v4287_v8 = vld [vmem:[#allocation2 + $0x38] sm:$0xf0] }
 0x105   : > { %1424 = vmatpush.bf16.msrb.mxu0 %v4310_v54  ;;  %v4414_v54 = vor.u32 %v5658_v52, %v4413_v51 }
 0x106   : > { %v653_v50 = vsub.f32 %v644_v49, %v649_v47  ;;  %v5650_v49 = vld [vmem:[#allocation2 + $0xf4] sm:$0xf0] }
 0x107   : > { %1055 = vmatpush.bf16.msra.mxu2 %v4128_v22  ;;  %1069 = vmatpush.bf16.msra.mxu3 %v4192_v23  ;;  %v5662_v22 = vld [vmem:[#allocation2 + $0x154] sm:$0xf0] }
 0x108   : > { %v657_v58 = vmul.f32 0.33333334, %v653_v50 }
 0x109   : > { %v631_v0 = vpop.f32.mrf.mxu0 }
 0x10a   : > { %v6418_v6 = vadd.f32 %v657_v58, %v649_v47  ;;  %v632_v7 = vadd.f32 %v631_v0, %v617_v63  ;;  %v645_v12 = vpop.f32.mrf.mxu1  ;;  %v4381_v47 = vld [vmem:[#allocation2 + $0xf0] sm:$0xf]  ;;  %v5630_v58 = vld [vmem:[#allocation2 + $0x54] sm:$0xf0]  ;;  %v4366_v0 = vor.u32 %v5646_v61, %v4365_v59  ;;  %v4261_v59 = vld [vmem:[#allocation2] sm:$0xf] }
 0x10b   : > { %1056 = vmatpush.bf16.msra.mxu2 %v4120_v32  ;;  %1070 = vmatpush.bf16.msra.mxu3 %v4184_v34  ;;  %v4382_v50 = vor.u32 %v5650_v49, %v4381_v47  ;;  %v4302_v60 = vor.u32 %v5630_v58, %v4301_v57  ;;  %v5666_v63 = vld [vmem:[#allocation2 + $0x174] sm:$0xf0]  ;;  %v5640_v34 = vld [vmem:[#allocation2 + $0xa4] sm:$0xf0]  ;;  %v4333_v47 = vld [vmem:[#allocation2 + $0x90] sm:$0xf]  ;;  %v4270_v49 = vor.u32 %v5622_v46, %v4269_v45 }
 0x10c   : > { %6014 = vtanh.f32 %v6418_v6  ;;  %677 = vst [vmem:[%s6392_s27 + $0x8] sm:$0xff] %v6418_v6  ;;  %v646_v17 = vadd.f32 %v645_v12, %v632_v7  ;;  %v4446_v1 = vor.u32 %v5666_v63, %v4445_v62  ;;  %v4294_v7 = vor.u32 %v5628_v3, %v4293_v2  ;;  %v4325_v61 = vld [vmem:[#allocation2 + $0x80] sm:$0xf]  ;;  %v5656_v2 = vld [vmem:[#allocation2 + $0x124] sm:$0xf0] }
 0x10d   : > { %6016 = vtanh.f32 %v6414_v5  ;;  %1437 = vmatpush.bf16.msrb.mxu1 %v4382_v50  ;;  %1425 = vmatpush.bf16.msrb.mxu0 %v4302_v60  ;;  %v4438_v12 = vor.u32 %v5664_v10, %v4437_v9  ;;  %v5638_v50 = vld [vmem:[#allocation2 + $0x94] sm:$0xf0]  ;;  %v5620_v60 = vld [vmem:[#allocation2 + $0x4] sm:$0xf0]  ;;  %v5649_v9 = vld [vmem:[#allocation2 + $0xf4] sm:$0xf] }
 0x10e   : > { %v655_v21 = vsub.f32 %v646_v17, %v651_v13  ;;  %v5626_v17 = vld [vmem:[#allocation2 + $0x34] sm:$0xf0]  ;;  %v4334_v53 = vor.u32 %v5638_v50, %v4333_v47  ;;  %v4262_v63 = vor.u32 %v5620_v60, %v4261_v59  ;;  %v4367_v45 = vld [vmem:[#allocation2 + $0xd8] sm:$0xf0]  ;;  %v5643_v60 = vld [vmem:[#allocation2 + $0xc4] sm:$0xf] }
 0x10f   : > { %v4286_v19 = vor.u32 %v5626_v17, %v4285_v16  ;;  %v4431_v50 = vld [vmem:[#allocation2 + $0x158] sm:$0xf0] }
 0x110   : > { %v659_v26 = vmul.f32 0.33333334, %v655_v21  ;;  %v4429_v21 = vld [vmem:[#allocation2 + $0x150] sm:$0xf] }
 0x111   : > { %1438 = vmatpush.bf16.msrb.mxu1 %v4374_v56  ;;  %1426 = vmatpush.bf16.msrb.mxu0 %v4294_v7  ;;  %v4430_v24 = vor.u32 %v5662_v22, %v4429_v21  ;;  %v4295_v56 = vld [vmem:[#allocation2 + $0x48] sm:$0xf0]  ;;  %v5625_v7 = vld [vmem:[#allocation2 + $0x34] sm:$0xf]  ;;  %v4397_v22 = vld [vmem:[#allocation2 + $0x110] sm:$0xf] }
 0x112   : > { %v6015_v30 = vpop.eup %6014  ;;  %v6424_v31 = vadd.f32 %v659_v26, %v651_v13  ;;  %v5633_v13 = vld [vmem:[#allocation2 + $0x74] sm:$0xf]  ;;  %v4311_v26 = vld [vmem:[#allocation2 + $0x68] sm:$0xf0]  ;;  %v4298_v58 = vor.u32 %v5627_v55, %v4295_v56  ;;  %v5619_v55 = vld [vmem:[#allocation2 + $0x4] sm:$0xf] }
 0x113   : > { %v672_v33 = vpack.c.bf16 %v6015_v30, %v6013_v29  ;;  %v6017_v35 = vpop.eup %6016  ;;  %v4322_v15 = vor.u32 %v5633_v13, %v4319_v14  ;;  %v4314_v27 = vor.u32 %v5631_v25, %v4311_v26  ;;  %v5624_v29 = vld [vmem:[#allocation2 + $0x24] sm:$0xf0]  ;;  %v4341_v30 = vld [vmem:[#allocation2 + $0xa0] sm:$0xf]  ;;  %v4383_v13 = vld [vmem:[#allocation2 + $0xf8] sm:$0xf0] }
 0x114   : > { %6018 = vtanh.f32 %v6424_v31  ;;  %679 = vst [vmem:[%s6392_s27 + $0x18] sm:$0xff] %v6424_v31  ;;  %v5665_v14 = vld [vmem:[#allocation2 + $0x174] sm:$0xf]  ;;  %v4386_v17 = vor.u32 %v5649_v9, %v4383_v13  ;;  %v4245_v25 = vld [vmem:[%s6385_s10 + $0x10] sm:$0xf] }
 0x115   : > { %674 = vst [vmem:[#allocation4] sm:$0xff] %v672_v33  ;;  %1439 = vmatpush.bf16.msrb.mxu1 %v4366_v0  ;;  %1427 = vmatpush.bf16.msrb.mxu0 %v4286_v19  ;;  %v4278_v33 = vor.u32 %v5624_v29, %v4277_v28  ;;  %v5636_v0 = vld [vmem:[#allocation2 + $0x84] sm:$0xf0]  ;;  %v5647_v28 = vld [vmem:[#allocation2 + $0xe4] sm:$0xf] }
 0x116   : > { %v4326_v3 = vor.u32 %v5636_v0, %v4325_v61  ;;  %v4375_v29 = vld [vmem:[#allocation2 + $0xe8] sm:$0xf0]  ;;  %1113 = vst [vmem:[#allocation4 + $0x8] sm:$0xf] %v4245_v25  ;;  %v4351_v9 = vld [vmem:[#allocation2 + $0xb8] sm:$0xf0] }
 0x117   : > { %v4263_v56 = vld [vmem:[#allocation2 + $0x8] sm:$0xf0] }
 0x118   : > { %v4266_v59 = vor.u32 %v5619_v55, %v4263_v56  ;;  %v4359_v61 = vld [vmem:[#allocation2 + $0xc8] sm:$0xf0]  ;;  %v4527_v56 = vld [vmem:[#allocation2 + $0x70] sm:$0xf] }
 0x119   : > { %1440 = vmatpush.bf16.msrb.mxu1 %v4358_v11  ;;  %1428 = vmatpush.bf16.msrb.mxu0 %v4278_v33  ;;  %v4423_v0 = vld [vmem:[#allocation2 + $0x148] sm:$0xf0] }
 0x11a   : > { %v6019_v36 = vpop.eup %6018  ;;  %v4407_v25 = vld [vmem:[#allocation2 + $0x128] sm:$0xf0] }
 0x11b   : > { %v673_v38 = vpack.c.bf16 %v6019_v36, %v6017_v35  ;;  %v4421_v35 = vld [vmem:[#allocation2 + $0x140] sm:$0xf]  ;;  %v5660_v36 = vld [vmem:[#allocation2 + $0x144] sm:$0xf0] }
 0x11c   : > { %v4039_v39 = vld [vmem:[#allocation4] sm:$0xf]  ;;  %v5565_v41 = vld [vmem:[#allocation4 + $0x4] sm:$0xf] }
 0x11d   : > { %675 = vst [vmem:[#allocation4 + $0xc] sm:$0xff] %v673_v38  ;;  %v4342_v38 = vor.u32 %v5640_v34, %v4341_v30  ;;  %1429 = vmatpush.bf16.msrb.mxu0 %v4270_v49  ;;  %v4246_v30 = vld [vmem:[%s6385_s10 + $0x14] sm:$0xf]  ;;  %v5663_v34 = vld [vmem:[#allocation2 + $0x164] sm:$0xf] }
 0x11e   : > { %v5661_v49 = vld [vmem:[#allocation2 + $0x154] sm:$0xf]  ;;  %1114 = vst [vmem:[#allocation4 + $0x14] sm:$0xf] %v4246_v30 }
 0x11f   : > { %v4434_v52 = vor.u32 %v5661_v49, %v4431_v50  ;;  %v5637_v30 = vld [vmem:[#allocation2 + $0x94] sm:$0xf] }
 0x121   : > { %1430 = vmatpush.bf16.msrb.mxu0 %v4262_v63  ;;  %v4362_v63 = vor.u32 %v5643_v60, %v4359_v61  ;;  %v5701_v61 = vld [vmem:[#allocation2 + $0xf4] sm:$0xf0] }
 0x124   : > { %v5566_v40 = vld [vmem:[#allocation4 + $0x8] sm:$0xf0]  ;;  %v4041_v42 = vld [vmem:[#allocation4 + $0xc] sm:$0xf0] }
 0x125   : > { %v4040_v43 = vor.u32 %v5566_v40, %v4039_v39  ;;  %v4044_v44 = vor.u32 %v5565_v41, %v4041_v42  ;;  %v4422_v39 = vor.u32 %v5660_v36, %v4421_v35  ;;  %v5629_v40 = vld [vmem:[#allocation2 + $0x54] sm:$0xf]  ;;  %v4303_v41 = vld [vmem:[#allocation2 + $0x58] sm:$0xf0]  ;;  %1479 = vmatpush.bf16.msra.mxu0 %v4386_v17  ;;  %v4439_v35 = vld [vmem:[#allocation2 + $0x168] sm:$0xf0] }
 0x126   : > { %v4306_v42 = vor.u32 %v5629_v40, %v4303_v41  ;;  %v4442_v36 = vor.u32 %v5663_v34, %v4439_v35  ;;  %v5621_v40 = vld [vmem:[#allocation2 + $0x14] sm:$0xf] }
 0x127   : > { %1001 = vmatmul.bf16.vlgmr.msrb.gmra.mxu2 %v4040_v43  ;;  %1015 = vmatmul.bf16.vlgmr.msrb.gmra.mxu3 %v4044_v44 }
 0x128   : > { %1043 = vmatmul.bf16.vlgmr.msra.gmra.mxu1 %v4040_v43  ;;  %1451 = vmatpush.bf16.msrb.mxu2 %v4446_v1  ;;  %v4405_v1 = vld [vmem:[#allocation2 + $0x120] sm:$0xf] }
 0x129   : > { %1465 = vmatpush.bf16.msrb.mxu3 %v4322_v15  ;;  %v4406_v4 = vor.u32 %v5656_v2, %v4405_v1  ;;  %v4455_v2 = vld [vmem:[%s6385_s10 + $0x18] sm:$0xf] }
 0x12c   : > { %1452 = vmatpush.bf16.msrb.mxu2 %v4438_v12  ;;  %v4290_v12 = vor.u32 %v5625_v7, %v4287_v8  ;;  %v5641_v8 = vld [vmem:[#allocation2 + $0xb4] sm:$0xf] }
 0x12d   : > { %1466 = vmatpush.bf16.msrb.mxu3 %v4314_v27  ;;  %v4279_v27 = vld [vmem:[#allocation2 + $0x28] sm:$0xf0] }
 0x130   : > { %1453 = vmatpush.bf16.msrb.mxu2 %v4430_v24  ;;  %v5623_v24 = vld [vmem:[#allocation2 + $0x24] sm:$0xf] }
 0x131   : > { %1467 = vmatpush.bf16.msrb.mxu3 %v4306_v42  ;;  %v4282_v33 = vor.u32 %v5623_v24, %v4279_v27 }
 0x134   : > { %1454 = vmatpush.bf16.msrb.mxu2 %v4422_v39  ;;  %v5652_v39 = vld [vmem:[#allocation2 + $0x104] sm:$0xf0] }
 0x135   : > { %1468 = vmatpush.bf16.msrb.mxu3 %v4298_v58 }
 0x137   : > { %1057 = vmatmul.bf16.vlgmr.msra.gmra.mxu2 %v4044_v44  ;;  %1071 = vmatmul.bf16.vlgmr.msra.gmra.mxu3 %v4048_v18  ;;  %v4349_v18 = vld [vmem:[#allocation2 + $0xb0] sm:$0xf] }
 0x138   : > { %v4350_v23 = vor.u32 %v5642_v20, %v4349_v18  ;;  %1455 = vmatpush.bf16.msrb.mxu2 %v4414_v54  ;;  %v4447_v18 = vld [vmem:[#allocation2 + $0x178] sm:$0xf0] }
 0x139   : > { %1469 = vmatpush.bf16.msrb.mxu3 %v4290_v12  ;;  %v4450_v21 = vor.u32 %v5665_v14, %v4447_v18  ;;  %v5657_v12 = vld [vmem:[#allocation2 + $0x134] sm:$0xf] }
 0x13a   : > { %1441 = vmatpush.bf16.msrb.mxu1 %v4350_v23  ;;  %v5654_v23 = vld [vmem:[#allocation2 + $0x114] sm:$0xf0] }
 0x13b   : > { %v4398_v26 = vor.u32 %v5654_v23, %v4397_v22  ;;  %v5655_v22 = vld [vmem:[#allocation2 + $0x124] sm:$0xf] }
 0x13c   : > { %1456 = vmatpush.bf16.msrb.mxu2 %v4406_v4  ;;  %v4456_v4 = vld [vmem:[%s6385_s10 + $0x1c] sm:$0xf] }
 0x13d   : > { %1470 = vmatpush.bf16.msrb.mxu3 %v4282_v33  ;;  %v4399_v33 = vld [vmem:[#allocation2 + $0x118] sm:$0xf0] }
 0x13e   : > { %1442 = vmatpush.bf16.msrb.mxu1 %v4342_v38  ;;  %v4389_v38 = vld [vmem:[#allocation2 + $0x100] sm:$0xf] }
 0x13f   : > { %v4390_v42 = vor.u32 %v5652_v39, %v4389_v38  ;;  %v5635_v38 = vld [vmem:[#allocation2 + $0x84] sm:$0xf]  ;;  %v4327_v39 = vld [vmem:[#allocation2 + $0x88] sm:$0xf0] }
 0x140   : > { %1457 = vmatpush.bf16.msrb.mxu2 %v4398_v26 }
 0x142   : > { %1443 = vmatpush.bf16.msrb.mxu1 %v4334_v53 }
 0x144   : > { %1458 = vmatpush.bf16.msrb.mxu2 %v4390_v42  ;;  %v4391_v42 = vld [vmem:[#allocation2 + $0x108] sm:$0xf0] }
 0x146   : > { %1444 = vmatpush.bf16.msrb.mxu1 %v4326_v3 }
 0x14a   : > { %1493 = vmatpush.bf16.msra.mxu1 %v4450_v21  ;;  %v4343_v21 = vld [vmem:[#allocation2 + $0xa8] sm:$0xf0] }
 0x14e   : > { %1494 = vmatpush.bf16.msra.mxu1 %v4442_v36 }
 0x152   : > { %1495 = vmatpush.bf16.msra.mxu1 %v4434_v52 }
 0x17d   : > { %v1030_v32 = vpop.f32.mrf.mxu0 }
 0x185   : > { %v1032_v11 = vpop.f32.mrf.mxu0 }
 0x1a5   : > { %v1044_v46 = vpop.f32.mrf.mxu1 }
 0x1aa   : > { %v1002_v43 = vpop.f32.mrf.mxu2  ;;  %v1016_v44 = vpop.f32.mrf.mxu3 }
 0x1ab   : > { %v1017_v48 = vadd.f32 %v1016_v44, %v1002_v43  ;;  %v4271_v43 = vld [vmem:[#allocation2 + $0x18] sm:$0xf0]  ;;  %v5645_v44 = vld [vmem:[#allocation2 + $0xd4] sm:$0xf] }
 0x1ac   : > { %v4274_v47 = vor.u32 %v5621_v40, %v4271_v43 }
 0x1ad   : > { %v1031_v57 = vadd.f32 %v1030_v32, %v1017_v48  ;;  %v4370_v48 = vor.u32 %v5645_v44, %v4367_v45 }
 0x1ae   : > { %1471 = vmatpush.bf16.msrb.mxu3 %v4274_v47 }
 0x1af   : > { %v1081_v62 = vsub.f32 %v1031_v57, %v6410_v37 }
 0x1b1   : > { %v1085_v10 = vmul.f32 0.33333334, %v1081_v62  ;;  %v5659_v62 = vld [vmem:[#allocation2 + $0x144] sm:$0xf] }
 0x1b2   : > { %v1004_v15 = vpop.f32.mrf.mxu2  ;;  %v1018_v16 = vpop.f32.mrf.mxu3  ;;  %v4426_v3 = vor.u32 %v5659_v62, %v4423_v0  ;;  %1472 = vmatpush.bf16.msrb.mxu3 %v4266_v59  ;;  %v4591_v59 = vld [vmem:[#allocation2 + $0xf0] sm:$0xf]  ;;  %v5683_v0 = vld [vmem:[#allocation2 + $0x64] sm:$0xf0] }
 0x1b3   : > { %v6432_v19 = vadd.f32 %v1085_v10, %v6410_v37  ;;  %v1019_v20 = vadd.f32 %v1018_v16, %v1004_v15  ;;  %v4378_v37 = vor.u32 %v5647_v28, %v4375_v29  ;;  %v5618_v10 = vld [vmem:[#allocation4 + $0x10] sm:$0xf0]  ;;  %v4415_v15 = vld [vmem:[#allocation2 + $0x138] sm:$0xf0]  ;;  %v1046_v16 = vpop.f32.mrf.mxu1  ;;  %v4410_v29 = vor.u32 %v5655_v22, %v4407_v25  ;;  %v4495_v22 = vld [vmem:[#allocation2 + $0x30] sm:$0xf] }
 0x1b4   : > { %1544 = vst [vmem:[#allocation4 + $0x14] sm:$0xf] %v4456_v4  ;;  %1496 = vmatpush.bf16.msra.mxu1 %v4426_v3  ;;  %v4418_v18 = vor.u32 %v5657_v12, %v4415_v15  ;;  %v4592_v62 = vor.u32 %v5701_v61, %v4591_v59  ;;  %v5699_v3 = vld [vmem:[#allocation2 + $0xe4] sm:$0xf0]  ;;  %v4503_v12 = vld [vmem:[#allocation2 + $0x40] sm:$0xf] }
 0x1b5   : > { %4241 = vst [vmem:[%s6392_s27 + $0x20] sm:$0xff] %v6432_v19  ;;  %v1033_v32 = vadd.f32 %v1032_v11, %v1019_v20  ;;  %1480 = vmatpush.bf16.msra.mxu0 %v4378_v37  ;;  %v4354_v11 = vor.u32 %v5641_v8, %v4351_v9  ;;  %v5639_v20 = vld [vmem:[#allocation2 + $0xa4] sm:$0xf]  ;;  %6020 = vtanh.f32 %v6432_v19  ;;  %v4575_v8 = vld [vmem:[#allocation2 + $0xd0] sm:$0xf] }
 0x1b6   : > { %v4346_v27 = vor.u32 %v5639_v20, %v4343_v21  ;;  %1867 = vmatpush.bf16.msra.mxu3 %v4592_v62  ;;  %v4559_v25 = vld [vmem:[#allocation2 + $0xb0] sm:$0xf]  ;;  %v4505_v59 = vld [vmem:[#allocation2 + $0x48] sm:$0xf0]  ;;  %v4471_v62 = vld [vmem:[#allocation2] sm:$0xf] }
 0x1b7   : > { %v1083_v41 = vsub.f32 %v1033_v32, %v6414_v5  ;;  %v4335_v32 = vld [vmem:[#allocation2 + $0x98] sm:$0xf0] }
 0x1b8   : > { %1497 = vmatpush.bf16.msra.mxu1 %v4418_v18  ;;  %v4338_v34 = vor.u32 %v5637_v30, %v4335_v32  ;;  %v4529_v18 = vld [vmem:[#allocation2 + $0x78] sm:$0xf0] }
 0x1b9   : > { %v1087_v51 = vmul.f32 0.33333334, %v1083_v41  ;;  %1481 = vmatpush.bf16.msra.mxu0 %v4370_v48  ;;  %v5651_v41 = vld [vmem:[#allocation2 + $0x104] sm:$0xf] }
 0x1ba   : > { %v1058_v53 = vpop.f32.mrf.mxu2  ;;  %v1072_v54 = vpop.f32.mrf.mxu3  ;;  %v4394_v47 = vor.u32 %v5651_v41, %v4391_v42  ;;  %v5680_v42 = vld [vmem:[#allocation2 + $0x54] sm:$0xf] }
 0x1bb   : > { %v6440_v57 = vadd.f32 %v1087_v51, %v6414_v5  ;;  %v1059_v58 = vadd.f32 %v1058_v53, %v1044_v46  ;;  %v4257_v5 = vld [vmem:[#allocation4 + $0x8] sm:$0xf]  ;;  %v6021_v40 = vpop.eup %6020  ;;  %v4330_v46 = vor.u32 %v5635_v38, %v4327_v39  ;;  %v4655_v38 = vld [vmem:[#allocation2 + $0x170] sm:$0xf]  ;;  %v5717_v39 = vld [vmem:[#allocation2 + $0x174] sm:$0xf0] }
 0x1bc   : > { %1543 = vst [vmem:[#allocation4 + $0x8] sm:$0xf] %v4455_v2  ;;  %v6447_v14 = vor.u32 %v5618_v10, %v4257_v5  ;;  %1498 = vmatpush.bf16.msra.mxu1 %v4410_v29  ;;  %v5681_v5 = vld [vmem:[#allocation2 + $0x54] sm:$0xf0]  ;;  %v4521_v29 = vld [vmem:[#allocation2 + $0x68] sm:$0xf0]  ;;  %v4656_v41 = vor.u32 %v5717_v39, %v4655_v38 }
 0x1bd   : > { %4243 = vst [vmem:[%s6392_s27 + $0x30] sm:$0xff] %v6440_v57  ;;  %v1073_v1 = vadd.f32 %v1072_v54, %v1059_v58  ;;  %1482 = vmatpush.bf16.msra.mxu0 %v4362_v63  ;;  %v5685_v58 = vld [vmem:[#allocation2 + $0x74] sm:$0xf0]  ;;  %v4519_v63 = vld [vmem:[#allocation2 + $0x60] sm:$0xf] }
 0x1be   : > { %1459 = vmatmul.bf16.vlgmr.msrb.gmra.mxu2 %v6447_v14  ;;  %v4528_v60 = vor.u32 %v5685_v58, %v4527_v56  ;;  %v4520_v2 = vor.u32 %v5683_v0, %v4519_v63  ;;  %v5697_v10 = vld [vmem:[#allocation2 + $0xd4] sm:$0xf0]  ;;  %v5678_v58 = vld [vmem:[#allocation2 + $0x44] sm:$0xf]  ;;  %v5671_v63 = vld [vmem:[#allocation2 + $0x4] sm:$0xf0] }
 0x1bf   : > { %v1082_v7 = vsub.f32 %v1073_v1, %v6418_v6  ;;  %v4583_v1 = vld [vmem:[#allocation2 + $0xe0] sm:$0xf]  ;;  %v4508_v61 = vor.u32 %v5678_v58, %v4505_v59  ;;  %v4623_v38 = vld [vmem:[#allocation2 + $0x130] sm:$0xf]  ;;  %v5709_v39 = vld [vmem:[#allocation2 + $0x134] sm:$0xf0] }
 0x1c0   : > { %1853 = vmatpush.bf16.msra.mxu2 %v4528_v60  ;;  %v4584_v4 = vor.u32 %v5699_v3, %v4583_v1  ;;  %v4535_v0 = vld [vmem:[#allocation2 + $0x80] sm:$0xf]  ;;  %v5687_v3 = vld [vmem:[#allocation2 + $0x84] sm:$0xf0] }
 0x1c1   : > { %v1086_v13 = vmul.f32 0.33333334, %v1082_v7  ;;  %1483 = vmatpush.bf16.msra.mxu0 %v4354_v11  ;;  %v4511_v7 = vld [vmem:[#allocation2 + $0x50] sm:$0xf]  ;;  %v4576_v11 = vor.u32 %v5697_v10, %v4575_v8  ;;  %v4497_v10 = vld [vmem:[#allocation2 + $0x38] sm:$0xf0] }
 0x1c2   : > { %v1060_v17 = vpop.f32.mrf.mxu2  ;;  %v1074_v26 = vpop.f32.mrf.mxu3  ;;  %1868 = vmatpush.bf16.msra.mxu3 %v4584_v4  ;;  %v4512_v9 = vor.u32 %v5681_v5, %v4511_v7  ;;  %v4639_v4 = vld [vmem:[#allocation2 + $0x150] sm:$0xf]  ;;  %v5713_v7 = vld [vmem:[#allocation2 + $0x154] sm:$0xf0]  ;;  %v4536_v5 = vor.u32 %v5687_v3, %v4535_v0  ;;  %v4633_v3 = vld [vmem:[#allocation2 + $0x148] sm:$0xf0] }
 0x1c3   : > { %v6450_v23 = vadd.f32 %v1086_v13, %v6418_v6  ;;  %v1061_v24 = vadd.f32 %v1060_v17, %v1046_v16  ;;  %v5653_v6 = vld [vmem:[#allocation2 + $0x114] sm:$0xf]  ;;  %v5679_v13 = vld [vmem:[#allocation2 + $0x44] sm:$0xf0]  ;;  %v4640_v8 = vor.u32 %v5713_v7, %v4639_v4 }
 0x1c4   : > { %v4402_v36 = vor.u32 %v5653_v6, %v4399_v33  ;;  %1854 = vmatpush.bf16.msra.mxu2 %v4520_v2  ;;  %v4504_v15 = vor.u32 %v5679_v13, %v4503_v12  ;;  %v5695_v16 = vld [vmem:[#allocation2 + $0xc4] sm:$0xf0]  ;;  %v5684_v17 = vld [vmem:[#allocation2 + $0x74] sm:$0xf]  ;;  %v4487_v6 = vld [vmem:[#allocation2 + $0x20] sm:$0xf]  ;;  %v4472_v2 = vor.u32 %v5671_v63, %v4471_v62 }
 0x1c5   : > { %6022 = vtanh.f32 %v6450_v23  ;;  %4242 = vst [vmem:[%s6392_s27 + $0x28] sm:$0xff] %v6450_v23  ;;  %v1075_v28 = vadd.f32 %v1074_v26, %v1061_v24  ;;  %1484 = vmatpush.bf16.msra.mxu0 %v4346_v27  ;;  %v4532_v21 = vor.u32 %v5684_v17, %v4529_v18  ;;  %v5677_v24 = vld [vmem:[#allocation2 + $0x34] sm:$0xf0]  ;;  %v5675_v33 = vld [vmem:[#allocation2 + $0x24] sm:$0xf0] }
 0x1c6   : > { %6024 = vtanh.f32 %v6440_v57  ;;  %1499 = vmatpush.bf16.msra.mxu1 %v4402_v36  ;;  %1869 = vmatpush.bf16.msra.mxu3 %v4576_v11  ;;  %v4496_v26 = vor.u32 %v5677_v24, %v4495_v22  ;;  %v5693_v27 = vld [vmem:[#allocation2 + $0xb4] sm:$0xf0]  ;;  %v5691_v36 = vld [vmem:[#allocation2 + $0xa4] sm:$0xf0]  ;;  %v5700_v11 = vld [vmem:[#allocation2 + $0xf4] sm:$0xf] }
 0x1c7   : > { %v1084_v37 = vsub.f32 %v1075_v28, %v6424_v31  ;;  %v5682_v28 = vld [vmem:[#allocation2 + $0x64] sm:$0xf]  ;;  %v4560_v30 = vor.u32 %v5693_v27, %v4559_v25  ;;  %v5711_v27 = vld [vmem:[#allocation2 + $0x144] sm:$0xf0]  ;;  %v4569_v62 = vld [vmem:[#allocation2 + $0xc8] sm:$0xf0] }
 0x1c8   : > { %1855 = vmatpush.bf16.msra.mxu2 %v4512_v9  ;;  %v4524_v32 = vor.u32 %v5682_v28, %v4521_v29  ;;  %v5676_v9 = vld [vmem:[#allocation2 + $0x34] sm:$0xf]  ;;  %v5674_v28 = vld [vmem:[#allocation2 + $0x24] sm:$0xf] }
 0x1c9   : > { %v1088_v35 = vmul.f32 0.33333334, %v1084_v37  ;;  %1485 = vmatpush.bf16.msra.mxu0 %v4338_v34  ;;  %v4551_v37 = vld [vmem:[#allocation2 + $0xa0] sm:$0xf] }
 0x1ca   : > { %1500 = vmatpush.bf16.msra.mxu1 %v4394_v47 }
 0x1cb   : > { %v6023_v43 = vpop.eup %6022  ;;  %v6459_v44 = vadd.f32 %v1088_v35, %v6424_v31  ;;  %v4488_v35 = vor.u32 %v5675_v33, %v4487_v6  ;;  %v4585_v6 = vld [vmem:[#allocation2 + $0xe8] sm:$0xf0] }
 0x1cc   : > { %v1101_v45 = vpack.c.bf16 %v6023_v43, %v6021_v40  ;;  %v6025_v48 = vpop.eup %6024  ;;  %1856 = vmatpush.bf16.msra.mxu2 %v4504_v15  ;;  %v4552_v40 = vor.u32 %v5691_v36, %v4551_v37  ;;  %v4513_v43 = vld [vmem:[#allocation2 + $0x58] sm:$0xf0] }
 0x1cd   : > { %6026 = vtanh.f32 %v6459_v44  ;;  %4244 = vst [vmem:[%s6392_s27 + $0x38] sm:$0xff] %v6459_v44  ;;  %1486 = vmatpush.bf16.msra.mxu0 %v4330_v46  ;;  %v4593_v15 = vld [vmem:[#allocation2 + $0xf8] sm:$0xf0] }
 0x1ce   : > { %1103 = vst [vmem:[#allocation4] sm:$0xff] %v1101_v45  ;;  %v4516_v45 = vor.u32 %v5680_v42, %v4513_v43  ;;  %v4624_v42 = vor.u32 %v5709_v39, %v4623_v38  ;;  %v4481_v43 = vld [vmem:[#allocation2 + $0x18] sm:$0xf0]  ;;  %v5688_v39 = vld [vmem:[#allocation2 + $0x94] sm:$0xf] }
 0x1d0   : > { %1857 = vmatpush.bf16.msra.mxu2 %v4496_v26  ;;  %v4631_v26 = vld [vmem:[#allocation2 + $0x140] sm:$0xf] }
 0x1d1   : > { %v4632_v29 = vor.u32 %v5711_v27, %v4631_v26  ;;  %v5690_v26 = vld [vmem:[#allocation2 + $0xa4] sm:$0xf]  ;;  %v4553_v27 = vld [vmem:[#allocation2 + $0xa8] sm:$0xf0] }
 0x1d3   : > { %v6027_v49 = vpop.eup %6026 }
 0x1d4   : > { %v1102_v50 = vpack.c.bf16 %v6027_v49, %v6025_v48  ;;  %1858 = vmatpush.bf16.msra.mxu2 %v4488_v35  ;;  %v4479_v48 = vld [vmem:[#allocation2 + $0x10] sm:$0xf]  ;;  %v5673_v49 = vld [vmem:[#allocation2 + $0x14] sm:$0xf0]  ;;  %v5714_v35 = vld [vmem:[#allocation2 + $0x164] sm:$0xf] }
 0x1d5   : > { %v4249_v31 = vld [vmem:[#allocation4] sm:$0xf]  ;;  %v5616_v52 = vld [vmem:[#allocation4 + $0x4] sm:$0xf] }
 0x1d6   : > { %1104 = vst [vmem:[#allocation4 + $0xc] sm:$0xff] %v1102_v50  ;;  %v4543_v50 = vld [vmem:[#allocation2 + $0x90] sm:$0xf] }
 0x1dd   : > { %v5617_v51 = vld [vmem:[#allocation4 + $0x8] sm:$0xf0]  ;;  %v4251_v53 = vld [vmem:[#allocation4 + $0xc] sm:$0xf0] }
 0x1de   : > { %v4250_v54 = vor.u32 %v5617_v51, %v4249_v31  ;;  %v4254_v55 = vor.u32 %v5616_v52, %v4251_v53  ;;  %v4480_v51 = vor.u32 %v5673_v49, %v4479_v48  ;;  %v5689_v52 = vld [vmem:[#allocation2 + $0x94] sm:$0xf0]  ;;  %v4647_v53 = vld [vmem:[#allocation2 + $0x160] sm:$0xf] }
 0x1e0   : > { %1431 = vmatmul.bf16.vlgmr.msrb.gmra.mxu0 %v4250_v54  ;;  %1445 = vmatmul.bf16.vlgmr.msrb.gmra.mxu1 %v4254_v55 }
 0x1e1   : > { %1473 = vmatmul.bf16.vlgmr.msrb.gmra.mxu3 %v4250_v54  ;;  %1895 = vmatpush.bf16.msrb.mxu1 %v4532_v21  ;;  %v5715_v54 = vld [vmem:[#allocation2 + $0x164] sm:$0xf0]  ;;  %v4657_v21 = vld [vmem:[#allocation2 + $0x178] sm:$0xf0] }
 0x1e2   : > { %1881 = vmatpush.bf16.msrb.mxu0 %v4656_v41  ;;  %v4648_v56 = vor.u32 %v5715_v54, %v4647_v53  ;;  %1859 = vmatpush.bf16.msra.mxu2 %v4480_v51  ;;  %v4615_v51 = vld [vmem:[#allocation2 + $0x120] sm:$0xf]  ;;  %v5707_v54 = vld [vmem:[#allocation2 + $0x124] sm:$0xf0] }
 0x1e3   : > { %v4616_v59 = vor.u32 %v5707_v54, %v4615_v51  ;;  %v4601_v51 = vld [vmem:[#allocation2 + $0x108] sm:$0xf0] }
 0x1e5   : > { %1896 = vmatpush.bf16.msrb.mxu1 %v4524_v32  ;;  %v5698_v32 = vld [vmem:[#allocation2 + $0xe4] sm:$0xf] }
 0x1e6   : > { %1882 = vmatpush.bf16.msrb.mxu0 %v4648_v56  ;;  %1860 = vmatpush.bf16.msra.mxu2 %v4472_v2  ;;  %v5710_v2 = vld [vmem:[#allocation2 + $0x144] sm:$0xf] }
 0x1e9   : > { %1897 = vmatpush.bf16.msrb.mxu1 %v4516_v45  ;;  %v5696_v45 = vld [vmem:[#allocation2 + $0xd4] sm:$0xf] }
 0x1ea   : > { %1883 = vmatpush.bf16.msrb.mxu0 %v4640_v8 }
 0x1ed   : > { %1898 = vmatpush.bf16.msrb.mxu1 %v4508_v61  ;;  %v5694_v61 = vld [vmem:[#allocation2 + $0xc4] sm:$0xf] }
 0x1ee   : > { %1884 = vmatpush.bf16.msrb.mxu0 %v4632_v29  ;;  %v4572_v4 = vor.u32 %v5694_v61, %v4569_v62 }
 0x1f0   : > { %1487 = vmatmul.bf16.vlgmr.msra.gmra.mxu0 %v4254_v55  ;;  %1501 = vmatmul.bf16.vlgmr.msra.gmra.mxu1 %v6447_v14  ;;  %v4567_v14 = vld [vmem:[#allocation2 + $0xc0] sm:$0xf]  ;;  %v4544_v55 = vor.u32 %v5689_v52, %v4543_v50  ;;  %v5712_v50 = vld [vmem:[#allocation2 + $0x154] sm:$0xf] }
 0x1f1   : > { %v4568_v20 = vor.u32 %v5695_v16, %v4567_v14  ;;  %v4500_v14 = vor.u32 %v5676_v9, %v4497_v10  ;;  %v5716_v16 = vld [vmem:[#allocation2 + $0x174] sm:$0xf]  ;;  %v4607_v9 = vld [vmem:[#allocation2 + $0x110] sm:$0xf]  ;;  %v5705_v10 = vld [vmem:[#allocation2 + $0x114] sm:$0xf0] }
 0x1f2   : > { %v4660_v25 = vor.u32 %v5716_v16, %v4657_v21  ;;  %1885 = vmatpush.bf16.msrb.mxu0 %v4624_v42  ;;  %v4609_v42 = vld [vmem:[#allocation2 + $0x118] sm:$0xf0] }
 0x1f3   : > { %1870 = vmatpush.bf16.msra.mxu3 %v4568_v20  ;;  %v4596_v20 = vor.u32 %v5700_v11, %v4593_v15  ;;  %1899 = vmatpush.bf16.msrb.mxu1 %v4500_v14  ;;  %v4608_v11 = vor.u32 %v5705_v10, %v4607_v9  ;;  %v4625_v14 = vld [vmem:[#allocation2 + $0x138] sm:$0xf0]  ;;  %v4729_v10 = vld [vmem:[#allocation2 + $0x60] sm:$0xf] }
 0x1f5   : > { %1909 = vmatpush.bf16.msrb.mxu2 %v4596_v20  ;;  %v5703_v20 = vld [vmem:[#allocation2 + $0x104] sm:$0xf0] }
 0x1f6   : > { %1886 = vmatpush.bf16.msrb.mxu0 %v4616_v59 }
 0x1f7   : > { %1871 = vmatpush.bf16.msra.mxu3 %v4560_v30  ;;  %v4489_v30 = vld [vmem:[#allocation2 + $0x28] sm:$0xf0] }
 0x1f8   : > { %v4492_v37 = vor.u32 %v5674_v28, %v4489_v30  ;;  %v5706_v28 = vld [vmem:[#allocation2 + $0x124] sm:$0xf] }
 0x1fa   : > { %1900 = vmatpush.bf16.msrb.mxu1 %v4492_v37  ;;  %1887 = vmatpush.bf16.msrb.mxu0 %v4608_v11  ;;  %v4793_v11 = vld [vmem:[#allocation2 + $0xe0] sm:$0xf] }
 0x1fb   : > { %1872 = vmatpush.bf16.msra.mxu3 %v4552_v40  ;;  %v5672_v40 = vld [vmem:[#allocation2 + $0x14] sm:$0xf] }
 0x1fc   : > { %v4484_v48 = vor.u32 %v5672_v40, %v4481_v43  ;;  %v4545_v40 = vld [vmem:[#allocation2 + $0x98] sm:$0xf0] }
 0x1fe   : > { %1901 = vmatpush.bf16.msrb.mxu1 %v4484_v48  ;;  %v5686_v48 = vld [vmem:[#allocation2 + $0x84] sm:$0xf] }
 0x1ff   : > { %1873 = vmatpush.bf16.msra.mxu3 %v4544_v55  ;;  %v5670_v55 = vld [vmem:[#allocation2 + $0x4] sm:$0xf] }
 0x203   : > { %1874 = vmatpush.bf16.msra.mxu3 %v4536_v5  ;;  %v4636_v5 = vor.u32 %v5710_v2, %v4633_v3  ;;  %v4737_v3 = vld [vmem:[#allocation2 + $0x70] sm:$0xf] }
 0x207   : > { %1923 = vmatpush.bf16.msrb.mxu3 %v4660_v25 }
 0x241   : > { %v1460_v34 = vpop.f32.mrf.mxu2 }
 0x249   : > { %v1462_v13 = vpop.f32.mrf.mxu2 }
 0x25d   : > { %v1432_v46 = vpop.f32.mrf.mxu0  ;;  %v1446_v47 = vpop.f32.mrf.mxu1 }
 0x25e   : > { %v1447_v31 = vadd.f32 %v1446_v47, %v1432_v46  ;;  %v4577_v46 = vld [vmem:[#allocation2 + $0xd8] sm:$0xf0] }
 0x25f   : > { %v4580_v49 = vor.u32 %v5696_v45, %v4577_v46  ;;  %v4548_v45 = vor.u32 %v5688_v39, %v4545_v40  ;;  %v5728_v39 = vld [vmem:[#allocation2 + $0x34] sm:$0xf0]  ;;  %v4769_v40 = vld [vmem:[#allocation2 + $0xb0] sm:$0xf] }
 0x260   : > { %v1461_v60 = vadd.f32 %v1460_v34, %v1447_v31  ;;  %v4588_v34 = vor.u32 %v5698_v32, %v4585_v6  ;;  %v4641_v31 = vld [vmem:[#allocation2 + $0x158] sm:$0xf0]  ;;  %v4617_v32 = vld [vmem:[#allocation2 + $0x128] sm:$0xf0]  ;;  %v4467_v6 = vld [vmem:[#allocation4 + $0x8] sm:$0xf] }
 0x261   : > { %v4644_v53 = vor.u32 %v5712_v50, %v4641_v31  ;;  %v4620_v38 = vor.u32 %v5706_v28, %v4617_v32  ;;  %v5702_v31 = vld [vmem:[#allocation2 + $0x104] sm:$0xf]  ;;  %v5730_v28 = vld [vmem:[#allocation2 + $0x44] sm:$0xf0] }
 0x262   : > { %v1511_v1 = vsub.f32 %v1461_v60, %v6432_v19  ;;  %1910 = vmatpush.bf16.msrb.mxu2 %v4588_v34  ;;  %v4473_v60 = vld [vmem:[#allocation2 + $0x8] sm:$0xf0]  ;;  %v4556_v34 = vor.u32 %v5690_v26, %v4553_v27  ;;  %v4713_v27 = vld [vmem:[#allocation2 + $0x40] sm:$0xf] }
 0x263   : > { %v4714_v32 = vor.u32 %v5730_v28, %v4713_v27  ;;  %v5758_v27 = vld [vmem:[#allocation2 + $0x124] sm:$0xf0] }
 0x264   : > { %v1515_v12 = vmul.f32 0.33333334, %v1511_v1  ;;  %v1474_v47 = vpop.f32.mrf.mxu3  ;;  %v4476_v1 = vor.u32 %v5670_v55, %v4473_v60 }
 0x265   : > { %v1434_v17 = vpop.f32.mrf.mxu0  ;;  %v1448_v18 = vpop.f32.mrf.mxu1 }
 0x266   : > { %v6468_v22 = vadd.f32 %v1515_v12, %v6432_v19  ;;  %v1449_v24 = vadd.f32 %v1448_v18, %v1434_v17  ;;  %v4649_v19 = vld [vmem:[#allocation2 + $0x168] sm:$0xf0]  ;;  %1911 = vmatpush.bf16.msrb.mxu2 %v4580_v49  ;;  %1902 = vmatpush.bf16.msrb.mxu1 %v4476_v1  ;;  %v4561_v12 = vld [vmem:[#allocation2 + $0xb8] sm:$0xf0]  ;;  %v4599_v18 = vld [vmem:[#allocation2 + $0x100] sm:$0xf] }
 0x267   : > { %v4652_v36 = vor.u32 %v5714_v35, %v4649_v19  ;;  %v4600_v25 = vor.u32 %v5703_v20, %v4599_v18  ;;  %v4665_v35 = vld [vmem:[%s6385_s10 + $0x20] sm:$0xf]  ;;  %v4666_v19 = vld [vmem:[%s6385_s10 + $0x24] sm:$0xf]  ;;  %v4537_v49 = vld [vmem:[#allocation2 + $0x88] sm:$0xf0] }
 0x268   : > { %4451 = vst [vmem:[%s6392_s27 + $0x40] sm:$0xff] %v6468_v22  ;;  %v1463_v33 = vadd.f32 %v1462_v13, %v1449_v24  ;;  %v5708_v13 = vld [vmem:[#allocation2 + $0x134] sm:$0xf]  ;;  %6028 = vtanh.f32 %v6468_v22  ;;  %v4540_v55 = vor.u32 %v5686_v48, %v4537_v49  ;;  %v5748_v20 = vld [vmem:[#allocation2 + $0xd4] sm:$0xf0] }
 0x269   : > { %1924 = vmatpush.bf16.msrb.mxu3 %v4652_v36  ;;  %v4628_v17 = vor.u32 %v5708_v13, %v4625_v14  ;;  %1888 = vmatpush.bf16.msrb.mxu0 %v4600_v25  ;;  %1973 = vst [vmem:[#allocation4 + $0x8] sm:$0xf] %v4665_v35  ;;  %v5750_v13 = vld [vmem:[#allocation2 + $0xe4] sm:$0xf0]  ;;  %v5733_v48 = vld [vmem:[#allocation2 + $0x64] sm:$0xf] }
 0x26a   : > { %v1513_v41 = vsub.f32 %v1463_v33, %v6440_v57  ;;  %1912 = vmatpush.bf16.msrb.mxu2 %v4572_v4  ;;  %v5669_v33 = vld [vmem:[#allocation4 + $0x10] sm:$0xf0]  ;;  %v5736_v4 = vld [vmem:[#allocation2 + $0x74] sm:$0xf0]  ;;  %v4794_v14 = vor.u32 %v5750_v13, %v4793_v11  ;;  %v4731_v49 = vld [vmem:[#allocation2 + $0x68] sm:$0xf0] }
 0x26b   : > { %1974 = vst [vmem:[#allocation4 + $0x14] sm:$0xf] %v4666_v19  ;;  %v5735_v19 = vld [vmem:[#allocation2 + $0x74] sm:$0xf]  ;;  %v5729_v13 = vld [vmem:[#allocation2 + $0x44] sm:$0xf] }
 0x26c   : > { %v1517_v52 = vmul.f32 0.33333334, %v1513_v41  ;;  %v1476_v21 = vpop.f32.mrf.mxu3  ;;  %v5704_v41 = vld [vmem:[#allocation2 + $0x114] sm:$0xf] }
 0x26d   : > { %v1488_v56 = vpop.f32.mrf.mxu0  ;;  %v1502_v58 = vpop.f32.mrf.mxu1  ;;  %1925 = vmatpush.bf16.msrb.mxu3 %v4644_v53 }
 0x26e   : > { %v6474_v63 = vadd.f32 %v1517_v52, %v6440_v57  ;;  %v1489_v0 = vadd.f32 %v1488_v56, %v1474_v47  ;;  %v5692_v57 = vld [vmem:[#allocation2 + $0xb4] sm:$0xf]  ;;  %v4612_v47 = vor.u32 %v5704_v41, %v4609_v42  ;;  %v6029_v50 = vpop.eup %6028  ;;  %v4604_v56 = vor.u32 %v5702_v31, %v4601_v51  ;;  %v5744_v42 = vld [vmem:[#allocation2 + $0xb4] sm:$0xf0]  ;;  %v4697_v31 = vld [vmem:[#allocation2 + $0x20] sm:$0xf] }
 0x26f   : > { %v4564_v16 = vor.u32 %v5692_v57, %v4561_v12  ;;  %v5734_v57 = vld [vmem:[#allocation2 + $0x64] sm:$0xf0] }
 0x270   : > { %4453 = vst [vmem:[%s6392_s27 + $0x50] sm:$0xff] %v6474_v63  ;;  %v1503_v7 = vadd.f32 %v1502_v58, %v1489_v0  ;;  %v4730_v12 = vor.u32 %v5734_v57, %v4729_v10  ;;  %v5726_v51 = vld [vmem:[#allocation2 + $0x24] sm:$0xf0]  ;;  %v4833_v10 = vld [vmem:[#allocation2 + $0x130] sm:$0xf] }
 0x271   : > { %1926 = vmatpush.bf16.msrb.mxu3 %v4636_v5  ;;  %1913 = vmatpush.bf16.msrb.mxu2 %v4564_v16  ;;  %v4738_v5 = vor.u32 %v5736_v4, %v4737_v3  ;;  %v5732_v16 = vld [vmem:[#allocation2 + $0x54] sm:$0xf0]  ;;  %v4689_v3 = vld [vmem:[#allocation2 + $0x10] sm:$0xf] }
 0x272   : > { %v1512_v8 = vsub.f32 %v1503_v7, %v6450_v23  ;;  %v4801_v7 = vld [vmem:[#allocation2 + $0xf0] sm:$0xf]  ;;  %v5724_v4 = vld [vmem:[#allocation2 + $0x14] sm:$0xf0] }
 0x273   : > { %2283 = vmatpush.bf16.msra.mxu0 %v4738_v5  ;;  %v5760_v57 = vld [vmem:[#allocation2 + $0x134] sm:$0xf0] }
 0x274   : > { %v1516_v15 = vmul.f32 0.33333334, %v1512_v8  ;;  %v5752_v8 = vld [vmem:[#allocation2 + $0xf4] sm:$0xf0] }
 0x275   : > { %v1490_v24 = vpop.f32.mrf.mxu0  ;;  %v1504_v37 = vpop.f32.mrf.mxu1  ;;  %1927 = vmatpush.bf16.msrb.mxu3 %v4628_v17  ;;  %1914 = vmatpush.bf16.msrb.mxu2 %v4556_v34  ;;  %v4802_v9 = vor.u32 %v5752_v8, %v4801_v7  ;;  %v4785_v17 = vld [vmem:[#allocation2 + $0xd0] sm:$0xf]  ;;  %v4690_v8 = vor.u32 %v5724_v4, %v4689_v3 }
 0x276   : > { %v6480_v29 = vadd.f32 %v1516_v15, %v6450_v23  ;;  %v1491_v30 = vadd.f32 %v1490_v24, %v1476_v21  ;;  %v4468_v23 = vor.u32 %v5669_v33, %v4467_v6  ;;  %v4721_v15 = vld [vmem:[#allocation2 + $0x50] sm:$0xf]  ;;  %v5768_v24 = vld [vmem:[#allocation2 + $0x174] sm:$0xf0]  ;;  %v4786_v25 = vor.u32 %v5748_v20, %v4785_v17  ;;  %v5746_v6 = vld [vmem:[#allocation2 + $0xc4] sm:$0xf0] }
 0x277   : > { %2297 = vmatpush.bf16.msra.mxu1 %v4802_v9  ;;  %2284 = vmatpush.bf16.msra.mxu0 %v4730_v12  ;;  %v4722_v18 = vor.u32 %v5732_v16, %v4721_v15  ;;  %v4865_v21 = vld [vmem:[#allocation2 + $0x170] sm:$0xf]  ;;  %v4857_v33 = vld [vmem:[#allocation2 + $0x160] sm:$0xf]  ;;  %v5740_v9 = vld [vmem:[#allocation2 + $0x94] sm:$0xf0]  ;;  %v4834_v12 = vor.u32 %v5760_v57, %v4833_v10 }
 0x278   : > { %6030 = vtanh.f32 %v6480_v29  ;;  %4452 = vst [vmem:[%s6392_s27 + $0x48] sm:$0xff] %v6480_v29  ;;  %v1505_v36 = vadd.f32 %v1504_v37, %v1491_v30  ;;  %1889 = vmatmul.bf16.vlgmr.msrb.gmra.mxu0 %v4468_v23  ;;  %v4866_v26 = vor.u32 %v5768_v24, %v4865_v21  ;;  %v4777_v30 = vld [vmem:[#allocation2 + $0xc0] sm:$0xf]  ;;  %v5766_v37 = vld [vmem:[#allocation2 + $0x164] sm:$0xf0] }
 0x279   : > { %1928 = vmatpush.bf16.msrb.mxu3 %v4620_v38  ;;  %6032 = vtanh.f32 %v6474_v63  ;;  %1915 = vmatpush.bf16.msrb.mxu2 %v4548_v45  ;;  %v4778_v34 = vor.u32 %v5746_v6, %v4777_v30  ;;  %v4858_v35 = vor.u32 %v5766_v37, %v4857_v33  ;;  %v5764_v45 = vld [vmem:[#allocation2 + $0x154] sm:$0xf0]  ;;  %v4753_v7 = vld [vmem:[#allocation2 + $0x90] sm:$0xf]  ;;  %v4681_v17 = vld [vmem:[#allocation2] sm:$0xf] }
 0x27a   : > { %v1514_v43 = vsub.f32 %v1505_v36, %v6459_v44  ;;  %v4739_v36 = vld [vmem:[#allocation2 + $0x78] sm:$0xf0]  ;;  %v4754_v11 = vor.u32 %v5740_v9, %v4753_v7  ;;  %v4745_v20 = vld [vmem:[#allocation2 + $0x80] sm:$0xf]  ;;  %v5751_v33 = vld [vmem:[#allocation2 + $0xf4] sm:$0xf] }
 0x27b   : > { %2298 = vmatpush.bf16.msra.mxu1 %v4794_v14  ;;  %2285 = vmatpush.bf16.msra.mxu0 %v4722_v18  ;;  %v4742_v38 = vor.u32 %v5735_v19, %v4739_v36  ;;  %v4715_v14 = vld [vmem:[#allocation2 + $0x48] sm:$0xf0]  ;;  %v5722_v18 = vld [vmem:[#allocation2 + $0x4] sm:$0xf0]  ;;  %v4707_v6 = vld [vmem:[#allocation2 + $0x38] sm:$0xf0] }
 0x27c   : > { %v1518_v46 = vmul.f32 0.33333334, %v1514_v43  ;;  %v4849_v43 = vld [vmem:[#allocation2 + $0x150] sm:$0xf]  ;;  %v4718_v16 = vor.u32 %v5729_v13, %v4715_v14  ;;  %v4682_v24 = vor.u32 %v5722_v18, %v4681_v17  ;;  %v4803_v19 = vld [vmem:[#allocation2 + $0xf8] sm:$0xf0] }
 0x27d   : > { %1929 = vmatpush.bf16.msrb.mxu3 %v4612_v47  ;;  %1916 = vmatpush.bf16.msrb.mxu2 %v4540_v55  ;;  %v4850_v47 = vor.u32 %v5764_v45, %v4849_v43  ;;  %v4698_v55 = vor.u32 %v5726_v51, %v4697_v31  ;;  %v5767_v36 = vld [vmem:[#allocation2 + $0x174] sm:$0xf]  ;;  %v4817_v45 = vld [vmem:[#allocation2 + $0x110] sm:$0xf]  ;;  %v4795_v31 = vld [vmem:[#allocation2 + $0xe8] sm:$0xf0] }
 0x27e   : > { %v6031_v52 = vpop.eup %6030  ;;  %v6490_v53 = vadd.f32 %v1518_v46, %v6459_v44  ;;  %v4770_v46 = vor.u32 %v5744_v42, %v4769_v40  ;;  %v4867_v40 = vld [vmem:[#allocation2 + $0x178] sm:$0xf0]  ;;  %v5763_v7 = vld [vmem:[#allocation2 + $0x154] sm:$0xf] }
 0x27f   : > { %v1531_v54 = vpack.c.bf16 %v6031_v52, %v6029_v50  ;;  %v6033_v58 = vpop.eup %6032  ;;  %2299 = vmatpush.bf16.msra.mxu1 %v4786_v25  ;;  %2286 = vmatpush.bf16.msra.mxu0 %v4714_v32  ;;  %v4734_v50 = vor.u32 %v5733_v48, %v4731_v49  ;;  %v4761_v52 = vld [vmem:[#allocation2 + $0xa0] sm:$0xf]  ;;  %v5738_v25 = vld [vmem:[#allocation2 + $0x84] sm:$0xf0]  ;;  %v5727_v32 = vld [vmem:[#allocation2 + $0x34] sm:$0xf]  ;;  %v4870_v43 = vor.u32 %v5767_v36, %v4867_v40 }
 0x280   : > { %6034 = vtanh.f32 %v6490_v53  ;;  %4454 = vst [vmem:[%s6392_s27 + $0x58] sm:$0xff] %v6490_v53  ;;  %v4746_v28 = vor.u32 %v5738_v25, %v4745_v20  ;;  %v4699_v49 = vld [vmem:[#allocation2 + $0x28] sm:$0xf0]  ;;  %v5720_v57 = vld [vmem:[#allocation4 + $0x10] sm:$0xf0] }
 0x281   : > { %1533 = vst [vmem:[#allocation4] sm:$0xff] %v1531_v54  ;;  %1930 = vmatpush.bf16.msrb.mxu3 %v4604_v56  ;;  %v5742_v56 = vld [vmem:[#allocation2 + $0xa4] sm:$0xf0]  ;;  %v4683_v20 = vld [vmem:[#allocation2 + $0x8] sm:$0xf0] }
 0x282   : > { %v4779_v25 = vld [vmem:[#allocation2 + $0xc8] sm:$0xf0] }
 0x283   : > { %2300 = vmatpush.bf16.msra.mxu1 %v4778_v34 }
 0x286   : > { %v6035_v59 = vpop.eup %6034 }
 0x287   : > { %v1532_v60 = vpack.c.bf16 %v6035_v59, %v6033_v58  ;;  %2301 = vmatpush.bf16.msra.mxu1 %v4770_v46  ;;  %v4841_v58 = vld [vmem:[#allocation2 + $0x140] sm:$0xf]  ;;  %v5762_v59 = vld [vmem:[#allocation2 + $0x144] sm:$0xf0]  ;;  %v5756_v46 = vld [vmem:[#allocation2 + $0x114] sm:$0xf0] }
 0x288   : > { %v4459_v44 = vld [vmem:[#allocation4] sm:$0xf]  ;;  %v5667_v62 = vld [vmem:[#allocation4 + $0x4] sm:$0xf]  ;;  %v4818_v48 = vor.u32 %v5756_v46, %v4817_v45 }
 0x289   : > { %1534 = vst [vmem:[#allocation4 + $0xc] sm:$0xff] %v1532_v60  ;;  %v4762_v60 = vor.u32 %v5742_v56, %v4761_v52 }
 0x28b   : > { %2302 = vmatpush.bf16.msra.mxu1 %v4762_v60  ;;  %v5723_v60 = vld [vmem:[#allocation2 + $0x14] sm:$0xf] }
 0x28f   : > { %2303 = vmatpush.bf16.msra.mxu1 %v4754_v11  ;;  %v4875_v11 = vld [vmem:[%s6385_s10 + $0x28] sm:$0xf] }
 0x290   : > { %v5668_v61 = vld [vmem:[#allocation4 + $0x8] sm:$0xf0]  ;;  %v4461_v0 = vld [vmem:[#allocation4 + $0xc] sm:$0xf0] }
 0x291   : > { %v4460_v1 = vor.u32 %v5668_v61, %v4459_v44  ;;  %v4464_v2 = vor.u32 %v5667_v62, %v4461_v0  ;;  %v4842_v44 = vor.u32 %v5762_v59, %v4841_v58  ;;  %v5731_v61 = vld [vmem:[#allocation2 + $0x54] sm:$0xf]  ;;  %v4723_v62 = vld [vmem:[#allocation2 + $0x58] sm:$0xf0]  ;;  %v4809_v58 = vld [vmem:[#allocation2 + $0x100] sm:$0xf] }
 0x292   : > { %v4726_v0 = vor.u32 %v5731_v61, %v4723_v62  ;;  %v5754_v59 = vld [vmem:[#allocation2 + $0x104] sm:$0xf0]  ;;  %v4691_v62 = vld [vmem:[#allocation2 + $0x18] sm:$0xf0] }
 0x293   : > { %1861 = vmatmul.bf16.vlgmr.msra.gmra.mxu2 %v4460_v1  ;;  %1875 = vmatmul.bf16.vlgmr.msra.gmra.mxu3 %v4464_v2  ;;  %v4810_v61 = vor.u32 %v5754_v59, %v4809_v58  ;;  %v4694_v3 = vor.u32 %v5723_v60, %v4691_v62  ;;  %v5737_v58 = vld [vmem:[#allocation2 + $0x84] sm:$0xf]  ;;  %v4747_v59 = vld [vmem:[#allocation2 + $0x88] sm:$0xf0] }
 0x294   : > { %1903 = vmatmul.bf16.vlgmr.msrb.gmra.mxu1 %v4460_v1  ;;  %2311 = vmatpush.bf16.msra.mxu2 %v4866_v26  ;;  %v4825_v26 = vld [vmem:[#allocation2 + $0x120] sm:$0xf] }
 0x295   : > { %2325 = vmatpush.bf16.msra.mxu3 %v4742_v38  ;;  %v4826_v30 = vor.u32 %v5758_v27, %v4825_v26  ;;  %2304 = vmatpush.bf16.msra.mxu1 %v4746_v28  ;;  %v5761_v26 = vld [vmem:[#allocation2 + $0x144] sm:$0xf]  ;;  %v4843_v27 = vld [vmem:[#allocation2 + $0x148] sm:$0xf0] }
 0x298   : > { %2312 = vmatpush.bf16.msra.mxu2 %v4858_v35  ;;  %v4710_v35 = vor.u32 %v5727_v32, %v4707_v6  ;;  %v4846_v32 = vor.u32 %v5761_v26, %v4843_v27  ;;  %v5743_v6 = vld [vmem:[#allocation2 + $0xb4] sm:$0xf]  ;;  %v5801_v27 = vld [vmem:[#allocation2 + $0xe4] sm:$0xf0] }
 0x299   : > { %2326 = vmatpush.bf16.msra.mxu3 %v4734_v50  ;;  %v5749_v50 = vld [vmem:[#allocation2 + $0xe4] sm:$0xf]  ;;  %2353 = vmatpush.bf16.msrb.mxu1 %v4870_v43  ;;  %v4827_v43 = vld [vmem:[#allocation2 + $0x128] sm:$0xf0] }
 0x29c   : > { %2313 = vmatpush.bf16.msra.mxu2 %v4850_v47  ;;  %v5725_v47 = vld [vmem:[#allocation2 + $0x24] sm:$0xf] }
 0x29d   : > { %2327 = vmatpush.bf16.msra.mxu3 %v4726_v0  ;;  %v4702_v52 = vor.u32 %v5725_v47, %v4699_v49  ;;  %v5747_v0 = vld [vmem:[#allocation2 + $0xd4] sm:$0xf] }
 0x2a0   : > { %2314 = vmatpush.bf16.msra.mxu2 %v4842_v44 }
 0x2a1   : > { %2328 = vmatpush.bf16.msra.mxu3 %v4718_v16  ;;  %v5721_v16 = vld [vmem:[#allocation2 + $0x4] sm:$0xf] }
 0x2a3   : > { %1917 = vmatmul.bf16.vlgmr.msrb.gmra.mxu2 %v4464_v2  ;;  %1931 = vmatmul.bf16.vlgmr.msrb.gmra.mxu3 %v4468_v23  ;;  %v4705_v23 = vld [vmem:[#allocation2 + $0x30] sm:$0xf] }
 0x2a4   : > { %v4706_v41 = vor.u32 %v5728_v39, %v4705_v23  ;;  %2315 = vmatpush.bf16.msra.mxu2 %v4834_v12  ;;  %v4806_v39 = vor.u32 %v5751_v33, %v4803_v19  ;;  %v4771_v33 = vld [vmem:[#allocation2 + $0xb8] sm:$0xf0] }
 0x2a5   : > { %2329 = vmatpush.bf16.msra.mxu3 %v4710_v35  ;;  %v4835_v35 = vld [vmem:[#allocation2 + $0x138] sm:$0xf0] }
 0x2a6   : > { %2287 = vmatpush.bf16.msra.mxu0 %v4706_v41 }
 0x2a8   : > { %2316 = vmatpush.bf16.msra.mxu2 %v4826_v30 }
 0x2a9   : > { %2330 = vmatpush.bf16.msra.mxu3 %v4702_v52  ;;  %v5755_v52 = vld [vmem:[#allocation2 + $0x114] sm:$0xf] }
 0x2aa   : > { %2288 = vmatpush.bf16.msra.mxu0 %v4698_v55  ;;  %v5765_v55 = vld [vmem:[#allocation2 + $0x164] sm:$0xf] }
 0x2ac   : > { %2317 = vmatpush.bf16.msra.mxu2 %v4818_v48 }
 0x2ad   : > { %2331 = vmatpush.bf16.msra.mxu3 %v4694_v3 }
 0x2ae   : > { %2289 = vmatpush.bf16.msra.mxu0 %v4690_v8  ;;  %v4677_v8 = vld [vmem:[#allocation4 + $0x8] sm:$0xf] }
 0x2af   : > { %v6504_v14 = vor.u32 %v5720_v57, %v4677_v8  ;;  %2403 = vst [vmem:[#allocation4 + $0x8] sm:$0xf] %v4875_v11 }
 0x2b0   : > { %2318 = vmatpush.bf16.msra.mxu2 %v4810_v61  ;;  %v4811_v61 = vld [vmem:[#allocation2 + $0x108] sm:$0xf0] }
 0x2b2   : > { %2290 = vmatpush.bf16.msra.mxu0 %v4682_v24  ;;  %v4686_v24 = vor.u32 %v5721_v16, %v4683_v20 }
 0x2b3   : > { %2319 = vmatmul.bf16.vlgmr.msra.gmra.mxu2 %v6504_v14 }
 0x2b4   : > { %2332 = vmatpush.bf16.msra.mxu3 %v4686_v24  ;;  %v5785_v24 = vld [vmem:[#allocation2 + $0x64] sm:$0xf0] }
 0x2b6   : > { %2339 = vmatpush.bf16.msrb.mxu0 %v4806_v39 }
 0x2f5   : > { %v1890_v54 = vpop.f32.mrf.mxu0 }
 0x2fd   : > { %v1892_v34 = vpop.f32.mrf.mxu0 }
 0x316   : > { %v1862_v1 = vpop.f32.mrf.mxu2  ;;  %v1876_v2 = vpop.f32.mrf.mxu3 }
 0x317   : > { %v1877_v5 = vadd.f32 %v1876_v2, %v1862_v1  ;;  %v4787_v1 = vld [vmem:[#allocation2 + $0xd8] sm:$0xf0]  ;;  %v1904_v2 = vpop.f32.mrf.mxu1 }
 0x318   : > { %v4790_v4 = vor.u32 %v5747_v0, %v4787_v1 }
 0x319   : > { %v1891_v15 = vadd.f32 %v1890_v54, %v1877_v5  ;;  %v4798_v54 = vor.u32 %v5749_v50, %v4795_v31  ;;  %v4851_v5 = vld [vmem:[#allocation2 + $0x158] sm:$0xf0]  ;;  %v5739_v31 = vld [vmem:[#allocation2 + $0x94] sm:$0xf] }
 0x31a   : > { %v4854_v10 = vor.u32 %v5763_v7, %v4851_v5 }
 0x31b   : > { %v1941_v21 = vsub.f32 %v1891_v15, %v6468_v22  ;;  %2340 = vmatpush.bf16.msrb.mxu0 %v4798_v54  ;;  %v4876_v15 = vld [vmem:[%s6385_s10 + $0x2c] sm:$0xf]  ;;  %v4819_v54 = vld [vmem:[#allocation2 + $0x118] sm:$0xf0] }
 0x31c   : > { %2404 = vst [vmem:[#allocation4 + $0x14] sm:$0xf] %v4876_v15  ;;  %v5011_v15 = vld [vmem:[#allocation2 + $0xf0] sm:$0xf] }
 0x31d   : > { %v1945_v37 = vmul.f32 0.33333334, %v1941_v21  ;;  %v5745_v21 = vld [vmem:[#allocation2 + $0xc4] sm:$0xf] }
 0x31e   : > { %v1864_v38 = vpop.f32.mrf.mxu2  ;;  %v1878_v23 = vpop.f32.mrf.mxu3  ;;  %v4782_v30 = vor.u32 %v5745_v21, %v4779_v25  ;;  %v4939_v21 = vld [vmem:[#allocation2 + $0x60] sm:$0xf] }
 0x31f   : > { %v6498_v41 = vadd.f32 %v1945_v37, %v6468_v22  ;;  %v1879_v42 = vadd.f32 %v1878_v23, %v1864_v38  ;;  %v4859_v22 = vld [vmem:[#allocation2 + $0x168] sm:$0xf0]  ;;  %2341 = vmatpush.bf16.msrb.mxu0 %v4790_v4  ;;  %v5759_v37 = vld [vmem:[#allocation2 + $0x134] sm:$0xf]  ;;  %v5741_v38 = vld [vmem:[#allocation2 + $0xa4] sm:$0xf]  ;;  %v1906_v39 = vpop.f32.mrf.mxu1  ;;  %v4940_v26 = vor.u32 %v5785_v24, %v4939_v21 }
 0x320   : > { %v4862_v56 = vor.u32 %v5765_v55, %v4859_v22  ;;  %v4838_v36 = vor.u32 %v5759_v37, %v4835_v35  ;;  %v4763_v23 = vld [vmem:[#allocation2 + $0xa8] sm:$0xf0]  ;;  %v5003_v25 = vld [vmem:[#allocation2 + $0xe0] sm:$0xf]  ;;  %v5773_v21 = vld [vmem:[#allocation2 + $0x4] sm:$0xf0] }
 0x321   : > { %4661 = vst [vmem:[%s6392_s27 + $0x60] sm:$0xff] %v6498_v41  ;;  %v1893_v51 = vadd.f32 %v1892_v34, %v1879_v42  ;;  %v4774_v34 = vor.u32 %v5743_v6, %v4771_v33  ;;  %v5757_v42 = vld [vmem:[#allocation2 + $0x124] sm:$0xf]  ;;  %6036 = vtanh.f32 %v6498_v41  ;;  %v4766_v48 = vor.u32 %v5741_v38, %v4763_v23  ;;  %v5799_v6 = vld [vmem:[#allocation2 + $0xd4] sm:$0xf0] }
 0x322   : > { %2354 = vmatpush.bf16.msrb.mxu1 %v4862_v56  ;;  %v4830_v50 = vor.u32 %v5757_v42, %v4827_v43  ;;  %v4822_v56 = vor.u32 %v5755_v52, %v4819_v54  ;;  %v4923_v37 = vld [vmem:[#allocation2 + $0x40] sm:$0xf]  ;;  %v5786_v38 = vld [vmem:[#allocation2 + $0x74] sm:$0xf]  ;;  %v4949_v23 = vld [vmem:[#allocation2 + $0x78] sm:$0xf0] }
 0x323   : > { %v1943_v44 = vsub.f32 %v1893_v51, %v6474_v63  ;;  %2342 = vmatpush.bf16.msrb.mxu0 %v4782_v30  ;;  %v4755_v51 = vld [vmem:[#allocation2 + $0x98] sm:$0xf0]  ;;  %v4931_v30 = vld [vmem:[#allocation2 + $0x50] sm:$0xf]  ;;  %v4987_v35 = vld [vmem:[#allocation2 + $0xc0] sm:$0xf] }
 0x324   : > { %v4758_v55 = vor.u32 %v5739_v31, %v4755_v51  ;;  %v4915_v42 = vld [vmem:[#allocation2 + $0x30] sm:$0xf]  ;;  %v5779_v43 = vld [vmem:[#allocation2 + $0x34] sm:$0xf0]  ;;  %v4907_v52 = vld [vmem:[#allocation2 + $0x20] sm:$0xf] }
 0x325   : > { %v1947_v9 = vmul.f32 0.33333334, %v1943_v44  ;;  %v5753_v44 = vld [vmem:[#allocation2 + $0x104] sm:$0xf]  ;;  %v5777_v54 = vld [vmem:[#allocation2 + $0x24] sm:$0xf0] }
 0x326   : > { %v1918_v12 = vpop.f32.mrf.mxu2  ;;  %v1932_v13 = vpop.f32.mrf.mxu3  ;;  %2355 = vmatpush.bf16.msrb.mxu1 %v4854_v10  ;;  %v4814_v3 = vor.u32 %v5753_v44, %v4811_v61  ;;  %v5782_v61 = vld [vmem:[#allocation2 + $0x54] sm:$0xf]  ;;  %v4955_v24 = vld [vmem:[#allocation2 + $0x80] sm:$0xf] }
 0x327   : > { %v6508_v17 = vadd.f32 %v1947_v9, %v6474_v63  ;;  %v1919_v18 = vadd.f32 %v1918_v12, %v1904_v2  ;;  %2343 = vmatpush.bf16.msrb.mxu0 %v4774_v34  ;;  %v6037_v60 = vpop.eup %6036  ;;  %v4750_v2 = vor.u32 %v5737_v58, %v4747_v59  ;;  %v4947_v12 = vld [vmem:[#allocation2 + $0x70] sm:$0xf]  ;;  %v5781_v34 = vld [vmem:[#allocation2 + $0x44] sm:$0xf0]  ;;  %v5819_v59 = vld [vmem:[#allocation2 + $0x174] sm:$0xf0] }
 0x328   : > { %v5075_v58 = vld [vmem:[#allocation2 + $0x170] sm:$0xf] }
 0x329   : > { %4663 = vst [vmem:[%s6392_s27 + $0x70] sm:$0xff] %v6508_v17  ;;  %v1933_v28 = vadd.f32 %v1932_v13, %v1919_v18  ;;  %v5787_v13 = vld [vmem:[#allocation2 + $0x74] sm:$0xf0]  ;;  %v5076_v44 = vor.u32 %v5819_v59, %v5075_v58  ;;  %v5043_v58 = vld [vmem:[#allocation2 + $0x130] sm:$0xf] }
 0x32a   : > { %2356 = vmatpush.bf16.msrb.mxu1 %v4846_v32  ;;  %v4948_v16 = vor.u32 %v5787_v13, %v4947_v12  ;;  %v5803_v18 = vld [vmem:[#allocation2 + $0xf4] sm:$0xf0]  ;;  %v5780_v13 = vld [vmem:[#allocation2 + $0x44] sm:$0xf] }
 0x32b   : > { %v1942_v63 = vsub.f32 %v1933_v28, %v6480_v29  ;;  %2344 = vmatpush.bf16.msrb.mxu0 %v4766_v48  ;;  %v5012_v20 = vor.u32 %v5803_v18, %v5011_v15  ;;  %v5004_v28 = vor.u32 %v5801_v27, %v5003_v25  ;;  %v5783_v32 = vld [vmem:[#allocation2 + $0x54] sm:$0xf0]  ;;  %v4925_v15 = vld [vmem:[#allocation2 + $0x48] sm:$0xf0]  ;;  %v5789_v27 = vld [vmem:[#allocation2 + $0x84] sm:$0xf0] }
 0x32c   : > { %2713 = vmatpush.bf16.msrb.mxu2 %v4948_v16  ;;  %v5795_v48 = vld [vmem:[#allocation2 + $0xb4] sm:$0xf0]  ;;  %v4928_v18 = vor.u32 %v5780_v13, %v4925_v15 }
 0x32d   : > { %v1946_v19 = vmul.f32 0.33333334, %v1942_v63  ;;  %2727 = vmatpush.bf16.msrb.mxu3 %v5012_v20  ;;  %v4995_v63 = vld [vmem:[#allocation2 + $0xd0] sm:$0xf]  ;;  %v4891_v20 = vld [vmem:[#allocation2] sm:$0xf] }
 0x32e   : > { %v1920_v40 = vpop.f32.mrf.mxu2  ;;  %v1934_v47 = vpop.f32.mrf.mxu3  ;;  %2357 = vmatpush.bf16.msrb.mxu1 %v4838_v36  ;;  %v4996_v33 = vor.u32 %v5799_v6, %v4995_v63  ;;  %v5797_v36 = vld [vmem:[#allocation2 + $0xc4] sm:$0xf0]  ;;  %v4917_v6 = vld [vmem:[#allocation2 + $0x38] sm:$0xf0]  ;;  %v5811_v59 = vld [vmem:[#allocation2 + $0x134] sm:$0xf0] }
 0x32f   : > { %v6515_v45 = vadd.f32 %v1946_v19, %v6480_v29  ;;  %v1921_v46 = vadd.f32 %v1920_v40, %v1906_v39  ;;  %2345 = vmatpush.bf16.msrb.mxu0 %v4758_v55  ;;  %v4924_v19 = vor.u32 %v5781_v34, %v4923_v37  ;;  %v4988_v39 = vor.u32 %v5797_v36, %v4987_v35  ;;  %v5818_v36 = vld [vmem:[#allocation2 + $0x174] sm:$0xf] }
 0x330   : > { %2714 = vmatpush.bf16.msrb.mxu2 %v4940_v26  ;;  %v4952_v40 = vor.u32 %v5786_v38, %v4949_v23  ;;  %v4892_v26 = vor.u32 %v5773_v21, %v4891_v20  ;;  %v4989_v20 = vld [vmem:[#allocation2 + $0xc8] sm:$0xf0] }
 0x331   : > { %6038 = vtanh.f32 %v6515_v45  ;;  %4662 = vst [vmem:[%s6392_s27 + $0x68] sm:$0xff] %v6515_v45  ;;  %v1935_v49 = vadd.f32 %v1934_v47, %v1921_v46  ;;  %2728 = vmatpush.bf16.msrb.mxu3 %v5004_v28  ;;  %v4979_v46 = vld [vmem:[#allocation2 + $0xb0] sm:$0xf]  ;;  %v4916_v47 = vor.u32 %v5779_v43, %v4915_v42 }
 0x332   : > { %2358 = vmatpush.bf16.msrb.mxu1 %v4830_v50  ;;  %6040 = vtanh.f32 %v6508_v17  ;;  %v4941_v50 = vld [vmem:[#allocation2 + $0x68] sm:$0xf0]  ;;  %v4980_v31 = vor.u32 %v5795_v48, %v4979_v46  ;;  %v5059_v28 = vld [vmem:[#allocation2 + $0x150] sm:$0xf]  ;;  %v5813_v48 = vld [vmem:[#allocation2 + $0x144] sm:$0xf0] }
 0x333   : > { %v1944_v29 = vsub.f32 %v1935_v49, %v6490_v53  ;;  %2346 = vmatpush.bf16.msrb.mxu0 %v4750_v2  ;;  %v5784_v49 = vld [vmem:[#allocation2 + $0x64] sm:$0xf] }
 0x334   : > { %v4944_v51 = vor.u32 %v5784_v49, %v4941_v50  ;;  %v5776_v49 = vld [vmem:[#allocation2 + $0x24] sm:$0xf] }
 0x335   : > { %v1948_v22 = vmul.f32 0.33333334, %v1944_v29  ;;  %2729 = vmatpush.bf16.msrb.mxu3 %v4996_v33  ;;  %v4971_v29 = vld [vmem:[#allocation2 + $0xa0] sm:$0xf]  ;;  %v5802_v33 = vld [vmem:[#allocation2 + $0xf4] sm:$0xf] }
 0x336   : > { %2359 = vmatpush.bf16.msrb.mxu1 %v4822_v56  ;;  %v2320_v55 = vpop.f32.mrf.mxu2  ;;  %v5793_v56 = vld [vmem:[#allocation2 + $0xa4] sm:$0xf0] }
 0x337   : > { %v6039_v62 = vpop.eup %6038  ;;  %v6523_v0 = vadd.f32 %v1948_v22, %v6490_v53  ;;  %v4908_v22 = vor.u32 %v5777_v54, %v4907_v52  ;;  %v5005_v52 = vld [vmem:[#allocation2 + $0xe8] sm:$0xf0] }
 0x338   : > { %v1961_v1 = vpack.c.bf16 %v6039_v62, %v6037_v60  ;;  %v6041_v4 = vpop.eup %6040  ;;  %v4972_v60 = vor.u32 %v5793_v56, %v4971_v29  ;;  %v4933_v62 = vld [vmem:[#allocation2 + $0x58] sm:$0xf0] }
 0x339   : > { %6042 = vtanh.f32 %v6523_v0  ;;  %4664 = vst [vmem:[%s6392_s27 + $0x78] sm:$0xff] %v6523_v0  ;;  %2730 = vmatpush.bf16.msrb.mxu3 %v4988_v39 }
 0x33a   : > { %1963 = vst [vmem:[#allocation4] sm:$0xff] %v1961_v1  ;;  %2360 = vmatpush.bf16.msrb.mxu1 %v4814_v3  ;;  %v4936_v1 = vor.u32 %v5782_v61, %v4933_v62  ;;  %v5044_v61 = vor.u32 %v5811_v59, %v5043_v58  ;;  %v4901_v62 = vld [vmem:[#allocation2 + $0x18] sm:$0xf0]  ;;  %v5790_v59 = vld [vmem:[#allocation2 + $0x94] sm:$0xf] }
 0x33d   : > { %2731 = vmatpush.bf16.msrb.mxu3 %v4980_v31  ;;  %v4909_v31 = vld [vmem:[#allocation2 + $0x28] sm:$0xf0] }
 0x33e   : > { %v2322_v34 = vpop.f32.mrf.mxu2  ;;  %v4912_v29 = vor.u32 %v5776_v49, %v4909_v31  ;;  %v5808_v49 = vld [vmem:[#allocation2 + $0x124] sm:$0xf] }
 0x33f   : > { %v6043_v7 = vpop.eup %6042 }
 0x340   : > { %v1962_v5 = vpack.c.bf16 %v6043_v7, %v6041_v4  ;;  %v4899_v4 = vld [vmem:[#allocation2 + $0x10] sm:$0xf]  ;;  %v5775_v7 = vld [vmem:[#allocation2 + $0x14] sm:$0xf0] }
 0x341   : > { %v4669_v53 = vld [vmem:[#allocation4] sm:$0xf]  ;;  %v5718_v9 = vld [vmem:[#allocation4 + $0x4] sm:$0xf]  ;;  %2732 = vmatpush.bf16.msrb.mxu3 %v4972_v60  ;;  %v5774_v60 = vld [vmem:[#allocation2 + $0x14] sm:$0xf] }
 0x342   : > { %1964 = vst [vmem:[#allocation4 + $0xc] sm:$0xff] %v1962_v5  ;;  %v4963_v5 = vld [vmem:[#allocation2 + $0x90] sm:$0xf] }
 0x349   : > { %v5719_v8 = vld [vmem:[#allocation4 + $0x8] sm:$0xf0]  ;;  %v4671_v10 = vld [vmem:[#allocation4 + $0xc] sm:$0xf0] }
 0x34a   : > { %v4670_v57 = vor.u32 %v5719_v8, %v4669_v53  ;;  %v4674_v11 = vor.u32 %v5718_v9, %v4671_v10  ;;  %v4900_v8 = vor.u32 %v5775_v7, %v4899_v4  ;;  %v5791_v9 = vld [vmem:[#allocation2 + $0x94] sm:$0xf0]  ;;  %v5067_v10 = vld [vmem:[#allocation2 + $0x160] sm:$0xf]  ;;  %v4904_v4 = vor.u32 %v5774_v60, %v4901_v62  ;;  %v4965_v60 = vld [vmem:[#allocation2 + $0x98] sm:$0xf0] }
 0x34c   : > { %2291 = vmatmul.bf16.vlgmr.msra.gmra.mxu0 %v4670_v57  ;;  %2305 = vmatmul.bf16.vlgmr.msra.gmra.mxu1 %v4674_v11 }
 0x34d   : > { %2333 = vmatmul.bf16.vlgmr.msra.gmra.mxu3 %v4670_v57  ;;  %2755 = vmatpush.bf16.msra.mxu1 %v4952_v40  ;;  %v5817_v57 = vld [vmem:[#allocation2 + $0x164] sm:$0xf0]  ;;  %v5077_v40 = vld [vmem:[#allocation2 + $0x178] sm:$0xf0] }
 0x34e   : > { %2741 = vmatpush.bf16.msra.mxu0 %v5076_v44  ;;  %v5068_v12 = vor.u32 %v5817_v57, %v5067_v10  ;;  %v5080_v46 = vor.u32 %v5818_v36, %v5077_v40  ;;  %v5809_v57 = vld [vmem:[#allocation2 + $0x124] sm:$0xf0] }
 0x351   : > { %2756 = vmatpush.bf16.msra.mxu1 %v4944_v51  ;;  %v5800_v51 = vld [vmem:[#allocation2 + $0xe4] sm:$0xf] }
 0x352   : > { %2742 = vmatpush.bf16.msra.mxu0 %v5068_v12 }
 0x355   : > { %2757 = vmatpush.bf16.msra.mxu1 %v4936_v1  ;;  %v5798_v1 = vld [vmem:[#allocation2 + $0xd4] sm:$0xf] }
 0x359   : > { %2758 = vmatpush.bf16.msra.mxu1 %v4928_v18  ;;  %v5796_v18 = vld [vmem:[#allocation2 + $0xc4] sm:$0xf] }
 0x35c   : > { %2347 = vmatmul.bf16.vlgmr.msrb.gmra.mxu0 %v4674_v11  ;;  %2361 = vmatmul.bf16.vlgmr.msrb.gmra.mxu1 %v6504_v14  ;;  %v4932_v14 = vor.u32 %v5783_v32, %v4931_v30  ;;  %v4964_v11 = vor.u32 %v5791_v9, %v4963_v5  ;;  %v5815_v30 = vld [vmem:[#allocation2 + $0x154] sm:$0xf0]  ;;  %v4956_v32 = vor.u32 %v5789_v27, %v4955_v24  ;;  %v5814_v5 = vld [vmem:[#allocation2 + $0x154] sm:$0xf]  ;;  %v5053_v27 = vld [vmem:[#allocation2 + $0x148] sm:$0xf0] }
 0x35d   : > { %v5060_v63 = vor.u32 %v5815_v30, %v5059_v28  ;;  %v4992_v28 = vor.u32 %v5796_v18, %v4989_v20 }
 0x35e   : > { %2715 = vmatpush.bf16.msrb.mxu2 %v4932_v14  ;;  %2733 = vmatpush.bf16.msrb.mxu3 %v4964_v11  ;;  %v5778_v14 = vld [vmem:[#allocation2 + $0x34] sm:$0xf]  ;;  %v5772_v11 = vld [vmem:[#allocation2 + $0x4] sm:$0xf] }
 0x35f   : > { %v4920_v35 = vor.u32 %v5778_v14, %v4917_v6  ;;  %2743 = vmatpush.bf16.msra.mxu0 %v5060_v63  ;;  %v5027_v14 = vld [vmem:[#allocation2 + $0x110] sm:$0xf]  ;;  %v5807_v6 = vld [vmem:[#allocation2 + $0x114] sm:$0xf0] }
 0x361   : > { %2759 = vmatpush.bf16.msra.mxu1 %v4920_v35  ;;  %v5045_v35 = vld [vmem:[#allocation2 + $0x138] sm:$0xf0] }
 0x362   : > { %2716 = vmatpush.bf16.msrb.mxu2 %v4924_v19  ;;  %v5013_v19 = vld [vmem:[#allocation2 + $0xf8] sm:$0xf0]  ;;  %2734 = vmatpush.bf16.msrb.mxu3 %v4956_v32 }
 0x363   : > { %v5016_v39 = vor.u32 %v5802_v33, %v5013_v19  ;;  %v5028_v33 = vor.u32 %v5807_v6, %v5027_v14  ;;  %v5149_v6 = vld [vmem:[#allocation2 + $0x60] sm:$0xf] }
 0x365   : > { %2760 = vmatpush.bf16.msra.mxu1 %v4912_v29 }
 0x366   : > { %2717 = vmatpush.bf16.msrb.mxu2 %v4916_v47  ;;  %v5051_v47 = vld [vmem:[#allocation2 + $0x140] sm:$0xf]  ;;  %2783 = vmatpush.bf16.msra.mxu3 %v5080_v46 }
 0x367   : > { %v5052_v50 = vor.u32 %v5813_v48, %v5051_v47  ;;  %v5792_v47 = vld [vmem:[#allocation2 + $0xa4] sm:$0xf]  ;;  %v4973_v48 = vld [vmem:[#allocation2 + $0xa8] sm:$0xf0] }
 0x369   : > { %2744 = vmatpush.bf16.msra.mxu0 %v5052_v50  ;;  %2761 = vmatpush.bf16.msra.mxu1 %v4904_v4  ;;  %v5788_v4 = vld [vmem:[#allocation2 + $0x84] sm:$0xf] }
 0x36a   : > { %2718 = vmatpush.bf16.msrb.mxu2 %v4908_v22  ;;  %v5816_v22 = vld [vmem:[#allocation2 + $0x164] sm:$0xf] }
 0x36d   : > { %2745 = vmatpush.bf16.msra.mxu0 %v5044_v61  ;;  %v5029_v61 = vld [vmem:[#allocation2 + $0x118] sm:$0xf0] }
 0x36e   : > { %2719 = vmatpush.bf16.msrb.mxu2 %v4900_v8  ;;  %v5035_v8 = vld [vmem:[#allocation2 + $0x120] sm:$0xf] }
 0x36f   : > { %v5036_v15 = vor.u32 %v5809_v57, %v5035_v8  ;;  %v5021_v8 = vld [vmem:[#allocation2 + $0x108] sm:$0xf0] }
 0x371   : > { %2746 = vmatpush.bf16.msra.mxu0 %v5036_v15 }
 0x372   : > { %2720 = vmatpush.bf16.msrb.mxu2 %v4892_v26  ;;  %v5812_v26 = vld [vmem:[#allocation2 + $0x144] sm:$0xf] }
 0x373   : > { %v5056_v32 = vor.u32 %v5812_v26, %v5053_v27  ;;  %v5157_v27 = vld [vmem:[#allocation2 + $0x70] sm:$0xf] }
 0x375   : > { %2747 = vmatpush.bf16.msra.mxu0 %v5028_v33  ;;  %v5213_v33 = vld [vmem:[#allocation2 + $0xe0] sm:$0xf] }
 0x376   : > { %2769 = vmatpush.bf16.msra.mxu2 %v5016_v39  ;;  %v5805_v39 = vld [vmem:[#allocation2 + $0x104] sm:$0xf0] }
 0x3c9   : > { %v2292_v2 = vpop.f32.mrf.mxu0  ;;  %v2306_v3 = vpop.f32.mrf.mxu1 }
 0x3ca   : > { %v2307_v53 = vadd.f32 %v2306_v3, %v2292_v2  ;;  %v4997_v2 = vld [vmem:[#allocation2 + $0xd8] sm:$0xf0] }
 0x3cb   : > { %v5000_v7 = vor.u32 %v5798_v1, %v4997_v2  ;;  %v4968_v1 = vor.u32 %v5790_v59, %v4965_v60  ;;  %v5830_v59 = vld [vmem:[#allocation2 + $0x34] sm:$0xf0]  ;;  %v5189_v60 = vld [vmem:[#allocation2 + $0xb0] sm:$0xf] }
 0x3cc   : > { %v2321_v16 = vadd.f32 %v2320_v55, %v2307_v53  ;;  %v5008_v55 = vor.u32 %v5800_v51, %v5005_v52  ;;  %v5061_v53 = vld [vmem:[#allocation2 + $0x158] sm:$0xf0]  ;;  %v5037_v51 = vld [vmem:[#allocation2 + $0x128] sm:$0xf0]  ;;  %v4887_v52 = vld [vmem:[#allocation4 + $0x8] sm:$0xf] }
 0x3cd   : > { %v5064_v10 = vor.u32 %v5814_v5, %v5061_v53  ;;  %v5040_v58 = vor.u32 %v5808_v49, %v5037_v51  ;;  %v5804_v53 = vld [vmem:[#allocation2 + $0x104] sm:$0xf]  ;;  %v5832_v49 = vld [vmem:[#allocation2 + $0x44] sm:$0xf0] }
 0x3ce   : > { %v2371_v25 = vsub.f32 %v2321_v16, %v6498_v41  ;;  %2770 = vmatpush.bf16.msra.mxu2 %v5008_v55  ;;  %v4893_v16 = vld [vmem:[#allocation2 + $0x8] sm:$0xf0]  ;;  %v4976_v55 = vor.u32 %v5792_v47, %v4973_v48  ;;  %v5133_v48 = vld [vmem:[#allocation2 + $0x40] sm:$0xf] }
 0x3cf   : > { %v5134_v51 = vor.u32 %v5832_v49, %v5133_v48  ;;  %v5860_v48 = vld [vmem:[#allocation2 + $0x124] sm:$0xf0] }
 0x3d0   : > { %v2375_v37 = vmul.f32 0.33333334, %v2371_v25  ;;  %v2334_v3 = vpop.f32.mrf.mxu3  ;;  %v4896_v25 = vor.u32 %v5772_v11, %v4893_v16 }
 0x3d1   : > { %v2294_v38 = vpop.f32.mrf.mxu0  ;;  %v2308_v23 = vpop.f32.mrf.mxu1 }
 0x3d2   : > { %v6532_v42 = vadd.f32 %v2375_v37, %v6498_v41  ;;  %v2309_v43 = vadd.f32 %v2308_v23, %v2294_v38  ;;  %v5069_v41 = vld [vmem:[#allocation2 + $0x168] sm:$0xf0]  ;;  %2771 = vmatpush.bf16.msra.mxu2 %v5000_v7  ;;  %2762 = vmatpush.bf16.msra.mxu1 %v4896_v25  ;;  %v4981_v37 = vld [vmem:[#allocation2 + $0xb8] sm:$0xf0]  ;;  %v5019_v23 = vld [vmem:[#allocation2 + $0x100] sm:$0xf] }
 0x3d3   : > { %v5072_v56 = vor.u32 %v5816_v22, %v5069_v41  ;;  %v5020_v46 = vor.u32 %v5805_v39, %v5019_v23  ;;  %v5085_v22 = vld [vmem:[%s6385_s10 + $0x30] sm:$0xf]  ;;  %v5086_v41 = vld [vmem:[%s6385_s10 + $0x34] sm:$0xf]  ;;  %v5850_v39 = vld [vmem:[#allocation2 + $0xd4] sm:$0xf0] }
 0x3d4   : > { %4871 = vst [vmem:[%s6392_s27 + $0x80] sm:$0xff] %v6532_v42  ;;  %v2323_v54 = vadd.f32 %v2322_v34, %v2309_v43  ;;  %v5810_v34 = vld [vmem:[#allocation2 + $0x134] sm:$0xf]  ;;  %6044 = vtanh.f32 %v6532_v42  ;;  %v4957_v7 = vld [vmem:[#allocation2 + $0x88] sm:$0xf0] }
 0x3d5   : > { %2784 = vmatpush.bf16.msra.mxu3 %v5072_v56  ;;  %v5048_v38 = vor.u32 %v5810_v34, %v5045_v35  ;;  %2748 = vmatpush.bf16.msra.mxu0 %v5020_v46  ;;  %2833 = vst [vmem:[#allocation4 + $0x8] sm:$0xf] %v5085_v22  ;;  %v4960_v11 = vor.u32 %v5788_v4, %v4957_v7  ;;  %v5852_v34 = vld [vmem:[#allocation2 + $0xe4] sm:$0xf0]  ;;  %v5835_v4 = vld [vmem:[#allocation2 + $0x64] sm:$0xf] }
 0x3d6   : > { %v2373_v44 = vsub.f32 %v2323_v54, %v6508_v17  ;;  %2772 = vmatpush.bf16.msra.mxu2 %v4992_v28  ;;  %v5771_v54 = vld [vmem:[#allocation4 + $0x10] sm:$0xf0]  ;;  %v5838_v28 = vld [vmem:[#allocation2 + $0x74] sm:$0xf0]  ;;  %v5214_v35 = vor.u32 %v5852_v34, %v5213_v33  ;;  %v5151_v7 = vld [vmem:[#allocation2 + $0x68] sm:$0xf0] }
 0x3d7   : > { %2834 = vst [vmem:[#allocation4 + $0x14] sm:$0xf] %v5086_v41  ;;  %v5837_v41 = vld [vmem:[#allocation2 + $0x74] sm:$0xf]  ;;  %v5831_v34 = vld [vmem:[#allocation2 + $0x44] sm:$0xf] }
 0x3d8   : > { %v2377_v9 = vmul.f32 0.33333334, %v2373_v44  ;;  %v2336_v40 = vpop.f32.mrf.mxu3  ;;  %v5806_v44 = vld [vmem:[#allocation2 + $0x114] sm:$0xf] }
 0x3d9   : > { %v2348_v12 = vpop.f32.mrf.mxu0  ;;  %v2362_v13 = vpop.f32.mrf.mxu1  ;;  %2785 = vmatpush.bf16.msra.mxu3 %v5064_v10 }
 0x3da   : > { %v6538_v21 = vadd.f32 %v2377_v9, %v6508_v17  ;;  %v2349_v24 = vadd.f32 %v2348_v12, %v2334_v3  ;;  %v5794_v17 = vld [vmem:[#allocation2 + $0xb4] sm:$0xf]  ;;  %v5032_v3 = vor.u32 %v5806_v44, %v5029_v61  ;;  %v6045_v5 = vpop.eup %6044  ;;  %v5024_v12 = vor.u32 %v5804_v53, %v5021_v8  ;;  %v5846_v61 = vld [vmem:[#allocation2 + $0xb4] sm:$0xf0]  ;;  %v5117_v53 = vld [vmem:[#allocation2 + $0x20] sm:$0xf] }
 0x3db   : > { %v4984_v36 = vor.u32 %v5794_v17, %v4981_v37  ;;  %v5836_v17 = vld [vmem:[#allocation2 + $0x64] sm:$0xf0] }
 0x3dc   : > { %4873 = vst [vmem:[%s6392_s27 + $0x90] sm:$0xff] %v6538_v21  ;;  %v2363_v30 = vadd.f32 %v2362_v13, %v2349_v24  ;;  %v5150_v37 = vor.u32 %v5836_v17, %v5149_v6  ;;  %v5828_v8 = vld [vmem:[#allocation2 + $0x24] sm:$0xf0]  ;;  %v5253_v6 = vld [vmem:[#allocation2 + $0x130] sm:$0xf] }
 0x3dd   : > { %2786 = vmatpush.bf16.msra.mxu3 %v5056_v32  ;;  %2773 = vmatpush.bf16.msra.mxu2 %v4984_v36  ;;  %v5158_v32 = vor.u32 %v5838_v28, %v5157_v27  ;;  %v5834_v36 = vld [vmem:[#allocation2 + $0x54] sm:$0xf0]  ;;  %v5109_v27 = vld [vmem:[#allocation2 + $0x10] sm:$0xf] }
 0x3de   : > { %v2372_v63 = vsub.f32 %v2363_v30, %v6515_v45  ;;  %v5221_v30 = vld [vmem:[#allocation2 + $0xf0] sm:$0xf]  ;;  %v5826_v28 = vld [vmem:[#allocation2 + $0x14] sm:$0xf0] }
 0x3df   : > { %3143 = vmatpush.bf16.msrb.mxu0 %v5158_v32  ;;  %v5862_v17 = vld [vmem:[#allocation2 + $0x134] sm:$0xf0] }
 0x3e0   : > { %v2376_v19 = vmul.f32 0.33333334, %v2372_v63  ;;  %v5854_v63 = vld [vmem:[#allocation2 + $0xf4] sm:$0xf0] }
 0x3e1   : > { %v2350_v43 = vpop.f32.mrf.mxu0  ;;  %v2364_v29 = vpop.f32.mrf.mxu1  ;;  %2787 = vmatpush.bf16.msra.mxu3 %v5048_v38  ;;  %2774 = vmatpush.bf16.msra.mxu2 %v4976_v55  ;;  %v5222_v14 = vor.u32 %v5854_v63, %v5221_v30  ;;  %v5205_v38 = vld [vmem:[#allocation2 + $0xd0] sm:$0xf]  ;;  %v5110_v63 = vor.u32 %v5826_v28, %v5109_v27 }
 0x3e2   : > { %v6544_v50 = vadd.f32 %v2376_v19, %v6515_v45  ;;  %v2351_v31 = vadd.f32 %v2350_v43, %v2336_v40  ;;  %v4888_v45 = vor.u32 %v5771_v54, %v4887_v52  ;;  %v5141_v19 = vld [vmem:[#allocation2 + $0x50] sm:$0xf]  ;;  %v5870_v43 = vld [vmem:[#allocation2 + $0x174] sm:$0xf0]  ;;  %v5206_v46 = vor.u32 %v5850_v39, %v5205_v38  ;;  %v5848_v52 = vld [vmem:[#allocation2 + $0xc4] sm:$0xf0] }
 0x3e3   : > { %3157 = vmatpush.bf16.msrb.mxu1 %v5222_v14  ;;  %3144 = vmatpush.bf16.msrb.mxu0 %v5150_v37  ;;  %v5142_v23 = vor.u32 %v5834_v36, %v5141_v19  ;;  %v5285_v40 = vld [vmem:[#allocation2 + $0x170] sm:$0xf]  ;;  %v5277_v54 = vld [vmem:[#allocation2 + $0x160] sm:$0xf]  ;;  %v5842_v14 = vld [vmem:[#allocation2 + $0x94] sm:$0xf0]  ;;  %v5254_v37 = vor.u32 %v5862_v17, %v5253_v6 }
 0x3e4   : > { %6046 = vtanh.f32 %v6544_v50  ;;  %4872 = vst [vmem:[%s6392_s27 + $0x88] sm:$0xff] %v6544_v50  ;;  %v2365_v56 = vadd.f32 %v2364_v29, %v2351_v31  ;;  %2749 = vmatmul.bf16.vlgmr.msra.gmra.mxu0 %v4888_v45  ;;  %v5286_v47 = vor.u32 %v5870_v43, %v5285_v40  ;;  %v5197_v31 = vld [vmem:[#allocation2 + $0xc0] sm:$0xf]  ;;  %v5868_v29 = vld [vmem:[#allocation2 + $0x164] sm:$0xf0] }
 0x3e5   : > { %2788 = vmatpush.bf16.msra.mxu3 %v5040_v58  ;;  %6048 = vtanh.f32 %v6538_v21  ;;  %2775 = vmatpush.bf16.msra.mxu2 %v4968_v1  ;;  %v5198_v55 = vor.u32 %v5848_v52, %v5197_v31  ;;  %v5278_v22 = vor.u32 %v5868_v29, %v5277_v54  ;;  %v5866_v1 = vld [vmem:[#allocation2 + $0x154] sm:$0xf0]  ;;  %v5173_v30 = vld [vmem:[#allocation2 + $0x90] sm:$0xf]  ;;  %v5101_v38 = vld [vmem:[#allocation2] sm:$0xf] }
 0x3e6   : > { %v2374_v62 = vsub.f32 %v2365_v56, %v6523_v0  ;;  %v5159_v56 = vld [vmem:[#allocation2 + $0x78] sm:$0xf0]  ;;  %v5174_v33 = vor.u32 %v5842_v14, %v5173_v30  ;;  %v5165_v39 = vld [vmem:[#allocation2 + $0x80] sm:$0xf]  ;;  %v5853_v54 = vld [vmem:[#allocation2 + $0xf4] sm:$0xf] }
 0x3e7   : > { %3158 = vmatpush.bf16.msrb.mxu1 %v5214_v35  ;;  %3145 = vmatpush.bf16.msrb.mxu0 %v5142_v23  ;;  %v5162_v58 = vor.u32 %v5837_v41, %v5159_v56  ;;  %v5135_v35 = vld [vmem:[#allocation2 + $0x48] sm:$0xf0]  ;;  %v5824_v23 = vld [vmem:[#allocation2 + $0x4] sm:$0xf0]  ;;  %v5127_v52 = vld [vmem:[#allocation2 + $0x38] sm:$0xf0] }
 0x3e8   : > { %v2378_v2 = vmul.f32 0.33333334, %v2374_v62  ;;  %v5269_v62 = vld [vmem:[#allocation2 + $0x150] sm:$0xf]  ;;  %v5138_v36 = vor.u32 %v5831_v34, %v5135_v35  ;;  %v5102_v43 = vor.u32 %v5824_v23, %v5101_v38  ;;  %v5223_v41 = vld [vmem:[#allocation2 + $0xf8] sm:$0xf0] }
 0x3e9   : > { %2789 = vmatpush.bf16.msra.mxu3 %v5032_v3  ;;  %2776 = vmatpush.bf16.msra.mxu2 %v4960_v11  ;;  %v5270_v3 = vor.u32 %v5866_v1, %v5269_v62  ;;  %v5118_v11 = vor.u32 %v5828_v8, %v5117_v53  ;;  %v5869_v56 = vld [vmem:[#allocation2 + $0x174] sm:$0xf]  ;;  %v5237_v1 = vld [vmem:[#allocation2 + $0x110] sm:$0xf]  ;;  %v5215_v53 = vld [vmem:[#allocation2 + $0xe8] sm:$0xf0] }
 0x3ea   : > { %v6047_v9 = vpop.eup %6046  ;;  %v6554_v10 = vadd.f32 %v2378_v2, %v6523_v0  ;;  %v5190_v2 = vor.u32 %v5846_v61, %v5189_v60  ;;  %v5287_v60 = vld [vmem:[#allocation2 + $0x178] sm:$0xf0]  ;;  %v5865_v30 = vld [vmem:[#allocation2 + $0x154] sm:$0xf] }
 0x3eb   : > { %v2391_v57 = vpack.c.bf16 %v6047_v9, %v6045_v5  ;;  %v6049_v13 = vpop.eup %6048  ;;  %3159 = vmatpush.bf16.msrb.mxu1 %v5206_v46  ;;  %3146 = vmatpush.bf16.msrb.mxu0 %v5134_v51  ;;  %v5154_v5 = vor.u32 %v5835_v4, %v5151_v7  ;;  %v5181_v9 = vld [vmem:[#allocation2 + $0xa0] sm:$0xf]  ;;  %v5840_v46 = vld [vmem:[#allocation2 + $0x84] sm:$0xf0]  ;;  %v5829_v51 = vld [vmem:[#allocation2 + $0x34] sm:$0xf]  ;;  %v5290_v62 = vor.u32 %v5869_v56, %v5287_v60 }
 0x3ec   : > { %6050 = vtanh.f32 %v6554_v10  ;;  %4874 = vst [vmem:[%s6392_s27 + $0x98] sm:$0xff] %v6554_v10  ;;  %v5166_v49 = vor.u32 %v5840_v46, %v5165_v39  ;;  %v5119_v7 = vld [vmem:[#allocation2 + $0x28] sm:$0xf0]  ;;  %v5822_v17 = vld [vmem:[#allocation4 + $0x10] sm:$0xf0] }
 0x3ed   : > { %2393 = vst [vmem:[#allocation4] sm:$0xff] %v2391_v57  ;;  %2790 = vmatpush.bf16.msra.mxu3 %v5024_v12  ;;  %v5844_v12 = vld [vmem:[#allocation2 + $0xa4] sm:$0xf0]  ;;  %v5103_v39 = vld [vmem:[#allocation2 + $0x8] sm:$0xf0] }
 0x3ee   : > { %v5199_v46 = vld [vmem:[#allocation2 + $0xc8] sm:$0xf0] }
 0x3ef   : > { %3160 = vmatpush.bf16.msrb.mxu1 %v5198_v55 }
 0x3f2   : > { %v6051_v15 = vpop.eup %6050 }
 0x3f3   : > { %v2392_v16 = vpack.c.bf16 %v6051_v15, %v6049_v13  ;;  %3161 = vmatpush.bf16.msrb.mxu1 %v5190_v2  ;;  %v5261_v13 = vld [vmem:[#allocation2 + $0x140] sm:$0xf]  ;;  %v5864_v15 = vld [vmem:[#allocation2 + $0x144] sm:$0xf0]  ;;  %v5858_v2 = vld [vmem:[#allocation2 + $0x114] sm:$0xf0] }
 0x3f4   : > { %v4879_v0 = vld [vmem:[#allocation4] sm:$0xf]  ;;  %v5769_v20 = vld [vmem:[#allocation4 + $0x4] sm:$0xf]  ;;  %v5238_v4 = vor.u32 %v5858_v2, %v5237_v1 }
 0x3f5   : > { %2394 = vst [vmem:[#allocation4 + $0xc] sm:$0xff] %v2392_v16  ;;  %v5182_v16 = vor.u32 %v5844_v12, %v5181_v9 }
 0x3f7   : > { %3162 = vmatpush.bf16.msrb.mxu1 %v5182_v16  ;;  %v5825_v16 = vld [vmem:[#allocation2 + $0x14] sm:$0xf] }
 0x3fb   : > { %3163 = vmatpush.bf16.msrb.mxu1 %v5174_v33  ;;  %v5295_v33 = vld [vmem:[%s6385_s10 + $0x38] sm:$0xf] }
 0x3fc   : > { %v5770_v18 = vld [vmem:[#allocation4 + $0x8] sm:$0xf0]  ;;  %v4881_v24 = vld [vmem:[#allocation4 + $0xc] sm:$0xf0] }
 0x3fd   : > { %v4880_v25 = vor.u32 %v5770_v18, %v4879_v0  ;;  %v4884_v26 = vor.u32 %v5769_v20, %v4881_v24  ;;  %v5262_v0 = vor.u32 %v5864_v15, %v5261_v13  ;;  %v5833_v18 = vld [vmem:[#allocation2 + $0x54] sm:$0xf]  ;;  %v5143_v20 = vld [vmem:[#allocation2 + $0x58] sm:$0xf0]  ;;  %v5229_v13 = vld [vmem:[#allocation2 + $0x100] sm:$0xf] }
 0x3fe   : > { %v5146_v24 = vor.u32 %v5833_v18, %v5143_v20  ;;  %v5856_v15 = vld [vmem:[#allocation2 + $0x104] sm:$0xf0]  ;;  %v5111_v20 = vld [vmem:[#allocation2 + $0x18] sm:$0xf0] }
 0x3ff   : > { %2721 = vmatmul.bf16.vlgmr.msrb.gmra.mxu2 %v4880_v25  ;;  %2735 = vmatmul.bf16.vlgmr.msrb.gmra.mxu3 %v4884_v26  ;;  %v5230_v18 = vor.u32 %v5856_v15, %v5229_v13  ;;  %v5114_v27 = vor.u32 %v5825_v16, %v5111_v20  ;;  %v5839_v13 = vld [vmem:[#allocation2 + $0x84] sm:$0xf]  ;;  %v5167_v15 = vld [vmem:[#allocation2 + $0x88] sm:$0xf0] }
 0x400   : > { %2763 = vmatmul.bf16.vlgmr.msra.gmra.mxu1 %v4880_v25  ;;  %3171 = vmatpush.bf16.msrb.mxu2 %v5286_v47  ;;  %v5245_v47 = vld [vmem:[#allocation2 + $0x120] sm:$0xf] }
 0x401   : > { %3185 = vmatpush.bf16.msrb.mxu3 %v5162_v58  ;;  %v5246_v31 = vor.u32 %v5860_v48, %v5245_v47  ;;  %3164 = vmatpush.bf16.msrb.mxu1 %v5166_v49  ;;  %v5863_v47 = vld [vmem:[#allocation2 + $0x144] sm:$0xf]  ;;  %v5263_v48 = vld [vmem:[#allocation2 + $0x148] sm:$0xf0] }
 0x404   : > { %3172 = vmatpush.bf16.msrb.mxu2 %v5278_v22  ;;  %v5130_v22 = vor.u32 %v5829_v51, %v5127_v52  ;;  %v5266_v51 = vor.u32 %v5863_v47, %v5263_v48  ;;  %v5845_v52 = vld [vmem:[#allocation2 + $0xb4] sm:$0xf]  ;;  %v5903_v48 = vld [vmem:[#allocation2 + $0xe4] sm:$0xf0] }
 0x405   : > { %3186 = vmatpush.bf16.msrb.mxu3 %v5154_v5  ;;  %v5851_v5 = vld [vmem:[#allocation2 + $0xe4] sm:$0xf]  ;;  %3213 = vmatpush.bf16.msra.mxu1 %v5290_v62  ;;  %v5247_v62 = vld [vmem:[#allocation2 + $0x128] sm:$0xf0] }
 0x408   : > { %3173 = vmatpush.bf16.msrb.mxu2 %v5270_v3  ;;  %v5827_v3 = vld [vmem:[#allocation2 + $0x24] sm:$0xf] }
 0x409   : > { %3187 = vmatpush.bf16.msrb.mxu3 %v5146_v24  ;;  %v5122_v9 = vor.u32 %v5827_v3, %v5119_v7  ;;  %v5849_v24 = vld [vmem:[#allocation2 + $0xd4] sm:$0xf] }
 0x40c   : > { %3174 = vmatpush.bf16.msrb.mxu2 %v5262_v0 }
 0x40d   : > { %3188 = vmatpush.bf16.msrb.mxu3 %v5138_v36  ;;  %v5823_v36 = vld [vmem:[#allocation2 + $0x4] sm:$0xf] }
 0x40f   : > { %2777 = vmatmul.bf16.vlgmr.msra.gmra.mxu2 %v4884_v26  ;;  %2791 = vmatmul.bf16.vlgmr.msra.gmra.mxu3 %v4888_v45  ;;  %v5125_v45 = vld [vmem:[#allocation2 + $0x30] sm:$0xf] }
 0x410   : > { %v5126_v44 = vor.u32 %v5830_v59, %v5125_v45  ;;  %3175 = vmatpush.bf16.msrb.mxu2 %v5254_v37  ;;  %v5226_v59 = vor.u32 %v5853_v54, %v5223_v41  ;;  %v5191_v54 = vld [vmem:[#allocation2 + $0xb8] sm:$0xf0] }
 0x411   : > { %3189 = vmatpush.bf16.msrb.mxu3 %v5130_v22  ;;  %v5255_v22 = vld [vmem:[#allocation2 + $0x138] sm:$0xf0] }
 0x412   : > { %3147 = vmatpush.bf16.msrb.mxu0 %v5126_v44 }
 0x414   : > { %3176 = vmatpush.bf16.msrb.mxu2 %v5246_v31 }
 0x415   : > { %3190 = vmatpush.bf16.msrb.mxu3 %v5122_v9  ;;  %v5857_v9 = vld [vmem:[#allocation2 + $0x114] sm:$0xf] }
 0x416   : > { %3148 = vmatpush.bf16.msrb.mxu0 %v5118_v11  ;;  %v5867_v11 = vld [vmem:[#allocation2 + $0x164] sm:$0xf] }
 0x418   : > { %3177 = vmatpush.bf16.msrb.mxu2 %v5238_v4 }
 0x419   : > { %3191 = vmatpush.bf16.msrb.mxu3 %v5114_v27 }
 0x41a   : > { %3149 = vmatpush.bf16.msrb.mxu0 %v5110_v63  ;;  %v5097_v63 = vld [vmem:[#allocation4 + $0x8] sm:$0xf] }
 0x41b   : > { %v6568_v35 = vor.u32 %v5822_v17, %v5097_v63  ;;  %3263 = vst [vmem:[#allocation4 + $0x8] sm:$0xf] %v5295_v33 }
 0x41c   : > { %3178 = vmatpush.bf16.msrb.mxu2 %v5230_v18  ;;  %v5231_v18 = vld [vmem:[#allocation2 + $0x108] sm:$0xf0] }
 0x41e   : > { %3150 = vmatpush.bf16.msrb.mxu0 %v5102_v43  ;;  %v5106_v43 = vor.u32 %v5823_v36, %v5103_v39 }
 0x41f   : > { %3179 = vmatmul.bf16.vlgmr.msrb.gmra.mxu2 %v6568_v35 }
 0x420   : > { %3192 = vmatpush.bf16.msrb.mxu3 %v5106_v43  ;;  %v5887_v43 = vld [vmem:[#allocation2 + $0x64] sm:$0xf0] }
 0x422   : > { %3199 = vmatpush.bf16.msra.mxu0 %v5226_v59 }
 0x461   : > { %v2750_v57 = vpop.f32.mrf.mxu0 }
 0x469   : > { %v2752_v55 = vpop.f32.mrf.mxu0 }
 0x482   : > { %v2722_v25 = vpop.f32.mrf.mxu2  ;;  %v2736_v26 = vpop.f32.mrf.mxu3 }
 0x483   : > { %v2737_v32 = vadd.f32 %v2736_v26, %v2722_v25  ;;  %v5207_v25 = vld [vmem:[#allocation2 + $0xd8] sm:$0xf0]  ;;  %v2764_v26 = vpop.f32.mrf.mxu1 }
 0x484   : > { %v5210_v28 = vor.u32 %v5849_v24, %v5207_v25 }
 0x485   : > { %v2751_v19 = vadd.f32 %v2750_v57, %v2737_v32  ;;  %v5218_v57 = vor.u32 %v5851_v5, %v5215_v53  ;;  %v5271_v32 = vld [vmem:[#allocation2 + $0x158] sm:$0xf0]  ;;  %v5841_v53 = vld [vmem:[#allocation2 + $0x94] sm:$0xf] }
 0x486   : > { %v5274_v6 = vor.u32 %v5865_v30, %v5271_v32 }
 0x487   : > { %v2801_v40 = vsub.f32 %v2751_v19, %v6532_v42  ;;  %3200 = vmatpush.bf16.msra.mxu0 %v5218_v57  ;;  %v5296_v19 = vld [vmem:[%s6385_s10 + $0x3c] sm:$0xf]  ;;  %v5239_v57 = vld [vmem:[#allocation2 + $0x118] sm:$0xf0] }
 0x488   : > { %3264 = vst [vmem:[#allocation4 + $0x14] sm:$0xf] %v5296_v19  ;;  %v5431_v19 = vld [vmem:[#allocation2 + $0xf0] sm:$0xf] }
 0x489   : > { %v2805_v29 = vmul.f32 0.33333334, %v2801_v40  ;;  %v5847_v40 = vld [vmem:[#allocation2 + $0xc4] sm:$0xf] }
 0x48a   : > { %v2724_v58 = vpop.f32.mrf.mxu2  ;;  %v2738_v45 = vpop.f32.mrf.mxu3  ;;  %v5202_v31 = vor.u32 %v5847_v40, %v5199_v46  ;;  %v5359_v40 = vld [vmem:[#allocation2 + $0x60] sm:$0xf] }
 0x48b   : > { %v6562_v44 = vadd.f32 %v2805_v29, %v6532_v42  ;;  %v2739_v61 = vadd.f32 %v2738_v45, %v2724_v58  ;;  %v5279_v42 = vld [vmem:[#allocation2 + $0x168] sm:$0xf0]  ;;  %3201 = vmatpush.bf16.msra.mxu0 %v5210_v28  ;;  %v5861_v29 = vld [vmem:[#allocation2 + $0x134] sm:$0xf]  ;;  %v5843_v58 = vld [vmem:[#allocation2 + $0xa4] sm:$0xf]  ;;  %v2766_v59 = vpop.f32.mrf.mxu1  ;;  %v5360_v47 = vor.u32 %v5887_v43, %v5359_v40 }
 0x48c   : > { %v5282_v12 = vor.u32 %v5867_v11, %v5279_v42  ;;  %v5258_v56 = vor.u32 %v5861_v29, %v5255_v22  ;;  %v5183_v45 = vld [vmem:[#allocation2 + $0xa8] sm:$0xf0]  ;;  %v5423_v46 = vld [vmem:[#allocation2 + $0xe0] sm:$0xf]  ;;  %v5875_v40 = vld [vmem:[#allocation2 + $0x4] sm:$0xf0] }
 0x48d   : > { %5081 = vst [vmem:[%s6392_s27 + $0xa0] sm:$0xff] %v6562_v44  ;;  %v2753_v8 = vadd.f32 %v2752_v55, %v2739_v61  ;;  %v5194_v55 = vor.u32 %v5845_v52, %v5191_v54  ;;  %v5859_v61 = vld [vmem:[#allocation2 + $0x124] sm:$0xf]  ;;  %6052 = vtanh.f32 %v6562_v44  ;;  %v5186_v4 = vor.u32 %v5843_v58, %v5183_v45  ;;  %v5901_v52 = vld [vmem:[#allocation2 + $0xd4] sm:$0xf0] }
 0x48e   : > { %3214 = vmatpush.bf16.msra.mxu1 %v5282_v12  ;;  %v5250_v5 = vor.u32 %v5859_v61, %v5247_v62  ;;  %v5242_v12 = vor.u32 %v5857_v9, %v5239_v57  ;;  %v5343_v29 = vld [vmem:[#allocation2 + $0x40] sm:$0xf]  ;;  %v5888_v58 = vld [vmem:[#allocation2 + $0x74] sm:$0xf]  ;;  %v5369_v45 = vld [vmem:[#allocation2 + $0x78] sm:$0xf0] }
 0x48f   : > { %v2803_v0 = vsub.f32 %v2753_v8, %v6538_v21  ;;  %3202 = vmatpush.bf16.msra.mxu0 %v5202_v31  ;;  %v5175_v8 = vld [vmem:[#allocation2 + $0x98] sm:$0xf0]  ;;  %v5351_v31 = vld [vmem:[#allocation2 + $0x50] sm:$0xf]  ;;  %v5407_v22 = vld [vmem:[#allocation2 + $0xc0] sm:$0xf] }
 0x490   : > { %v5178_v11 = vor.u32 %v5841_v53, %v5175_v8  ;;  %v5335_v61 = vld [vmem:[#allocation2 + $0x30] sm:$0xf]  ;;  %v5881_v62 = vld [vmem:[#allocation2 + $0x34] sm:$0xf0]  ;;  %v5327_v9 = vld [vmem:[#allocation2 + $0x20] sm:$0xf] }
 0x491   : > { %v2807_v14 = vmul.f32 0.33333334, %v2803_v0  ;;  %v5855_v0 = vld [vmem:[#allocation2 + $0x104] sm:$0xf]  ;;  %v5879_v57 = vld [vmem:[#allocation2 + $0x24] sm:$0xf0] }
 0x492   : > { %v2778_v37 = vpop.f32.mrf.mxu2  ;;  %v2792_v34 = vpop.f32.mrf.mxu3  ;;  %3215 = vmatpush.bf16.msra.mxu1 %v5274_v6  ;;  %v5234_v27 = vor.u32 %v5855_v0, %v5231_v18  ;;  %v5884_v18 = vld [vmem:[#allocation2 + $0x54] sm:$0xf]  ;;  %v5375_v43 = vld [vmem:[#allocation2 + $0x80] sm:$0xf] }
 0x493   : > { %v6572_v38 = vadd.f32 %v2807_v14, %v6538_v21  ;;  %v2779_v23 = vadd.f32 %v2778_v37, %v2764_v26  ;;  %3203 = vmatpush.bf16.msra.mxu0 %v5194_v55  ;;  %v6053_v16 = vpop.eup %6052  ;;  %v5170_v26 = vor.u32 %v5839_v13, %v5167_v15  ;;  %v5367_v37 = vld [vmem:[#allocation2 + $0x70] sm:$0xf]  ;;  %v5883_v55 = vld [vmem:[#allocation2 + $0x44] sm:$0xf0]  ;;  %v5921_v15 = vld [vmem:[#allocation2 + $0x174] sm:$0xf0] }
 0x494   : > { %v5495_v13 = vld [vmem:[#allocation2 + $0x170] sm:$0xf] }
 0x495   : > { %5083 = vst [vmem:[%s6392_s27 + $0xb0] sm:$0xff] %v6572_v38  ;;  %v2793_v49 = vadd.f32 %v2792_v34, %v2779_v23  ;;  %v5889_v34 = vld [vmem:[#allocation2 + $0x74] sm:$0xf0]  ;;  %v5496_v0 = vor.u32 %v5921_v15, %v5495_v13  ;;  %v5463_v13 = vld [vmem:[#allocation2 + $0x130] sm:$0xf] }
 0x496   : > { %3216 = vmatpush.bf16.msra.mxu1 %v5266_v51  ;;  %v5368_v36 = vor.u32 %v5889_v34, %v5367_v37  ;;  %v5905_v23 = vld [vmem:[#allocation2 + $0xf4] sm:$0xf0]  ;;  %v5882_v34 = vld [vmem:[#allocation2 + $0x44] sm:$0xf] }
 0x497   : > { %v2802_v21 = vsub.f32 %v2793_v49, %v6544_v50  ;;  %3204 = vmatpush.bf16.msra.mxu0 %v5186_v4  ;;  %v5432_v39 = vor.u32 %v5905_v23, %v5431_v19  ;;  %v5424_v49 = vor.u32 %v5903_v48, %v5423_v46  ;;  %v5885_v51 = vld [vmem:[#allocation2 + $0x54] sm:$0xf0]  ;;  %v5345_v19 = vld [vmem:[#allocation2 + $0x48] sm:$0xf0]  ;;  %v5891_v48 = vld [vmem:[#allocation2 + $0x84] sm:$0xf0] }
 0x498   : > { %3573 = vmatpush.bf16.msra.mxu2 %v5368_v36  ;;  %v5897_v4 = vld [vmem:[#allocation2 + $0xb4] sm:$0xf0]  ;;  %v5348_v23 = vor.u32 %v5882_v34, %v5345_v19 }
 0x499   : > { %v2806_v41 = vmul.f32 0.33333334, %v2802_v21  ;;  %3587 = vmatpush.bf16.msra.mxu3 %v5432_v39  ;;  %v5415_v21 = vld [vmem:[#allocation2 + $0xd0] sm:$0xf]  ;;  %v5311_v39 = vld [vmem:[#allocation2] sm:$0xf] }
 0x49a   : > { %v2780_v60 = vpop.f32.mrf.mxu2  ;;  %v2794_v3 = vpop.f32.mrf.mxu3  ;;  %3217 = vmatpush.bf16.msra.mxu1 %v5258_v56  ;;  %v5416_v54 = vor.u32 %v5901_v52, %v5415_v21  ;;  %v5899_v56 = vld [vmem:[#allocation2 + $0xc4] sm:$0xf0]  ;;  %v5337_v52 = vld [vmem:[#allocation2 + $0x38] sm:$0xf0]  ;;  %v5913_v15 = vld [vmem:[#allocation2 + $0x134] sm:$0xf0] }
 0x49b   : > { %v6579_v1 = vadd.f32 %v2806_v41, %v6544_v50  ;;  %v2781_v2 = vadd.f32 %v2780_v60, %v2766_v59  ;;  %3205 = vmatpush.bf16.msra.mxu0 %v5178_v11  ;;  %v5344_v41 = vor.u32 %v5883_v55, %v5343_v29  ;;  %v5408_v59 = vor.u32 %v5899_v56, %v5407_v22  ;;  %v5920_v56 = vld [vmem:[#allocation2 + $0x174] sm:$0xf] }
 0x49c   : > { %3574 = vmatpush.bf16.msra.mxu2 %v5360_v47  ;;  %v5372_v60 = vor.u32 %v5888_v58, %v5369_v45  ;;  %v5312_v47 = vor.u32 %v5875_v40, %v5311_v39  ;;  %v5409_v39 = vld [vmem:[#allocation2 + $0xc8] sm:$0xf0] }
 0x49d   : > { %6054 = vtanh.f32 %v6579_v1  ;;  %5082 = vst [vmem:[%s6392_s27 + $0xa8] sm:$0xff] %v6579_v1  ;;  %v2795_v7 = vadd.f32 %v2794_v3, %v2781_v2  ;;  %3588 = vmatpush.bf16.msra.mxu3 %v5424_v49  ;;  %v5399_v2 = vld [vmem:[#allocation2 + $0xb0] sm:$0xf]  ;;  %v5336_v3 = vor.u32 %v5881_v62, %v5335_v61 }
 0x49e   : > { %3218 = vmatpush.bf16.msra.mxu1 %v5250_v5  ;;  %6056 = vtanh.f32 %v6572_v38  ;;  %v5361_v5 = vld [vmem:[#allocation2 + $0x68] sm:$0xf0]  ;;  %v5400_v53 = vor.u32 %v5897_v4, %v5399_v2  ;;  %v5479_v49 = vld [vmem:[#allocation2 + $0x150] sm:$0xf]  ;;  %v5915_v4 = vld [vmem:[#allocation2 + $0x144] sm:$0xf0] }
 0x49f   : > { %v2804_v50 = vsub.f32 %v2795_v7, %v6554_v10  ;;  %3206 = vmatpush.bf16.msra.mxu0 %v5170_v26  ;;  %v5886_v7 = vld [vmem:[#allocation2 + $0x64] sm:$0xf] }
 0x4a0   : > { %v5364_v8 = vor.u32 %v5886_v7, %v5361_v5  ;;  %v5878_v7 = vld [vmem:[#allocation2 + $0x24] sm:$0xf] }
 0x4a1   : > { %v2808_v42 = vmul.f32 0.33333334, %v2804_v50  ;;  %3589 = vmatpush.bf16.msra.mxu3 %v5416_v54  ;;  %v5391_v50 = vld [vmem:[#allocation2 + $0xa0] sm:$0xf]  ;;  %v5904_v54 = vld [vmem:[#allocation2 + $0xf4] sm:$0xf] }
 0x4a2   : > { %3219 = vmatpush.bf16.msra.mxu1 %v5242_v12  ;;  %v3180_v11 = vpop.f32.mrf.mxu2  ;;  %v5895_v12 = vld [vmem:[#allocation2 + $0xa4] sm:$0xf0] }
 0x4a3   : > { %v6055_v20 = vpop.eup %6054  ;;  %v6587_v24 = vadd.f32 %v2808_v42, %v6554_v10  ;;  %v5328_v42 = vor.u32 %v5879_v57, %v5327_v9  ;;  %v5425_v9 = vld [vmem:[#allocation2 + $0xe8] sm:$0xf0] }
 0x4a4   : > { %v2821_v25 = vpack.c.bf16 %v6055_v20, %v6053_v16  ;;  %v6057_v28 = vpop.eup %6056  ;;  %v5392_v16 = vor.u32 %v5895_v12, %v5391_v50  ;;  %v5353_v20 = vld [vmem:[#allocation2 + $0x58] sm:$0xf0] }
 0x4a5   : > { %6058 = vtanh.f32 %v6587_v24  ;;  %5084 = vst [vmem:[%s6392_s27 + $0xb8] sm:$0xff] %v6587_v24  ;;  %3590 = vmatpush.bf16.msra.mxu3 %v5408_v59 }
 0x4a6   : > { %2823 = vst [vmem:[#allocation4] sm:$0xff] %v2821_v25  ;;  %3220 = vmatpush.bf16.msra.mxu1 %v5234_v27  ;;  %v5356_v25 = vor.u32 %v5884_v18, %v5353_v20  ;;  %v5464_v18 = vor.u32 %v5913_v15, %v5463_v13  ;;  %v5321_v20 = vld [vmem:[#allocation2 + $0x18] sm:$0xf0]  ;;  %v5892_v13 = vld [vmem:[#allocation2 + $0x94] sm:$0xf] }
 0x4a7   : > { %v5908_v15 = vld [vmem:[#allocation2 + $0x114] sm:$0xf] }
 0x4a9   : > { %3591 = vmatpush.bf16.msra.mxu3 %v5400_v53  ;;  %v5329_v53 = vld [vmem:[#allocation2 + $0x28] sm:$0xf0] }
 0x4aa   : > { %v3182_v55 = vpop.f32.mrf.mxu2  ;;  %v5332_v50 = vor.u32 %v5878_v7, %v5329_v53  ;;  %v5910_v7 = vld [vmem:[#allocation2 + $0x124] sm:$0xf] }
 0x4ab   : > { %v6059_v30 = vpop.eup %6058 }
 0x4ac   : > { %v2822_v32 = vpack.c.bf16 %v6059_v30, %v6057_v28  ;;  %v5319_v28 = vld [vmem:[#allocation2 + $0x10] sm:$0xf]  ;;  %v5877_v30 = vld [vmem:[#allocation2 + $0x14] sm:$0xf0] }
 0x4ad   : > { %v5089_v10 = vld [vmem:[#allocation4] sm:$0xf]  ;;  %v5820_v14 = vld [vmem:[#allocation4 + $0x4] sm:$0xf]  ;;  %3592 = vmatpush.bf16.msra.mxu3 %v5392_v16  ;;  %v5876_v16 = vld [vmem:[#allocation2 + $0x14] sm:$0xf] }
 0x4ae   : > { %2824 = vst [vmem:[#allocation4 + $0xc] sm:$0xff] %v2822_v32  ;;  %v5383_v32 = vld [vmem:[#allocation2 + $0x90] sm:$0xf] }
 0x4b5   : > { %v5821_v63 = vld [vmem:[#allocation4 + $0x8] sm:$0xf0]  ;;  %v5091_v6 = vld [vmem:[#allocation4 + $0xc] sm:$0xf0] }
 0x4b6   : > { %v5090_v17 = vor.u32 %v5821_v63, %v5089_v10  ;;  %v5094_v33 = vor.u32 %v5820_v14, %v5091_v6  ;;  %v5320_v63 = vor.u32 %v5877_v30, %v5319_v28  ;;  %v5893_v14 = vld [vmem:[#allocation2 + $0x94] sm:$0xf0]  ;;  %v5487_v6 = vld [vmem:[#allocation2 + $0x160] sm:$0xf]  ;;  %v5324_v28 = vor.u32 %v5876_v16, %v5321_v20  ;;  %v5449_v16 = vld [vmem:[#allocation2 + $0x118] sm:$0xf0] }
 0x4b8   : > { %3151 = vmatmul.bf16.vlgmr.msrb.gmra.mxu0 %v5090_v17  ;;  %3165 = vmatmul.bf16.vlgmr.msrb.gmra.mxu1 %v5094_v33 }
 0x4b9   : > { %3193 = vmatmul.bf16.vlgmr.msrb.gmra.mxu3 %v5090_v17  ;;  %3615 = vmatpush.bf16.msrb.mxu1 %v5372_v60  ;;  %v5919_v17 = vld [vmem:[#allocation2 + $0x164] sm:$0xf0]  ;;  %v5497_v60 = vld [vmem:[#allocation2 + $0x178] sm:$0xf0] }
 0x4ba   : > { %3601 = vmatpush.bf16.msrb.mxu0 %v5496_v0  ;;  %v5488_v37 = vor.u32 %v5919_v17, %v5487_v6  ;;  %v5500_v2 = vor.u32 %v5920_v56, %v5497_v60  ;;  %v5911_v17 = vld [vmem:[#allocation2 + $0x124] sm:$0xf0] }
 0x4bd   : > { %3616 = vmatpush.bf16.msrb.mxu1 %v5364_v8  ;;  %v5902_v8 = vld [vmem:[#allocation2 + $0xe4] sm:$0xf] }
 0x4be   : > { %3602 = vmatpush.bf16.msrb.mxu0 %v5488_v37 }
 0x4c1   : > { %3617 = vmatpush.bf16.msrb.mxu1 %v5356_v25  ;;  %v5900_v25 = vld [vmem:[#allocation2 + $0xd4] sm:$0xf] }
 0x4c5   : > { %3618 = vmatpush.bf16.msrb.mxu1 %v5348_v23  ;;  %v5898_v23 = vld [vmem:[#allocation2 + $0xc4] sm:$0xf] }
 0x4c8   : > { %3207 = vmatmul.bf16.vlgmr.msra.gmra.mxu0 %v5094_v33  ;;  %3221 = vmatmul.bf16.vlgmr.msra.gmra.mxu1 %v6568_v35  ;;  %v5352_v35 = vor.u32 %v5885_v51, %v5351_v31  ;;  %v5384_v33 = vor.u32 %v5893_v14, %v5383_v32  ;;  %v5917_v31 = vld [vmem:[#allocation2 + $0x154] sm:$0xf0]  ;;  %v5376_v51 = vor.u32 %v5891_v48, %v5375_v43  ;;  %v5916_v32 = vld [vmem:[#allocation2 + $0x154] sm:$0xf]  ;;  %v5473_v48 = vld [vmem:[#allocation2 + $0x148] sm:$0xf0] }
 0x4c9   : > { %v5480_v21 = vor.u32 %v5917_v31, %v5479_v49  ;;  %v5412_v49 = vor.u32 %v5898_v23, %v5409_v39 }
 0x4ca   : > { %3575 = vmatpush.bf16.msra.mxu2 %v5352_v35  ;;  %3593 = vmatpush.bf16.msra.mxu3 %v5384_v33  ;;  %v5880_v35 = vld [vmem:[#allocation2 + $0x34] sm:$0xf]  ;;  %v5874_v33 = vld [vmem:[#allocation2 + $0x4] sm:$0xf] }
 0x4cb   : > { %v5340_v22 = vor.u32 %v5880_v35, %v5337_v52  ;;  %3603 = vmatpush.bf16.msrb.mxu0 %v5480_v21  ;;  %v5447_v35 = vld [vmem:[#allocation2 + $0x110] sm:$0xf]  ;;  %v5909_v52 = vld [vmem:[#allocation2 + $0x114] sm:$0xf0] }
 0x4cd   : > { %3619 = vmatpush.bf16.msrb.mxu1 %v5340_v22  ;;  %v5465_v22 = vld [vmem:[#allocation2 + $0x138] sm:$0xf0] }
 0x4ce   : > { %3576 = vmatpush.bf16.msra.mxu2 %v5344_v41  ;;  %v5433_v41 = vld [vmem:[#allocation2 + $0xf8] sm:$0xf0]  ;;  %3594 = vmatpush.bf16.msra.mxu3 %v5376_v51 }
 0x4cf   : > { %v5436_v59 = vor.u32 %v5904_v54, %v5433_v41  ;;  %v5448_v54 = vor.u32 %v5909_v52, %v5447_v35 }
 0x4d1   : > { %3620 = vmatpush.bf16.msrb.mxu1 %v5332_v50 }
 0x4d2   : > { %3577 = vmatpush.bf16.msra.mxu2 %v5336_v3  ;;  %v5471_v3 = vld [vmem:[#allocation2 + $0x140] sm:$0xf]  ;;  %3643 = vmatpush.bf16.msrb.mxu3 %v5500_v2 }
 0x4d3   : > { %v5472_v5 = vor.u32 %v5915_v4, %v5471_v3  ;;  %v5894_v3 = vld [vmem:[#allocation2 + $0xa4] sm:$0xf]  ;;  %v5393_v4 = vld [vmem:[#allocation2 + $0xa8] sm:$0xf0] }
 0x4d5   : > { %3604 = vmatpush.bf16.msrb.mxu0 %v5472_v5  ;;  %3621 = vmatpush.bf16.msrb.mxu1 %v5324_v28 }
 0x4d6   : > { %3578 = vmatpush.bf16.msra.mxu2 %v5328_v42  ;;  %v5918_v42 = vld [vmem:[#allocation2 + $0x164] sm:$0xf] }
 0x4d9   : > { %3605 = vmatpush.bf16.msrb.mxu0 %v5464_v18 }
 0x4da   : > { %3579 = vmatpush.bf16.msra.mxu2 %v5320_v63  ;;  %v5455_v63 = vld [vmem:[#allocation2 + $0x120] sm:$0xf] }
 0x4db   : > { %v5456_v19 = vor.u32 %v5911_v17, %v5455_v63 }
 0x4dd   : > { %3606 = vmatpush.bf16.msrb.mxu0 %v5456_v19 }
 0x4de   : > { %3580 = vmatpush.bf16.msra.mxu2 %v5312_v47  ;;  %v5914_v47 = vld [vmem:[#allocation2 + $0x144] sm:$0xf] }
 0x4df   : > { %v5476_v51 = vor.u32 %v5914_v47, %v5473_v48 }
 0x4e1   : > { %3607 = vmatpush.bf16.msrb.mxu0 %v5448_v54 }
 0x4e2   : > { %3629 = vmatpush.bf16.msrb.mxu2 %v5436_v59  ;;  %v5907_v59 = vld [vmem:[#allocation2 + $0x104] sm:$0xf0] }
 0x535   : > { %v3152_v26 = vpop.f32.mrf.mxu0  ;;  %v3166_v27 = vpop.f32.mrf.mxu1 }
 0x536   : > { %v3167_v10 = vadd.f32 %v3166_v27, %v3152_v26  ;;  %v5417_v26 = vld [vmem:[#allocation2 + $0xd8] sm:$0xf0] }
 0x537   : > { %v5420_v30 = vor.u32 %v5900_v25, %v5417_v26  ;;  %v5452_v25 = vor.u32 %v5908_v15, %v5449_v16  ;;  %v5890_v26 = vld [vmem:[#allocation2 + $0x84] sm:$0xf] }
 0x538   : > { %v3181_v36 = vadd.f32 %v3180_v11, %v3167_v10  ;;  %v5428_v11 = vor.u32 %v5902_v8, %v5425_v9  ;;  %v5481_v10 = vld [vmem:[#allocation2 + $0x158] sm:$0xf0]  ;;  %v5457_v8 = vld [vmem:[#allocation2 + $0x128] sm:$0xf0]  ;;  %v5307_v9 = vld [vmem:[#allocation4 + $0x8] sm:$0xf] }
 0x539   : > { %v5484_v6 = vor.u32 %v5916_v32, %v5481_v10  ;;  %v5441_v32 = vld [vmem:[#allocation2 + $0x108] sm:$0xf0] }
 0x53a   : > { %v3231_v46 = vsub.f32 %v3181_v36, %v6562_v44  ;;  %3630 = vmatpush.bf16.msrb.mxu2 %v5428_v11  ;;  %v5313_v36 = vld [vmem:[#allocation2 + $0x8] sm:$0xf0]  ;;  %v5396_v11 = vor.u32 %v5894_v3, %v5393_v4 }
 0x53c   : > { %v3235_v29 = vmul.f32 0.33333334, %v3231_v46  ;;  %v3194_v27 = vpop.f32.mrf.mxu3  ;;  %v5316_v46 = vor.u32 %v5874_v33, %v5313_v36 }
 0x53d   : > { %v3154_v58 = vpop.f32.mrf.mxu0  ;;  %v3168_v45 = vpop.f32.mrf.mxu1 }
 0x53e   : > { %v6596_v61 = vadd.f32 %v3235_v29, %v6562_v44  ;;  %v3169_v62 = vadd.f32 %v3168_v45, %v3154_v58  ;;  %v5489_v44 = vld [vmem:[#allocation2 + $0x168] sm:$0xf0]  ;;  %3631 = vmatpush.bf16.msrb.mxu2 %v5420_v30  ;;  %3622 = vmatpush.bf16.msrb.mxu1 %v5316_v46  ;;  %v5401_v29 = vld [vmem:[#allocation2 + $0xb8] sm:$0xf0]  ;;  %v5439_v45 = vld [vmem:[#allocation2 + $0x100] sm:$0xf] }
 0x53f   : > { %v5492_v12 = vor.u32 %v5918_v42, %v5489_v44  ;;  %v5440_v2 = vor.u32 %v5907_v59, %v5439_v45  ;;  %v5460_v44 = vor.u32 %v5910_v7, %v5457_v8  ;;  %v5906_v30 = vld [vmem:[#allocation2 + $0x104] sm:$0xf] }
 0x540   : > { %5291 = vst [vmem:[%s6392_s27 + $0xc0] sm:$0xff] %v6596_v61  ;;  %v3183_v57 = vadd.f32 %v3182_v55, %v3169_v62  ;;  %v5912_v55 = vld [vmem:[#allocation2 + $0x134] sm:$0xf]  ;;  %6060 = vtanh.f32 %v6596_v61  ;;  %v5444_v17 = vor.u32 %v5906_v30, %v5441_v32 }
 0x541   : > { %3644 = vmatpush.bf16.msrb.mxu3 %v5492_v12  ;;  %v5468_v58 = vor.u32 %v5912_v55, %v5465_v22  ;;  %3608 = vmatpush.bf16.msrb.mxu0 %v5440_v2 }
 0x542   : > { %v3233_v0 = vsub.f32 %v3183_v57, %v6572_v38  ;;  %3632 = vmatpush.bf16.msrb.mxu2 %v5412_v49  ;;  %v5873_v57 = vld [vmem:[#allocation4 + $0x10] sm:$0xf0] }
 0x543   : > { %v5308_v12 = vor.u32 %v5873_v57, %v5307_v9 }
 0x544   : > { %v3237_v14 = vmul.f32 0.33333334, %v3233_v0  ;;  %v3196_v60 = vpop.f32.mrf.mxu3 }
 0x545   : > { %v3208_v37 = vpop.f32.mrf.mxu0  ;;  %v3222_v34 = vpop.f32.mrf.mxu1  ;;  %3645 = vmatpush.bf16.msrb.mxu3 %v5484_v6  ;;  %3609 = vmatmul.bf16.vlgmr.msrb.gmra.mxu0 %v5308_v12 }
 0x546   : > { %v6602_v40 = vadd.f32 %v3237_v14, %v6572_v38  ;;  %v3209_v43 = vadd.f32 %v3208_v37, %v3194_v27  ;;  %v5896_v38 = vld [vmem:[#allocation2 + $0xb4] sm:$0xf]  ;;  %v5377_v27 = vld [vmem:[#allocation2 + $0x88] sm:$0xf0]  ;;  %v6061_v28 = vpop.eup %6060 }
 0x547   : > { %v5404_v56 = vor.u32 %v5896_v38, %v5401_v29  ;;  %v5380_v6 = vor.u32 %v5890_v26, %v5377_v27 }
 0x548   : > { %5293 = vst [vmem:[%s6392_s27 + $0xd0] sm:$0xff] %v6602_v40  ;;  %v3223_v31 = vadd.f32 %v3222_v34, %v3209_v43 }
 0x549   : > { %3646 = vmatpush.bf16.msrb.mxu3 %v5476_v51  ;;  %3633 = vmatpush.bf16.msrb.mxu2 %v5404_v56 }
 0x54a   : > { %v3232_v21 = vsub.f32 %v3223_v31, %v6579_v1 }
 0x54c   : > { %v3236_v41 = vmul.f32 0.33333334, %v3232_v21 }
 0x54d   : > { %v3210_v62 = vpop.f32.mrf.mxu0  ;;  %v3224_v50 = vpop.f32.mrf.mxu1  ;;  %3647 = vmatpush.bf16.msrb.mxu3 %v5468_v58  ;;  %3634 = vmatpush.bf16.msrb.mxu2 %v5396_v11 }
 0x54e   : > { %v6608_v5 = vadd.f32 %v3236_v41, %v6579_v1  ;;  %v3211_v53 = vadd.f32 %v3210_v62, %v3196_v60  ;;  %v5385_v1 = vld [vmem:[#allocation2 + $0x98] sm:$0xf0] }
 0x54f   : > { %v5388_v18 = vor.u32 %v5892_v13, %v5385_v1 }
 0x550   : > { %6062 = vtanh.f32 %v6608_v5  ;;  %5292 = vst [vmem:[%s6392_s27 + $0xc8] sm:$0xff] %v6608_v5  ;;  %v3225_v42 = vadd.f32 %v3224_v50, %v3211_v53 }
 0x551   : > { %3648 = vmatpush.bf16.msrb.mxu3 %v5460_v44  ;;  %6064 = vtanh.f32 %v6602_v40  ;;  %3635 = vmatpush.bf16.msrb.mxu2 %v5388_v18 }
 0x552   : > { %v3234_v0 = vsub.f32 %v3225_v42, %v6587_v24 }
 0x554   : > { %v3238_v20 = vmul.f32 0.33333334, %v3234_v0 }
 0x555   : > { %3649 = vmatpush.bf16.msrb.mxu3 %v5452_v25  ;;  %3636 = vmatpush.bf16.msrb.mxu2 %v5380_v6 }
 0x556   : > { %v6063_v10 = vpop.eup %6062  ;;  %v6616_v63 = vadd.f32 %v3238_v20, %v6587_v24 }
 0x557   : > { %v3251_v14 = vpack.c.bf16 %v6063_v10, %v6061_v28  ;;  %v6065_v33 = vpop.eup %6064 }
 0x558   : > { %6066 = vtanh.f32 %v6616_v63  ;;  %5294 = vst [vmem:[%s6392_s27 + $0xd8] sm:$0xff] %v6616_v63 }
 0x559   : > { %3253 = vst [vmem:[#allocation4] sm:$0xff] %v3251_v14  ;;  %3650 = vmatpush.bf16.msrb.mxu3 %v5444_v17 }
 0x55e   : > { %v6067_v37 = vpop.eup %6066 }
 0x55f   : > { %v3252_v34 = vpack.c.bf16 %v6067_v37, %v6065_v33 }
 0x560   : > { %v5299_v24 = vld [vmem:[#allocation4] sm:$0xf]  ;;  %v5871_v36 = vld [vmem:[#allocation4 + $0x4] sm:$0xf] }
 0x561   : > { %3254 = vst [vmem:[#allocation4 + $0xc] sm:$0xff] %v3252_v34 }
 0x568   : > { %v5872_v19 = vld [vmem:[#allocation4 + $0x8] sm:$0xf0]  ;;  %v5301_v23 = vld [vmem:[#allocation4 + $0xc] sm:$0xf0] }
 0x569   : > { %v5300_v39 = vor.u32 %v5872_v19, %v5299_v24  ;;  %v5304_v43 = vor.u32 %v5871_v36, %v5301_v23 }
 0x56b   : > { %3581 = vmatmul.bf16.vlgmr.msra.gmra.mxu2 %v5300_v39  ;;  %3595 = vmatmul.bf16.vlgmr.msra.gmra.mxu3 %v5304_v43 }
 0x56c   : > { %3623 = vmatmul.bf16.vlgmr.msrb.gmra.mxu1 %v5300_v39 }
 0x57b   : > { %3637 = vmatmul.bf16.vlgmr.msrb.gmra.mxu2 %v5304_v43  ;;  %3651 = vmatmul.bf16.vlgmr.msrb.gmra.mxu3 %v5308_v12 }
 0x5c2   : > { %v3610_v46 = vpop.f32.mrf.mxu0 }
 0x5ca   : > { %v3612_v35 = vpop.f32.mrf.mxu0 }
 0x5e9   : > { %v3624_v41 = vpop.f32.mrf.mxu1 }
 0x5ee   : > { %v3582_v47 = vpop.f32.mrf.mxu2  ;;  %v3596_v48 = vpop.f32.mrf.mxu3 }
 0x5ef   : > { %v3597_v49 = vadd.f32 %v3596_v48, %v3582_v47 }
 0x5f1   : > { %v3611_v31 = vadd.f32 %v3610_v46, %v3597_v49  ;;  %v3626_v3 = vpop.f32.mrf.mxu1 }
 0x5f3   : > { %v3661_v51 = vsub.f32 %v3611_v31, %v6596_v61 }
 0x5f5   : > { %v3665_v21 = vmul.f32 0.33333334, %v3661_v51 }
 0x5f6   : > { %v3584_v52 = vpop.f32.mrf.mxu2  ;;  %v3598_v38 = vpop.f32.mrf.mxu3 }
 0x5f7   : > { %v3669_v54 = vadd.f32 %v3665_v21, %v6596_v61  ;;  %v3599_v29 = vadd.f32 %v3598_v38, %v3584_v52 }
 0x5f9   : > { %3673 = vst [vmem:[#allocation3 + $0x10] sm:$0xff] %v3669_v54  ;;  %v3613_v55 = vadd.f32 %v3612_v35, %v3599_v29  ;;  %6068 = vtanh.f32 %v3669_v54 }
 0x5fa   : > { %5501 = vst [vmem:[%s6392_s27 + $0xe0] sm:$0xff] %v3669_v54 }
 0x5fb   : > { %v3663_v22 = vsub.f32 %v3613_v55, %v6602_v40 }
 0x5fd   : > { %v3667_v56 = vmul.f32 0.33333334, %v3663_v22 }
 0x5fe   : > { %v3638_v58 = vpop.f32.mrf.mxu2  ;;  %v3652_v45 = vpop.f32.mrf.mxu3 }
 0x5ff   : > { %v3671_v59 = vadd.f32 %v3667_v56, %v6602_v40  ;;  %v3639_v60 = vadd.f32 %v3638_v58, %v3624_v41 }
 0x601   : > { %3675 = vst [vmem:[#allocation3 + $0x18] sm:$0xff] %v3671_v59  ;;  %v3653_v62 = vadd.f32 %v3652_v45, %v3639_v60 }
 0x602   : > { %5503 = vst [vmem:[%s6392_s27 + $0xf0] sm:$0xff] %v3671_v59 }
 0x603   : > { %v3662_v61 = vsub.f32 %v3653_v62, %v6608_v5 }
 0x605   : > { %v3666_v2 = vmul.f32 0.33333334, %v3662_v61 }
 0x606   : > { %v3640_v4 = vpop.f32.mrf.mxu2  ;;  %v3654_v8 = vpop.f32.mrf.mxu3 }
 0x607   : > { %v3670_v7 = vadd.f32 %v3666_v2, %v6608_v5  ;;  %v3641_v53 = vadd.f32 %v3640_v4, %v3626_v3  ;;  %v6069_v5 = vpop.eup %6068 }
 0x609   : > { %3674 = vst [vmem:[#allocation3] sm:$0xff] %v3670_v7  ;;  %6070 = vtanh.f32 %v3670_v7  ;;  %v3655_v40 = vadd.f32 %v3654_v8, %v3641_v53 }
 0x60a   : > { %5502 = vst [vmem:[%s6392_s27 + $0xe8] sm:$0xff] %v3670_v7  ;;  %6072 = vtanh.f32 %v3671_v59 }
 0x60b   : > { %v3664_v9 = vsub.f32 %v3655_v40, %v6616_v63 }
 0x60d   : > { %v3668_v57 = vmul.f32 0.33333334, %v3664_v9 }
 0x60f   : > { %v6071_v50 = vpop.eup %6070  ;;  %v3672_v11 = vadd.f32 %v3668_v57, %v6616_v63 }
 0x610   : > { %v3681_v42 = vpack.c.bf16 %v6071_v50, %v6069_v5 }
 0x611   : > { %3676 = vst [vmem:[#allocation3 + $0x8] sm:$0xff] %v3672_v11  ;;  %6074 = vtanh.f32 %v3672_v11 }
 0x612   : > { %3683 = vst [vmem:[#allocation4] sm:$0xff] %v3681_v42 }
 0x613   : > { %5504 = vst [vmem:[%s6392_s27 + $0xf8] sm:$0xff] %v3672_v11 }
 0x614   : > { %6187 = shalt.err (!%p6184_p3)
}
 0x615   : > { %s6256_s6 = smov 256   ;;  %s6257_s27 = smov 16   ;;  %v6073_v44 = vpop.eup %6072 }
 0x616   : > { %5930 = dma.vmem_to_hbm [thread:$0]  (%p6357_p5), %s3708_s21, 4096, %s3710_s30, %s3691_s15, %s6256_s6, %s6256_s6, %s6257_s27  }
 0x617   : > { %v6075_v12 = vpop.eup %6074 }
 0x618   : > { %v3682_v13 = vpack.c.bf16 %v6075_v12, %v6073_v44 }
 0x61a   : > { %3684 = vst [vmem:[#allocation4 + $0xc] sm:$0xff] %v3682_v13 }
 0x61b PF: > { %s3724_s19 = sand.u32 1, %s6228_s12   ;;  %p5941_p7 = pnand %p3821_p11, %p6327_p6 }
 0x61c   : > { %s3725_s24 = scalar_lea.sflag [#allocation8], %s3724_s19 }
 0x61d   : > { %p5942_p9 = pneg %p5941_p7 }
 0x61f   : > { %6223 = dma.done.wait (%p5942_p9), %s3725_s24, 4096  }
 0x620   : > { %6225 = vsyncadd (%p5942_p9), %s3725_s24, 4294963200  ;;  %s20_s17 = sadd.s32 1, %s6248_s17   ;;  %s6686_s12 = smov %s6232_s13 }
 0x621   : > { %p17_p2 = scmp.ge.s32.totalorder %s20_s17, 4   ;;  %s6687_s13 = smov %s6236_s14 }
 0x622   : > { %s6688_s14 = smov %s6366_s18  ;;  %s6689_s15 = smov %s6244_s16 }
 0x623   : > { %s6690_s16 = smov %s6692_s5  ;;  %19 = sbr.rel (!%p17_p2) target bundleno = 9 (0x9), region = 101 }
 0x628   :  { %3731 = vsyncpa [#allocation7], 1 }
 0x629   :  { %3733 = vsyncpa [#allocation7 + $0x1], 1 }
 0x62a   :  { %3734 = vsyncpa [#allocation10], 1 }
 0x62b   :  { %3736 = vsyncpa [#allocation10 + $0x1], 1 }
 0x62c   :  { %3737 = vsyncpa [#allocation8], 1 }
 0x62d   :  { %3739 = vsyncpa [#allocation8 + $0x1], 1 }
 0x62e   :  { %3740 = vsyncmov [#allocation5] }
 0x631   :  { %s3741_s23 = vpop.sfrf %3740 }
 0x632   :  { %p5511_p6 = scmp.ne.s32.totalorder %s3741_s23, 0 }
 0x634   :  { %3745 = shalt.err (%p5511_p6)  }

</bundles_post_ra>
